<compile_context>
chip_gen: v6e
topology: v6e:2x2x1
jax: 0.10.0
libtpu: 0.0.40
codegen_flags: <defaults>
</compile_context>

<pallas_src>
import math
import functools

import jax
import jax.numpy as jnp
from jax import lax
from jax.experimental import pallas as pl
from jax.experimental.pallas import tpu as pltpu


# ----------------------------------------------------------------------------
# Pallas kernels
# ----------------------------------------------------------------------------
def _conv_kernel(cols_ref, w_ref, b_ref, pb_ref, o_ref, *, do_norm, slope, eps):
    """One fused Conv2d level for one sample.

    cols_ref: (1, M, K)     bf16  im2col columns (M = Ho*Wo)
    w_ref:    (K, Cout)     bf16
    b_ref:    (1, Cout)     f32   conv bias (zeros for bias=False layers)
    pb_ref:   (1, 1, Cout)  f32   next level's per-(n,c) time bias (zeros if unused)
    o_ref:    (1, M, Cout)        bf16 (or f32)

    matmul (+conv bias) [+InstanceNorm] [+LeakyReLU] (+folded next-level time bias).
    """
    acc = jnp.dot(cols_ref[0], w_ref[...], preferred_element_type=jnp.float32)
    acc = acc + b_ref[...]
    if do_norm:  # InstanceNorm2d (affine=False): per channel over spatial, biased var
        mean = jnp.mean(acc, axis=0, keepdims=True)
        var = jnp.mean(jnp.square(acc - mean), axis=0, keepdims=True)
        acc = (acc - mean) * lax.rsqrt(var + eps)
    if slope is not None:  # slope=0.2 -> LeakyReLU(0.2)
        acc = jnp.where(acc >= 0, acc, slope * acc)
    acc = acc + pb_ref[0]
    o_ref[0] = acc.astype(o_ref.dtype)


def _convt_kernel(cols_ref, w_ref, b_ref, pb_ref, o_ref, *, cout, do_norm, relu, eps):
    """One fused ConvTranspose2d(k=4,s=2,p=1) level as a single lane-dense matmul.

    cols_ref: (1, M, 9*Cin)     bf16 shared 3x3-tap columns (M = H*W input positions)
    w_ref:    (9*Cin, 4*Cout)   bf16 the 4 output phases packed along the output axis
    b_ref:    (1, 4*Cout)       f32  convT bias tiled per phase (zeros for bias=False)
    pb_ref:   (1, 1, 4*Cout)    f32  next level's time bias tiled per phase
    o_ref:    (1, M, 4*Cout)         phase-packed output (depth-to-space on the host)

    InstanceNorm statistics pool over all 4 phases x M positions = the full (2Hx2W)
    output spatial extent of this sample.
    """
    acc = jnp.dot(cols_ref[0], w_ref[...], preferred_element_type=jnp.float32)
    acc = acc + b_ref[...]
    if do_norm:
        cnt = 4.0 * acc.shape[0]
        s = jnp.sum(acc, axis=0, keepdims=True)                        # (1, 4*Cout)
        mean_c = (s[:, 0:cout] + s[:, cout:2 * cout]
                  + s[:, 2 * cout:3 * cout] + s[:, 3 * cout:4 * cout]) / cnt
        mean = jnp.concatenate([mean_c] * 4, axis=-1)
        d = acc - mean
        dsq = jnp.square(d)
        s2 = jnp.sum(dsq, axis=0, keepdims=True)
        var_c = (s2[:, 0:cout] + s2[:, cout:2 * cout]
                 + s2[:, 2 * cout:3 * cout] + s2[:, 3 * cout:4 * cout]) / cnt
        inv = jnp.concatenate([lax.rsqrt(var_c + eps)] * 4, axis=-1)
        acc = d * inv
    if relu:
        acc = jnp.maximum(acc, 0.0)
    acc = acc + pb_ref[0]
    o_ref[0] = acc.astype(o_ref.dtype)


def _mid_kernel(cols_ref, wd2_ref, wb_ref, wu0_ref, pbb_ref, pbu0_ref, pbu1_ref,
                skip_ref, up0_ref, *, c, eps):
    """Fused down2 + bottleneck + up0 for one sample.

    At 4x4 / 2x2 / 1x1 spatial every convolution collapses to a plain matmul, so the
    three levels (and the time-bias adds between them) never leave VMEM.

    cols_ref: (1, 4, 16*Cin) bf16  down2 im2col columns
    wd2_ref:  (16*Cin, c)    bf16  down2 conv weight
    wb_ref:   (4*c, c)       bf16  bottleneck conv (only its 4 centre taps hit data)
    wu0_ref:  (c, 4*c)       bf16  up0 ConvT centre tap, phase-packed output
    pbb/pbu0: (1, 1, c)      f32   bottleneck / up0 input time biases
    pbu1:     (1, 1, 4*c)    f32   up1 input time bias (head), tiled per phase
    skip_ref: (1, 4, c)            down2 output (bias-free skip)
    up0_ref:  (1, 1, 4*c)          up0 output, phase-packed 2x2
    """
    # ---- down2: Conv2d(k4,s2,p1) as matmul + InstanceNorm + LeakyReLU(0.2)
    d2 = jnp.dot(cols_ref[0], wd2_ref[...], preferred_element_type=jnp.float32)  # (4, c)
    mean = jnp.mean(d2, axis=0, keepdims=True)
    var = jnp.mean(jnp.square(d2 - mean), axis=0, keepdims=True)
    d2 = (d2 - mean) * lax.rsqrt(var + eps)
    d2 = jnp.where(d2 >= 0, d2, 0.2 * d2)
    skip_ref[0] = d2.astype(skip_ref.dtype)            # skip stays free of the time bias

    # ---- bottleneck: + time bias; the k4 s2 p1 conv on a 2x2 map only hits the four
    #      centre taps, i.e. one (1, 4c) x (4c, c) matmul on the flattened map.
    xb = (d2 + pbb_ref[0]).astype(jnp.bfloat16)                                   # (4, c)
    xb_flat = jnp.concatenate([xb[r:r + 1] for r in range(4)], axis=-1)           # (1, 4c)
    bott = jnp.dot(xb_flat, wb_ref[...], preferred_element_type=jnp.float32)      # (1, c)
    bott = jnp.where(bott >= 0, bott, 0.2 * bott)      # bottleneck: no InstanceNorm

    # ---- up0: + time bias; ConvT(k4,s2,p1) on a 1x1 map only sees the centre tap,
    #      i.e. one (1, c) x (c, 4c) matmul producing the phase-packed 2x2 output.
    xu = (bott + pbu0_ref[0]).astype(jnp.bfloat16)                                # (1, c)
    u0 = jnp.dot(xu, wu0_ref[...], preferred_element_type=jnp.float32)            # (1, 4c)
    m_c = (u0[:, 0:c] + u0[:, c:2 * c] + u0[:, 2 * c:3 * c] + u0[:, 3 * c:4 * c]) / 4.0
    mean4 = jnp.concatenate([m_c] * 4, axis=-1)
    d = u0 - mean4
    dsq = jnp.square(d)
    v_c = (dsq[:, 0:c] + dsq[:, c:2 * c] + dsq[:, 2 * c:3 * c] + dsq[:, 3 * c:4 * c]) / 4.0
    inv = jnp.concatenate([lax.rsqrt(v_c + eps)] * 4, axis=-1)
    u0 = jnp.maximum(d * inv, 0.0)                     # InstanceNorm over 2x2 + ReLU
    up0_ref[0] = (u0 + pbu1_ref[0]).astype(up0_ref.dtype)


# ----------------------------------------------------------------------------
# XLA-side glue: KB-sized gathers / pads / depth-to-space only (no FLOPs).
# ----------------------------------------------------------------------------
def _im2col(x, k, stride, pad):
    """(N, H, W, C) -> (N, Ho*Wo, k*k*C), tap-major / channel-minor columns."""
    N, H, W, C = x.shape
    xp = jnp.pad(x, ((0, 0), (pad, pad), (pad, pad), (0, 0)))
    Ho = (H + 2 * pad - k) // stride + 1
    Wo = (W + 2 * pad - k) // stride + 1
    taps = [xp[:, i:i + stride * Ho:stride, j:j + stride * Wo:stride, :]
            for i in range(k) for j in range(k)]
    cols = jnp.concatenate(taps, axis=-1)
    return cols.reshape(N, Ho * Wo, k * k * C), Ho, Wo


def _convt_cols(x):
    """Shared 3x3-tap columns for ConvTranspose2d(k=4, s=2, p=1): (N, H*W, 9*C)."""
    N, H, W, C = x.shape
    xp = jnp.pad(x, ((0, 0), (1, 1), (1, 1), (0, 0)))
    taps = [xp[:, di:di + H, dj:dj + W, :] for di in range(3) for dj in range(3)]
    return jnp.concatenate(taps, axis=-1).reshape(N, H * W, 9 * C)


def _depth_to_space(y, H, W, C):
    """Phase-packed (N, H*W, 4*C) -> (N, 2H, 2W, C)."""
    N = y.shape[0]
    y = y.reshape(N, H, W, 2, 2, C).transpose(0, 1, 3, 2, 4, 5)
    return y.reshape(N, 2 * H, 2 * W, C)


# ----------------------------------------------------------------------------
# Fused-level wrappers (one pallas_call each; grid over the batch)
# ----------------------------------------------------------------------------
def conv_level(x, wmat, conv_bias, post_bias, *, k, stride, pad, do_norm, slope,
               eps=1e-5, out_dtype=jnp.bfloat16):
    N = x.shape[0]
    cols, Ho, Wo = _im2col(x.astype(jnp.bfloat16), k, stride, pad)
    M, K = cols.shape[1], cols.shape[2]
    Cout = wmat.shape[1]
    if conv_bias is None:
        conv_bias = jnp.zeros((1, Cout), jnp.float32)
    pb = (jnp.zeros((N, 1, Cout), jnp.float32) if post_bias is None
          else post_bias.astype(jnp.float32)[:, None, :])
    kern = functools.partial(_conv_kernel, do_norm=do_norm, slope=slope, eps=eps)
    out = pl.pallas_call(
        kern,
        grid=(N,),
        in_specs=[pl.BlockSpec((1, M, K), lambda n: (n, 0, 0)),
                  pl.BlockSpec((K, Cout), lambda n: (0, 0)),
                  pl.BlockSpec((1, Cout), lambda n: (0, 0)),
                  pl.BlockSpec((1, 1, Cout), lambda n: (n, 0, 0))],
        out_specs=pl.BlockSpec((1, M, Cout), lambda n: (n, 0, 0)),
        out_shape=jax.ShapeDtypeStruct((N, M, Cout), out_dtype),
        compiler_params=pltpu.CompilerParams(dimension_semantics=("parallel",)),
    )(cols, wmat, conv_bias.astype(jnp.float32), pb)
    return out.reshape(N, Ho, Wo, Cout)


def convt_level(x, wshared, conv_bias, post_bias, *, cout, do_norm, relu,
                eps=1e-5, out_dtype=jnp.bfloat16):
    N, H, W, C = x.shape
    cols = _convt_cols(x.astype(jnp.bfloat16))
    M, K, P = H * W, 9 * C, 4 * cout
    if conv_bias is None:
        conv_bias = jnp.zeros((1, P), jnp.float32)
    pb = (jnp.zeros((N, 1, P), jnp.float32) if post_bias is None
          else post_bias.astype(jnp.float32)[:, None, :])
    kern = functools.partial(_convt_kernel, cout=cout, do_norm=do_norm, relu=relu, eps=eps)
    out = pl.pallas_call(
        kern,
        grid=(N,),
        in_specs=[pl.BlockSpec((1, M, K), lambda n: (n, 0, 0)),
                  pl.BlockSpec((K, P), lambda n: (0, 0)),
                  pl.BlockSpec((1, P), lambda n: (0, 0)),
                  pl.BlockSpec((1, 1, P), lambda n: (n, 0, 0))],
        out_specs=pl.BlockSpec((1, M, P), lambda n: (n, 0, 0)),
        out_shape=jax.ShapeDtypeStruct((N, M, P), out_dtype),
        compiler_params=pltpu.CompilerParams(dimension_semantics=("parallel",)),
    )(cols, wshared, conv_bias.astype(jnp.float32), pb)
    return out  # (N, M, 4*cout), phase-packed


def mid_block(x, w_d2, w_bott, w_up0, pb_bott, pb_up0, pb_up1_head, *, eps=1e-5):
    """Fused down2 + bottleneck + up0 (single pallas_call).  x: (N, 4, 4, Cin)."""
    N = x.shape[0]
    c = w_d2.shape[1]
    cols, Ho, Wo = _im2col(x.astype(jnp.bfloat16), 4, 2, 1)            # (N, 4, 16*Cin)
    M, K = cols.shape[1], cols.shape[2]
    assert M == 4 and w_bott.shape == (4 * c, c) and w_up0.shape == (c, 4 * c)
    skip, u0 = pl.pallas_call(
        functools.partial(_mid_kernel, c=c, eps=eps),
        grid=(N,),
        in_specs=[pl.BlockSpec((1, M, K), lambda n: (n, 0, 0)),
                  pl.BlockSpec((K, c), lambda n: (0, 0)),
                  pl.BlockSpec((4 * c, c), lambda n: (0, 0)),
                  pl.BlockSpec((c, 4 * c), lambda n: (0, 0)),
                  pl.BlockSpec((1, 1, c), lambda n: (n, 0, 0)),
                  pl.BlockSpec((1, 1, c), lambda n: (n, 0, 0)),
                  pl.BlockSpec((1, 1, 4 * c), lambda n: (n, 0, 0))],
        out_specs=(pl.BlockSpec((1, M, c), lambda n: (n, 0, 0)),
                   pl.BlockSpec((1, 1, 4 * c), lambda n: (n, 0, 0))),
        out_shape=(jax.ShapeDtypeStruct((N, M, c), jnp.bfloat16),
                   jax.ShapeDtypeStruct((N, 1, 4 * c), jnp.bfloat16)),
        compiler_params=pltpu.CompilerParams(dimension_semantics=("parallel",)),
    )(cols, w_d2, w_bott, w_up0,
      pb_bott.astype(jnp.float32)[:, None, :],
      pb_up0.astype(jnp.float32)[:, None, :],
      pb_up1_head.astype(jnp.float32)[:, None, :])
    # Phase order of a 1x1 -> 2x2 upsample is row-major position order.
    return skip.reshape(N, Ho, Wo, c), u0.reshape(N, 2, 2, c)


# ----------------------------------------------------------------------------
# Parameters: deterministic init mirroring VectorFieldUNet.__init__ (PyTorch layouts),
# then a one-time repack into matmul-ready bf16 kernel layouts.
# ----------------------------------------------------------------------------
def init_params(key, nir=1, rgb=3, out_vf=1, base=16, levels=3, tdim=32):
    def nxt():
        nonlocal key
        key, sub = jax.random.split(key)
        return sub

    def dense(out_c, in_c):
        return {"w": 0.05 * jax.random.normal(nxt(), (out_c, in_c), jnp.float32),
                "b": 0.05 * jax.random.normal(nxt(), (out_c,), jnp.float32)}

    def conv(out_c, in_c, k):
        return 0.05 * jax.random.normal(nxt(), (out_c, in_c, k, k), jnp.float32)

    params = {"time_mlp": dense(tdim, tdim),
              "initial_conv_w": conv(base, nir + rgb, 3),
              "initial_conv_b": 0.05 * jax.random.normal(nxt(), (base,), jnp.float32)}

    down, cur = [], base
    for i in range(levels):
        out_c = min(base * 2 ** i, 512)
        # UNetDown / bottleneck / UNetUp convolutions are bias=False in the reference.
        down.append({"conv_w": conv(out_c, cur, 4), "time_proj": dense(cur, tdim)})
        cur = out_c
    params["down"] = down

    params["bottleneck_time_proj"] = dense(cur, tdim)
    params["bottleneck_conv_w"] = conv(cur, cur, 4)

    up = []
    for i in range(levels):
        lvl = levels - 1 - i
        skip_c = min(base * 2 ** lvl, 512)
        out_ct = base if lvl == 0 else min(base * 2 ** lvl, 512)
        up.append({"convT_w": 0.05 * jax.random.normal(
                       nxt(), (cur, out_ct, 4, 4), jnp.float32),
                   "time_proj": dense(cur, tdim)})
        cur = out_ct + skip_c
    params["up"] = up

    params["final_convT_w"] = 0.05 * jax.random.normal(
        nxt(), (cur, out_vf, 4, 4), jnp.float32)
    params["final_convT_b"] = 0.05 * jax.random.normal(nxt(), (out_vf,), jnp.float32)
    return params


def _conv_wmat(w):
    """Conv2d weight (Cout, Cin, kh, kw) -> (k*k*Cin, Cout), tap-major rows."""
    Cout, Cin, kh, kw = w.shape
    return w.transpose(2, 3, 1, 0).reshape(kh * kw * Cin, Cout)


# Kernel row used by output phase a at window row di of the shared 3x3 window
# (phases of ConvTranspose2d(k=4,s=2,p=1)); missing pairs never touch data.
_PHASE_TAP = {(0, 0): 3, (0, 1): 1, (1, 1): 2, (1, 2): 0}


def _convt_shared_wmat(w):
    """ConvTranspose2d(k=4,s=2,p=1) weight (Cin, Cout, 4, 4) -> (9*Cin, 4*Cout).

    Shared 3x3-tap formulation: output pixel (2m+a, 2n+b) = <3x3 window of the 1-padded
    input at top-left (m, n)> @ W[:, (2a+b)*Cout : (2a+b+1)*Cout], with taps a given
    phase does not use zeroed out.  One lane-dense matmul replaces 4 per-phase matmuls.
    """
    Cin, Cout = w.shape[0], w.shape[1]
    out = jnp.zeros((9, Cin, 4, Cout), jnp.float32)
    for a in range(2):
        for b in range(2):
            for di in range(3):
                kh = _PHASE_TAP.get((a, di))
                if kh is None:
                    continue
                for dj in range(3):
                    kw = _PHASE_TAP.get((b, dj))
                    if kw is None:
                        continue
                    out = out.at[di * 3 + dj, :, 2 * a + b, :].set(w[:, :, kh, kw])
    return out.reshape(9 * Cin, 4 * Cout)


def _bottleneck_wmat(w):
    """Conv2d(k=4,s=2,p=1) on a 2x2 input only hits taps (1..2, 1..2):
    (Cout, Cin, 4, 4) -> (4*Cin, Cout) acting on the row-major flattened 2x2 map."""
    blocks = [w[:, :, 1 + r, 1 + c].T for r in range(2) for c in range(2)]  # (Cin, Cout)
    return jnp.concatenate(blocks, axis=0)


def prepare_params(params):
    """Repack PyTorch-layout params into kernel-ready bf16 matmul layouts."""
    bf = jnp.bfloat16
    up_shared = [_convt_shared_wmat(b["convT_w"]) for b in params["up"]]
    cin_up0 = params["up"][0]["convT_w"].shape[0]
    prep = {
        "time_w1t": params["time_mlp"]["w"].T,
        "time_b1": params["time_mlp"]["b"][None, :],
        "init_w": _conv_wmat(params["initial_conv_w"]).astype(bf),
        "init_b": params["initial_conv_b"][None, :],
        "down": [_conv_wmat(b["conv_w"]).astype(bf) for b in params["down"]],
        "bott_w": _bottleneck_wmat(params["bottleneck_conv_w"]).astype(bf),
        # up0 runs on a 1x1 map inside the fused mid kernel: only its centre tap matters.
        "up0_w": up_shared[0][4 * cin_up0:5 * cin_up0, :].astype(bf),
        "up1_w": up_shared[1].astype(bf),
        "up2_w": up_shared[2].astype(bf),
        "final_w": _convt_shared_wmat(params["final_convT_w"]).astype(bf),
        "final_b": jnp.tile(params["final_convT_b"][None, :], (1, 4)),  # per phase
    }
    # All seven time projections (3 down + bottleneck + 3 up) as one matrix.
    tps = ([b["time_proj"] for b in params["down"]]
           + [params["bottleneck_time_proj"]]
           + [b["time_proj"] for b in params["up"]])
    prep["tp_wt"] = jnp.concatenate([tp["w"].T for tp in tps], axis=1)  # (tdim, 384)
    prep["tp_b"] = jnp.concatenate([tp["b"] for tp in tps], axis=0)[None, :]
    return prep


# ----------------------------------------------------------------------------
# Forward pass (matches VectorFieldUNet.forward semantics)
# ----------------------------------------------------------------------------
def time_embedding(time, dim, max_period):
    t = time[:, None] if time.ndim == 1 else time
    half = dim // 2
    denom = (half - 1) if half > 1 else 1.0
    div = jnp.exp(jnp.arange(half, dtype=jnp.float32) * -(math.log(max_period) / denom))
    emb = t.astype(jnp.float32) * div
    emb = jnp.concatenate([jnp.sin(emb), jnp.cos(emb)], axis=-1)
    if dim % 2 == 1:
        emb = jnp.pad(emb, ((0, 0), (0, 1)))
    return emb


def vector_field_unet_forward(prep, x_t, time, condition_rgb, *,
                              tdim=32, max_period=1000.0):
    N = x_t.shape[0]

    # --- time path in XLA (two (2,32) dots; a Pallas launch would cost more than it saves)
    t_sin = time_embedding(time, tdim, max_period)
    t_emb = jnp.maximum(t_sin @ prep["time_w1t"] + prep["time_b1"], 0.0)
    all_bias = t_emb @ prep["tp_wt"] + prep["tp_b"]                      # (N, 384)
    sizes = [prep["down"][0].shape[0] // 16,   # down0 in_c
             prep["down"][1].shape[0] // 16,   # down1 in_c
             prep["down"][2].shape[0] // 16,   # down2 in_c
             prep["bott_w"].shape[0] // 4,     # bottleneck in_c
             prep["up0_w"].shape[0],           # up0 in_c
             prep["up1_w"].shape[0] // 9,      # up1 in_c
             prep["up2_w"].shape[0] // 9]      # up2 in_c
    offs = [0]
    for s in sizes:
        offs.append(offs[-1] + s)
    b_d0, b_d1, b_d2, b_bott, b_u0, b_u1, b_u2 = (
        all_bias[:, offs[i]:offs[i + 1]] for i in range(7))

    # --- NCHW -> NHWC once; activations stay channels-last / bf16 end to end
    x = jnp.concatenate([x_t, condition_rgb], axis=1).transpose(0, 2, 3, 1)

    # initial 3x3 conv (conv bias, no norm/act); down0's time bias folded into epilogue
    x = conv_level(x, prep["init_w"], prep["init_b"], b_d0,
                   k=3, stride=1, pad=1, do_norm=False, slope=None)      # (N,16,16,16)

    # down0: LeakyReLU only.  Output doubles as skip0, so no time bias in its epilogue.
    s0 = conv_level(x, prep["down"][0], None, None,
                    k=4, stride=2, pad=1, do_norm=False, slope=0.2)      # (N,8,8,16)

    # down1: IN + LeakyReLU.  Its input time bias is added in XLA (fuses with im2col).
    s1 = conv_level(s0 + b_d1[:, None, None, :], prep["down"][1], None, None,
                    k=4, stride=2, pad=1, do_norm=True, slope=0.2)       # (N,4,4,32)

    # fused mid block: down2 + bottleneck + up0 in one kernel (no HBM hops between them)
    cu0 = prep["up0_w"].shape[1] // 4                                    # up0 out channels
    s2, u0 = mid_block(s1 + b_d2[:, None, None, :],
                       prep["down"][2], prep["bott_w"], prep["up0_w"],
                       pb_bott=b_bott, pb_up0=b_u0,
                       pb_up1_head=jnp.tile(b_u1[:, :cu0], (1, 4)))
    # s2: (N,2,2,64) bias-free skip; u0: (N,2,2,64) with up1's time bias already folded

    # up1: ConvT + IN + ReLU; up2's time-bias head folded into its epilogue
    cu1 = prep["up1_w"].shape[1] // 4
    xin = jnp.concatenate(
        [u0, (s2 + b_u1[:, None, None, cu0:]).astype(jnp.bfloat16)], axis=-1)
    u1 = convt_level(xin, prep["up1_w"], None, jnp.tile(b_u2[:, :cu1], (1, 4)),
                     cout=cu1, do_norm=True, relu=True)                  # (N, 4, 128)
    u1 = _depth_to_space(u1, 2, 2, cu1)                                  # (N,4,4,32)

    # up2: ConvT + IN + ReLU (no time bias follows it)
    cu2 = prep["up2_w"].shape[1] // 4
    xin = jnp.concatenate(
        [u1, (s1 + b_u2[:, None, None, cu1:]).astype(jnp.bfloat16)], axis=-1)
    u2 = convt_level(xin, prep["up2_w"], None, None,
                     cout=cu2, do_norm=True, relu=True)                  # (N, 16, 64)
    u2 = _depth_to_space(u2, 4, 4, cu2)                                  # (N,8,8,16)

    # final ConvT (bias=True, no norm/act).  Its phase-packed output is only 4 lanes
    # wide; at ~1 KiB per sample the masked store is immaterial, so the layout stays.
    xin = jnp.concatenate([u2, s0], axis=-1)                             # (N,8,8,32)
    vf = convt_level(xin, prep["final_w"], prep["final_b"], None,
                     cout=1, do_norm=False, relu=False, out_dtype=jnp.float32)
    vf = _depth_to_space(vf, 8, 8, 1)                                    # (N,16,16,1)
    # TODO(synk): the PyTorch bilinear-resize fallback for mismatched skip sizes is
    # never exercised for power-of-two spatial dims and is not implemented.
    return vf.transpose(0, 3, 1, 2)                                      # back to NCHW


# ----------------------------------------------------------------------------
if __name__ == "__main__":
    key = jax.random.PRNGKey(0)
    kp, kx, kt, kc = jax.random.split(key, 4)

    B, H, W = 2, 16, 16
    params = init_params(kp, nir=1, rgb=3, out_vf=1, base=16, levels=3, tdim=32)
    prep = prepare_params(params)

    x_t = jax.random.normal(kx, (B, 1, H, W), jnp.float32)
    time = jax.random.uniform(kt, (B,), jnp.float32)
    condition_rgb = jax.random.normal(kc, (B, 3, H, W), jnp.float32)

    fwd = jax.jit(vector_field_unet_forward)
    out = jax.block_until_ready(fwd(prep, x_t, time, condition_rgb))

    assert out.shape == (B, 1, H, W), out.shape
    assert bool(jnp.all(jnp.isfinite(out)))
    print("KERNEL_OK")
</pallas_src>

<mosaic_0001>
module attributes {stable_mosaic.version = 11 : i64} {
  func.func @_conv_kernel(%arg0: i32, %arg1: memref<1x256x36xbf16, #tpu.memory_space<vmem>>, %arg2: memref<36x16xbf16, #tpu.memory_space<vmem>>, %arg3: memref<1x16xf32, #tpu.memory_space<vmem>>, %arg4: memref<1x1x16xf32, #tpu.memory_space<vmem>>, %arg5: memref<1x256x16xbf16, #tpu.memory_space<vmem>>) attributes {dimension_semantics = [#tpu.dimension_semantics<parallel>], iteration_bounds = array<i64: 2>, scalar_prefetch = 0 : i64, scratch_operands = 0 : i64, tpu.core_type = #tpu.core_type<tc>, window_params = [{transform_indices = @transform_0, window_bounds = array<i64: 1, 256, 36>}, {pipeline_mode = #tpu.pipeline_mode<synchronous>, transform_indices = @transform_1, window_bounds = array<i64: 36, 16>}, {pipeline_mode = #tpu.pipeline_mode<synchronous>, transform_indices = @transform_2, window_bounds = array<i64: 1, 16>}, {transform_indices = @transform_3, window_bounds = array<i64: 1, 1, 16>}, {transform_indices = @transform_4, window_bounds = array<i64: 1, 256, 16>}]} {
    %c0 = arith.constant 0 : index
    %c0_0 = arith.constant 0 : index
    %c0_1 = arith.constant 0 : index
    %0 = vector.load %arg1[%c0, %c0_0, %c0_1] : memref<1x256x36xbf16, #tpu.memory_space<vmem>>, vector<1x256x36xbf16>
    %1 = vector.shape_cast %0 : vector<1x256x36xbf16> to vector<256x36xbf16>
    %c0_2 = arith.constant 0 : index
    %c0_3 = arith.constant 0 : index
    %2 = vector.load %arg2[%c0_2, %c0_3] : memref<36x16xbf16, #tpu.memory_space<vmem>>, vector<36x16xbf16>
    %cst = arith.constant dense<0.000000e+00> : vector<256x16xf32>
    %3 = tpu.matmul %1, %2, %cst {dimension_numbers = #tpu.dot_dimension_numbers<[1], [0], [0], [1], [0, 0, 1, 1], [], []>} : vector<256x36xbf16>, vector<36x16xbf16>, vector<256x16xf32> -> vector<256x16xf32>
    %c0_4 = arith.constant 0 : index
    %c0_5 = arith.constant 0 : index
    %4 = vector.load %arg3[%c0_4, %c0_5] : memref<1x16xf32, #tpu.memory_space<vmem>>, vector<1x16xf32>
    %5 = vector.broadcast %4 : vector<1x16xf32> to vector<256x16xf32>
    %6 = arith.addf %3, %5 : vector<256x16xf32>
    %c0_6 = arith.constant 0 : index
    %c0_7 = arith.constant 0 : index
    %c0_8 = arith.constant 0 : index
    %7 = vector.load %arg4[%c0_6, %c0_7, %c0_8] : memref<1x1x16xf32, #tpu.memory_space<vmem>>, vector<1x1x16xf32>
    %8 = vector.shape_cast %7 : vector<1x1x16xf32> to vector<1x16xf32>
    %9 = vector.broadcast %8 : vector<1x16xf32> to vector<256x16xf32>
    %10 = arith.addf %6, %9 : vector<256x16xf32>
    %11 = arith.truncf %10 : vector<256x16xf32> to vector<256x16xbf16>
    %c0_9 = arith.constant 0 : index
    %c0_10 = arith.constant 0 : index
    %c0_11 = arith.constant 0 : index
    %12 = vector.load %arg5[%c0_9, %c0_10, %c0_11] : memref<1x256x16xbf16, #tpu.memory_space<vmem>>, vector<1x256x16xbf16>
    %13 = vector.shape_cast %12 : vector<1x256x16xbf16> to vector<256x16xbf16>
    %14 = vector.shape_cast %11 : vector<256x16xbf16> to vector<1x256x16xbf16>
    tpu.vector_store %arg5[%c0_9, %c0_10, %c0_11], %14 {strides = array<i32>} : memref<1x256x16xbf16, #tpu.memory_space<vmem>>, vector<1x256x16xbf16>,
    return
  }
  func.func @transform_0(%arg0: i32) -> (i32, i32, i32) {
    %c0_i32 = arith.constant 0 : i32
    %c0_i32_0 = arith.constant 0 : i32
    %c0_i32_1 = arith.constant 0 : i32
    return %arg0, %c0_i32, %c0_i32_0 : i32, i32, i32
  }
  func.func @transform_1(%arg0: i32) -> (i32, i32) {
    %c0_i32 = arith.constant 0 : i32
    %c0_i32_0 = arith.constant 0 : i32
    %c0_i32_1 = arith.constant 0 : i32
    return %c0_i32, %c0_i32_0 : i32, i32
  }
  func.func @transform_2(%arg0: i32) -> (i32, i32) {
    %c0_i32 = arith.constant 0 : i32
    %c0_i32_0 = arith.constant 0 : i32
    %c0_i32_1 = arith.constant 0 : i32
    return %c0_i32, %c0_i32_0 : i32, i32
  }
  func.func @transform_3(%arg0: i32) -> (i32, i32, i32) {
    %c0_i32 = arith.constant 0 : i32
    %c0_i32_0 = arith.constant 0 : i32
    %c0_i32_1 = arith.constant 0 : i32
    return %arg0, %c0_i32, %c0_i32_0 : i32, i32, i32
  }
  func.func @transform_4(%arg0: i32) -> (i32, i32, i32) {
    %c0_i32 = arith.constant 0 : i32
    %c0_i32_0 = arith.constant 0 : i32
    %c0_i32_1 = arith.constant 0 : i32
    return %arg0, %c0_i32, %c0_i32_0 : i32, i32, i32
  }
}

module attributes {stable_mosaic.version = 11 : i64} {
  func.func @_conv_kernel(%arg0: i32, %arg1: memref<1x64x256xbf16, #tpu.memory_space<vmem>>, %arg2: memref<256x16xbf16, #tpu.memory_space<vmem>>, %arg3: memref<1x16xf32, #tpu.memory_space<vmem>>, %arg4: memref<1x1x16xf32, #tpu.memory_space<vmem>>, %arg5: memref<1x64x16xbf16, #tpu.memory_space<vmem>>) attributes {dimension_semantics = [#tpu.dimension_semantics<parallel>], iteration_bounds = array<i64: 2>, scalar_prefetch = 0 : i64, scratch_operands = 0 : i64, tpu.core_type = #tpu.core_type<tc>, window_params = [{transform_indices = @transform_0, window_bounds = array<i64: 1, 64, 256>}, {pipeline_mode = #tpu.pipeline_mode<synchronous>, transform_indices = @transform_1, window_bounds = array<i64: 256, 16>}, {pipeline_mode = #tpu.pipeline_mode<synchronous>, transform_indices = @transform_2, window_bounds = array<i64: 1, 16>}, {transform_indices = @transform_3, window_bounds = array<i64: 1, 1, 16>}, {transform_indices = @transform_4, window_bounds = array<i64: 1, 64, 16>}]} {
    %c0 = arith.constant 0 : index
    %c0_0 = arith.constant 0 : index
    %c0_1 = arith.constant 0 : index
    %0 = vector.load %arg1[%c0, %c0_0, %c0_1] : memref<1x64x256xbf16, #tpu.memory_space<vmem>>, vector<1x64x256xbf16>
    %1 = vector.shape_cast %0 : vector<1x64x256xbf16> to vector<64x256xbf16>
    %c0_2 = arith.constant 0 : index
    %c0_3 = arith.constant 0 : index
    %2 = vector.load %arg2[%c0_2, %c0_3] : memref<256x16xbf16, #tpu.memory_space<vmem>>, vector<256x16xbf16>
    %cst = arith.constant dense<0.000000e+00> : vector<64x16xf32>
    %3 = tpu.matmul %1, %2, %cst {dimension_numbers = #tpu.dot_dimension_numbers<[1], [0], [0], [1], [0, 0, 1, 1], [], []>} : vector<64x256xbf16>, vector<256x16xbf16>, vector<64x16xf32> -> vector<64x16xf32>
    %c0_4 = arith.constant 0 : index
    %c0_5 = arith.constant 0 : index
    %4 = vector.load %arg3[%c0_4, %c0_5] : memref<1x16xf32, #tpu.memory_space<vmem>>, vector<1x16xf32>
    %5 = vector.broadcast %4 : vector<1x16xf32> to vector<64x16xf32>
    %6 = arith.addf %3, %5 : vector<64x16xf32>
    %cst_6 = arith.constant 0.000000e+00 : f32
    %7 = vector.broadcast %cst_6 : f32 to vector<64x16xf32>
    %8 = arith.cmpf oge, %6, %7 : vector<64x16xf32>
    %cst_7 = arith.constant 2.000000e-01 : f32
    %9 = vector.broadcast %cst_7 : f32 to vector<64x16xf32>
    %10 = arith.mulf %9, %6 : vector<64x16xf32>
    %11 = arith.select %8, %6, %10 : vector<64x16xi1>, vector<64x16xf32>
    %c0_8 = arith.constant 0 : index
    %c0_9 = arith.constant 0 : index
    %c0_10 = arith.constant 0 : index
    %12 = vector.load %arg4[%c0_8, %c0_9, %c0_10] : memref<1x1x16xf32, #tpu.memory_space<vmem>>, vector<1x1x16xf32>
    %13 = vector.shape_cast %12 : vector<1x1x16xf32> to vector<1x16xf32>
    %14 = vector.broadcast %13 : vector<1x16xf32> to vector<64x16xf32>
    %15 = arith.addf %11, %14 : vector<64x16xf32>
    %16 = arith.truncf %15 : vector<64x16xf32> to vector<64x16xbf16>
    %c0_11 = arith.constant 0 : index
    %c0_12 = arith.constant 0 : index
    %c0_13 = arith.constant 0 : index
    %17 = vector.load %arg5[%c0_11, %c0_12, %c0_13] : memref<1x64x16xbf16, #tpu.memory_space<vmem>>, vector<1x64x16xbf16>
    %18 = vector.shape_cast %17 : vector<1x64x16xbf16> to vector<64x16xbf16>
    %19 = vector.shape_cast %16 : vector<64x16xbf16> to vector<1x64x16xbf16>
    tpu.vector_store %arg5[%c0_11, %c0_12, %c0_13], %19 {strides = array<i32>} : memref<1x64x16xbf16, #tpu.memory_space<vmem>>, vector<1x64x16xbf16>,
    return
  }
  func.func @transform_0(%arg0: i32) -> (i32, i32, i32) {
    %c0_i32 = arith.constant 0 : i32
    %c0_i32_0 = arith.constant 0 : i32
    %c0_i32_1 = arith.constant 0 : i32
    return %arg0, %c0_i32, %c0_i32_0 : i32, i32, i32
  }
  func.func @transform_1(%arg0: i32) -> (i32, i32) {
    %c0_i32 = arith.constant 0 : i32
    %c0_i32_0 = arith.constant 0 : i32
    %c0_i32_1 = arith.constant 0 : i32
    return %c0_i32, %c0_i32_0 : i32, i32
  }
  func.func @transform_2(%arg0: i32) -> (i32, i32) {
    %c0_i32 = arith.constant 0 : i32
    %c0_i32_0 = arith.constant 0 : i32
    %c0_i32_1 = arith.constant 0 : i32
    return %c0_i32, %c0_i32_0 : i32, i32
  }
  func.func @transform_3(%arg0: i32) -> (i32, i32, i32) {
    %c0_i32 = arith.constant 0 : i32
    %c0_i32_0 = arith.constant 0 : i32
    %c0_i32_1 = arith.constant 0 : i32
    return %arg0, %c0_i32, %c0_i32_0 : i32, i32, i32
  }
  func.func @transform_4(%arg0: i32) -> (i32, i32, i32) {
    %c0_i32 = arith.constant 0 : i32
    %c0_i32_0 = arith.constant 0 : i32
    %c0_i32_1 = arith.constant 0 : i32
    return %arg0, %c0_i32, %c0_i32_0 : i32, i32, i32
  }
}

module attributes {stable_mosaic.version = 11 : i64} {
  func.func @_conv_kernel(%arg0: i32, %arg1: memref<1x16x256xbf16, #tpu.memory_space<vmem>>, %arg2: memref<256x32xbf16, #tpu.memory_space<vmem>>, %arg3: memref<1x32xf32, #tpu.memory_space<vmem>>, %arg4: memref<1x1x32xf32, #tpu.memory_space<vmem>>, %arg5: memref<1x16x32xbf16, #tpu.memory_space<vmem>>) attributes {dimension_semantics = [#tpu.dimension_semantics<parallel>], iteration_bounds = array<i64: 2>, scalar_prefetch = 0 : i64, scratch_operands = 0 : i64, tpu.core_type = #tpu.core_type<tc>, window_params = [{transform_indices = @transform_0, window_bounds = array<i64: 1, 16, 256>}, {pipeline_mode = #tpu.pipeline_mode<synchronous>, transform_indices = @transform_1, window_bounds = array<i64: 256, 32>}, {pipeline_mode = #tpu.pipeline_mode<synchronous>, transform_indices = @transform_2, window_bounds = array<i64: 1, 32>}, {transform_indices = @transform_3, window_bounds = array<i64: 1, 1, 32>}, {transform_indices = @transform_4, window_bounds = array<i64: 1, 16, 32>}]} {
    %c0 = arith.constant 0 : index
    %c0_0 = arith.constant 0 : index
    %c0_1 = arith.constant 0 : index
    %0 = vector.load %arg1[%c0, %c0_0, %c0_1] : memref<1x16x256xbf16, #tpu.memory_space<vmem>>, vector<1x16x256xbf16>
    %1 = vector.shape_cast %0 : vector<1x16x256xbf16> to vector<16x256xbf16>
    %c0_2 = arith.constant 0 : index
    %c0_3 = arith.constant 0 : index
    %2 = vector.load %arg2[%c0_2, %c0_3] : memref<256x32xbf16, #tpu.memory_space<vmem>>, vector<256x32xbf16>
    %cst = arith.constant dense<0.000000e+00> : vector<16x32xf32>
    %3 = tpu.matmul %1, %2, %cst {dimension_numbers = #tpu.dot_dimension_numbers<[1], [0], [0], [1], [0, 0, 1, 1], [], []>} : vector<16x256xbf16>, vector<256x32xbf16>, vector<16x32xf32> -> vector<16x32xf32>
    %c0_4 = arith.constant 0 : index
    %c0_5 = arith.constant 0 : index
    %4 = vector.load %arg3[%c0_4, %c0_5] : memref<1x32xf32, #tpu.memory_space<vmem>>, vector<1x32xf32>
    %5 = vector.broadcast %4 : vector<1x32xf32> to vector<16x32xf32>
    %6 = arith.addf %3, %5 : vector<16x32xf32>
    %cst_6 = arith.constant dense<0.000000e+00> : vector<32xf32>
    %7 = vector.multi_reduction <add>, %6, %cst_6 [0] : vector<16x32xf32> to vector<32xf32>
    %8 = vector.shape_cast %7 : vector<32xf32> to vector<1x32xf32>
    %cst_7 = arith.constant 1.600000e+01 : f32
    %9 = vector.broadcast %cst_7 : f32 to vector<1x32xf32>
    %10 = arith.divf %8, %9 : vector<1x32xf32>
    %11 = vector.broadcast %10 : vector<1x32xf32> to vector<16x32xf32>
    %12 = arith.subf %6, %11 : vector<16x32xf32>
    %13 = arith.mulf %12, %12 : vector<16x32xf32>
    %cst_8 = arith.constant dense<0.000000e+00> : vector<32xf32>
    %14 = vector.multi_reduction <add>, %13, %cst_8 [0] : vector<16x32xf32> to vector<32xf32>
    %15 = vector.shape_cast %14 : vector<32xf32> to vector<1x32xf32>
    %cst_9 = arith.constant 1.600000e+01 : f32
    %16 = vector.broadcast %cst_9 : f32 to vector<1x32xf32>
    %17 = arith.divf %15, %16 : vector<1x32xf32>
    %18 = vector.broadcast %10 : vector<1x32xf32> to vector<16x32xf32>
    %19 = arith.subf %6, %18 : vector<16x32xf32>
    %cst_10 = arith.constant 9.99999974E-6 : f32
    %20 = vector.broadcast %cst_10 : f32 to vector<1x32xf32>
    %21 = arith.addf %17, %20 : vector<1x32xf32>
    %22 = math.rsqrt %21 : vector<1x32xf32>
    %23 = vector.broadcast %22 : vector<1x32xf32> to vector<16x32xf32>
    %24 = arith.mulf %19, %23 : vector<16x32xf32>
    %cst_11 = arith.constant 0.000000e+00 : f32
    %25 = vector.broadcast %cst_11 : f32 to vector<16x32xf32>
    %26 = arith.cmpf oge, %24, %25 : vector<16x32xf32>
    %cst_12 = arith.constant 2.000000e-01 : f32
    %27 = vector.broadcast %cst_12 : f32 to vector<16x32xf32>
    %28 = arith.mulf %27, %24 : vector<16x32xf32>
    %29 = arith.select %26, %24, %28 : vector<16x32xi1>, vector<16x32xf32>
    %c0_13 = arith.constant 0 : index
    %c0_14 = arith.constant 0 : index
    %c0_15 = arith.constant 0 : index
    %30 = vector.load %arg4[%c0_13, %c0_14, %c0_15] : memref<1x1x32xf32, #tpu.memory_space<vmem>>, vector<1x1x32xf32>
    %31 = vector.shape_cast %30 : vector<1x1x32xf32> to vector<1x32xf32>
    %32 = vector.broadcast %31 : vector<1x32xf32> to vector<16x32xf32>
    %33 = arith.addf %29, %32 : vector<16x32xf32>
    %34 = arith.truncf %33 : vector<16x32xf32> to vector<16x32xbf16>
    %c0_16 = arith.constant 0 : index
    %c0_17 = arith.constant 0 : index
    %c0_18 = arith.constant 0 : index
    %35 = vector.load %arg5[%c0_16, %c0_17, %c0_18] : memref<1x16x32xbf16, #tpu.memory_space<vmem>>, vector<1x16x32xbf16>
    %36 = vector.shape_cast %35 : vector<1x16x32xbf16> to vector<16x32xbf16>
    %37 = vector.shape_cast %34 : vector<16x32xbf16> to vector<1x16x32xbf16>
    tpu.vector_store %arg5[%c0_16, %c0_17, %c0_18], %37 {strides = array<i32>} : memref<1x16x32xbf16, #tpu.memory_space<vmem>>, vector<1x16x32xbf16>,
    return
  }
  func.func @transform_0(%arg0: i32) -> (i32, i32, i32) {
    %c0_i32 = arith.constant 0 : i32
    %c0_i32_0 = arith.constant 0 : i32
    %c0_i32_1 = arith.constant 0 : i32
    return %arg0, %c0_i32, %c0_i32_0 : i32, i32, i32
  }
  func.func @transform_1(%arg0: i32) -> (i32, i32) {
    %c0_i32 = arith.constant 0 : i32
    %c0_i32_0 = arith.constant 0 : i32
    %c0_i32_1 = arith.constant 0 : i32
    return %c0_i32, %c0_i32_0 : i32, i32
  }
  func.func @transform_2(%arg0: i32) -> (i32, i32) {
    %c0_i32 = arith.constant 0 : i32
    %c0_i32_0 = arith.constant 0 : i32
    %c0_i32_1 = arith.constant 0 : i32
    return %c0_i32, %c0_i32_0 : i32, i32
  }
  func.func @transform_3(%arg0: i32) -> (i32, i32, i32) {
    %c0_i32 = arith.constant 0 : i32
    %c0_i32_0 = arith.constant 0 : i32
    %c0_i32_1 = arith.constant 0 : i32
    return %arg0, %c0_i32, %c0_i32_0 : i32, i32, i32
  }
  func.func @transform_4(%arg0: i32) -> (i32, i32, i32) {
    %c0_i32 = arith.constant 0 : i32
    %c0_i32_0 = arith.constant 0 : i32
    %c0_i32_1 = arith.constant 0 : i32
    return %arg0, %c0_i32, %c0_i32_0 : i32, i32, i32
  }
}

module attributes {stable_mosaic.version = 11 : i64} {
  func.func @_mid_kernel(%arg0: i32, %arg1: memref<1x4x512xbf16, #tpu.memory_space<vmem>>, %arg2: memref<512x64xbf16, #tpu.memory_space<vmem>>, %arg3: memref<256x64xbf16, #tpu.memory_space<vmem>>, %arg4: memref<64x256xbf16, #tpu.memory_space<vmem>>, %arg5: memref<1x1x64xf32, #tpu.memory_space<vmem>>, %arg6: memref<1x1x64xf32, #tpu.memory_space<vmem>>, %arg7: memref<1x1x256xf32, #tpu.memory_space<vmem>>, %arg8: memref<1x4x64xbf16, #tpu.memory_space<vmem>>, %arg9: memref<1x1x256xbf16, #tpu.memory_space<vmem>>) attributes {dimension_semantics = [#tpu.dimension_semantics<parallel>], iteration_bounds = array<i64: 2>, scalar_prefetch = 0 : i64, scratch_operands = 0 : i64, tpu.core_type = #tpu.core_type<tc>, window_params = [{transform_indices = @transform_0, window_bounds = array<i64: 1, 4, 512>}, {pipeline_mode = #tpu.pipeline_mode<synchronous>, transform_indices = @transform_1, window_bounds = array<i64: 512, 64>}, {pipeline_mode = #tpu.pipeline_mode<synchronous>, transform_indices = @transform_2, window_bounds = array<i64: 256, 64>}, {pipeline_mode = #tpu.pipeline_mode<synchronous>, transform_indices = @transform_3, window_bounds = array<i64: 64, 256>}, {transform_indices = @transform_4, window_bounds = array<i64: 1, 1, 64>}, {transform_indices = @transform_5, window_bounds = array<i64: 1, 1, 64>}, {transform_indices = @transform_6, window_bounds = array<i64: 1, 1, 256>}, {transform_indices = @transform_7, window_bounds = array<i64: 1, 4, 64>}, {transform_indices = @transform_8, window_bounds = array<i64: 1, 1, 256>}]} {
    %c0 = arith.constant 0 : index
    %c0_0 = arith.constant 0 : index
    %c0_1 = arith.constant 0 : index
    %0 = vector.load %arg1[%c0, %c0_0, %c0_1] : memref<1x4x512xbf16, #tpu.memory_space<vmem>>, vector<1x4x512xbf16>
    %1 = vector.shape_cast %0 : vector<1x4x512xbf16> to vector<4x512xbf16>
    %c0_2 = arith.constant 0 : index
    %c0_3 = arith.constant 0 : index
    %2 = vector.load %arg2[%c0_2, %c0_3] : memref<512x64xbf16, #tpu.memory_space<vmem>>, vector<512x64xbf16>
    %cst = arith.constant dense<0.000000e+00> : vector<4x64xf32>
    %3 = tpu.matmul %1, %2, %cst {dimension_numbers = #tpu.dot_dimension_numbers<[1], [0], [0], [1], [0, 0, 1, 1], [], []>} : vector<4x512xbf16>, vector<512x64xbf16>, vector<4x64xf32> -> vector<4x64xf32>
    %cst_4 = arith.constant dense<0.000000e+00> : vector<64xf32>
    %4 = vector.multi_reduction <add>, %3, %cst_4 [0] : vector<4x64xf32> to vector<64xf32>
    %5 = vector.shape_cast %4 : vector<64xf32> to vector<1x64xf32>
    %cst_5 = arith.constant 4.000000e+00 : f32
    %6 = vector.broadcast %cst_5 : f32 to vector<1x64xf32>
    %7 = arith.divf %5, %6 : vector<1x64xf32>
    %8 = vector.broadcast %7 : vector<1x64xf32> to vector<4x64xf32>
    %9 = arith.subf %3, %8 : vector<4x64xf32>
    %10 = arith.mulf %9, %9 : vector<4x64xf32>
    %cst_6 = arith.constant dense<0.000000e+00> : vector<64xf32>
    %11 = vector.multi_reduction <add>, %10, %cst_6 [0] : vector<4x64xf32> to vector<64xf32>
    %12 = vector.shape_cast %11 : vector<64xf32> to vector<1x64xf32>
    %cst_7 = arith.constant 4.000000e+00 : f32
    %13 = vector.broadcast %cst_7 : f32 to vector<1x64xf32>
    %14 = arith.divf %12, %13 : vector<1x64xf32>
    %15 = vector.broadcast %7 : vector<1x64xf32> to vector<4x64xf32>
    %16 = arith.subf %3, %15 : vector<4x64xf32>
    %cst_8 = arith.constant 9.99999974E-6 : f32
    %17 = vector.broadcast %cst_8 : f32 to vector<1x64xf32>
    %18 = arith.addf %14, %17 : vector<1x64xf32>
    %19 = math.rsqrt %18 : vector<1x64xf32>
    %20 = vector.broadcast %19 : vector<1x64xf32> to vector<4x64xf32>
    %21 = arith.mulf %16, %20 : vector<4x64xf32>
    %cst_9 = arith.constant 0.000000e+00 : f32
    %22 = vector.broadcast %cst_9 : f32 to vector<4x64xf32>
    %23 = arith.cmpf oge, %21, %22 : vector<4x64xf32>
    %cst_10 = arith.constant 2.000000e-01 : f32
    %24 = vector.broadcast %cst_10 : f32 to vector<4x64xf32>
    %25 = arith.mulf %24, %21 : vector<4x64xf32>
    %26 = arith.select %23, %21, %25 : vector<4x64xi1>, vector<4x64xf32>
    %27 = arith.truncf %26 : vector<4x64xf32> to vector<4x64xbf16>
    %c0_11 = arith.constant 0 : index
    %c0_12 = arith.constant 0 : index
    %c0_13 = arith.constant 0 : index
    %28 = vector.load %arg8[%c0_11, %c0_12, %c0_13] : memref<1x4x64xbf16, #tpu.memory_space<vmem>>, vector<1x4x64xbf16>
    %29 = vector.shape_cast %28 : vector<1x4x64xbf16> to vector<4x64xbf16>
    %30 = vector.shape_cast %27 : vector<4x64xbf16> to vector<1x4x64xbf16>
    tpu.vector_store %arg8[%c0_11, %c0_12, %c0_13], %30 {strides = array<i32>} : memref<1x4x64xbf16, #tpu.memory_space<vmem>>, vector<1x4x64xbf16>,
    %c0_14 = arith.constant 0 : index
    %c0_15 = arith.constant 0 : index
    %c0_16 = arith.constant 0 : index
    %31 = vector.load %arg5[%c0_14, %c0_15, %c0_16] : memref<1x1x64xf32, #tpu.memory_space<vmem>>, vector<1x1x64xf32>
    %32 = vector.shape_cast %31 : vector<1x1x64xf32> to vector<1x64xf32>
    %33 = vector.broadcast %32 : vector<1x64xf32> to vector<4x64xf32>
    %34 = arith.addf %26, %33 : vector<4x64xf32>
    %35 = arith.truncf %34 : vector<4x64xf32> to vector<4x64xbf16>
    %36 = vector.extract_strided_slice %35 {offsets = [0, 0], sizes = [1, 64], strides = [1, 1]} : vector<4x64xbf16> to vector<1x64xbf16>
    %37 = vector.extract_strided_slice %35 {offsets = [1, 0], sizes = [1, 64], strides = [1, 1]} : vector<4x64xbf16> to vector<1x64xbf16>
    %38 = vector.extract_strided_slice %35 {offsets = [2, 0], sizes = [1, 64], strides = [1, 1]} : vector<4x64xbf16> to vector<1x64xbf16>
    %39 = vector.extract_strided_slice %35 {offsets = [3, 0], sizes = [1, 64], strides = [1, 1]} : vector<4x64xbf16> to vector<1x64xbf16>
    %40 = tpu.concatenate %36, %37, %38, %39 in 1 : vector<1x64xbf16>, vector<1x64xbf16>, vector<1x64xbf16>, vector<1x64xbf16> -> vector<1x256xbf16>
    %c0_17 = arith.constant 0 : index
    %c0_18 = arith.constant 0 : index
    %41 = vector.load %arg3[%c0_17, %c0_18] : memref<256x64xbf16, #tpu.memory_space<vmem>>, vector<256x64xbf16>
    %cst_19 = arith.constant dense<0.000000e+00> : vector<1x64xf32>
    %42 = tpu.matmul %40, %41, %cst_19 {dimension_numbers = #tpu.dot_dimension_numbers<[1], [0], [0], [1], [0, 0, 1, 1], [], []>} : vector<1x256xbf16>, vector<256x64xbf16>, vector<1x64xf32> -> vector<1x64xf32>
    %cst_20 = arith.constant 0.000000e+00 : f32
    %43 = vector.broadcast %cst_20 : f32 to vector<1x64xf32>
    %44 = arith.cmpf oge, %42, %43 : vector<1x64xf32>
    %cst_21 = arith.constant 2.000000e-01 : f32
    %45 = vector.broadcast %cst_21 : f32 to vector<1x64xf32>
    %46 = arith.mulf %45, %42 : vector<1x64xf32>
    %47 = arith.select %44, %42, %46 : vector<1x64xi1>, vector<1x64xf32>
    %c0_22 = arith.constant 0 : index
    %c0_23 = arith.constant 0 : index
    %c0_24 = arith.constant 0 : index
    %48 = vector.load %arg6[%c0_22, %c0_23, %c0_24] : memref<1x1x64xf32, #tpu.memory_space<vmem>>, vector<1x1x64xf32>
    %49 = vector.shape_cast %48 : vector<1x1x64xf32> to vector<1x64xf32>
    %50 = arith.addf %47, %49 : vector<1x64xf32>
    %51 = arith.truncf %50 : vector<1x64xf32> to vector<1x64xbf16>
    %c0_25 = arith.constant 0 : index
    %c0_26 = arith.constant 0 : index
    %52 = vector.load %arg4[%c0_25, %c0_26] : memref<64x256xbf16, #tpu.memory_space<vmem>>, vector<64x256xbf16>
    %cst_27 = arith.constant dense<0.000000e+00> : vector<1x256xf32>
    %53 = tpu.matmul %51, %52, %cst_27 {dimension_numbers = #tpu.dot_dimension_numbers<[1], [0], [0], [1], [0, 0, 1, 1], [], []>} : vector<1x64xbf16>, vector<64x256xbf16>, vector<1x256xf32> -> vector<1x256xf32>
    %54 = vector.extract_strided_slice %53 {offsets = [0, 0], sizes = [1, 64], strides = [1, 1]} : vector<1x256xf32> to vector<1x64xf32>
    %55 = vector.extract_strided_slice %53 {offsets = [0, 64], sizes = [1, 64], strides = [1, 1]} : vector<1x256xf32> to vector<1x64xf32>
    %56 = arith.addf %54, %55 : vector<1x64xf32>
    %57 = vector.extract_strided_slice %53 {offsets = [0, 128], sizes = [1, 64], strides = [1, 1]} : vector<1x256xf32> to vector<1x64xf32>
    %58 = arith.addf %56, %57 : vector<1x64xf32>
    %59 = vector.extract_strided_slice %53 {offsets = [0, 192], sizes = [1, 64], strides = [1, 1]} : vector<1x256xf32> to vector<1x64xf32>
    %60 = arith.addf %58, %59 : vector<1x64xf32>
    %cst_28 = arith.constant 4.000000e+00 : f32
    %61 = vector.broadcast %cst_28 : f32 to vector<1x64xf32>
    %62 = arith.divf %60, %61 : vector<1x64xf32>
    %63 = tpu.concatenate %62, %62, %62, %62 in 1 : vector<1x64xf32>, vector<1x64xf32>, vector<1x64xf32>, vector<1x64xf32> -> vector<1x256xf32>
    %64 = arith.subf %53, %63 : vector<1x256xf32>
    %65 = arith.mulf %64, %64 : vector<1x256xf32>
    %66 = vector.extract_strided_slice %65 {offsets = [0, 0], sizes = [1, 64], strides = [1, 1]} : vector<1x256xf32> to vector<1x64xf32>
    %67 = vector.extract_strided_slice %65 {offsets = [0, 64], sizes = [1, 64], strides = [1, 1]} : vector<1x256xf32> to vector<1x64xf32>
    %68 = arith.addf %66, %67 : vector<1x64xf32>
    %69 = vector.extract_strided_slice %65 {offsets = [0, 128], sizes = [1, 64], strides = [1, 1]} : vector<1x256xf32> to vector<1x64xf32>
    %70 = arith.addf %68, %69 : vector<1x64xf32>
    %71 = vector.extract_strided_slice %65 {offsets = [0, 192], sizes = [1, 64], strides = [1, 1]} : vector<1x256xf32> to vector<1x64xf32>
    %72 = arith.addf %70, %71 : vector<1x64xf32>
    %cst_29 = arith.constant 4.000000e+00 : f32
    %73 = vector.broadcast %cst_29 : f32 to vector<1x64xf32>
    %74 = arith.divf %72, %73 : vector<1x64xf32>
    %cst_30 = arith.constant 9.99999974E-6 : f32
    %75 = vector.broadcast %cst_30 : f32 to vector<1x64xf32>
    %76 = arith.addf %74, %75 : vector<1x64xf32>
    %77 = math.rsqrt %76 : vector<1x64xf32>
    %78 = tpu.concatenate %77, %77, %77, %77 in 1 : vector<1x64xf32>, vector<1x64xf32>, vector<1x64xf32>, vector<1x64xf32> -> vector<1x256xf32>
    %79 = arith.mulf %64, %78 : vector<1x256xf32>
    %cst_31 = arith.constant 0.000000e+00 : f32
    %80 = vector.broadcast %cst_31 : f32 to vector<1x256xf32>
    %81 = arith.maximumf %79, %80 : vector<1x256xf32>
    %c0_32 = arith.constant 0 : index
    %c0_33 = arith.constant 0 : index
    %c0_34 = arith.constant 0 : index
    %82 = vector.load %arg7[%c0_32, %c0_33, %c0_34] : memref<1x1x256xf32, #tpu.memory_space<vmem>>, vector<1x1x256xf32>
    %83 = vector.shape_cast %82 : vector<1x1x256xf32> to vector<1x256xf32>
    %84 = arith.addf %81, %83 : vector<1x256xf32>
    %85 = arith.truncf %84 : vector<1x256xf32> to vector<1x256xbf16>
    %c0_35 = arith.constant 0 : index
    %c0_36 = arith.constant 0 : index
    %c0_37 = arith.constant 0 : index
    %86 = vector.load %arg9[%c0_35, %c0_36, %c0_37] : memref<1x1x256xbf16, #tpu.memory_space<vmem>>, vector<1x1x256xbf16>
    %87 = vector.shape_cast %86 : vector<1x1x256xbf16> to vector<1x256xbf16>
    %88 = vector.shape_cast %85 : vector<1x256xbf16> to vector<1x1x256xbf16>
    tpu.vector_store %arg9[%c0_35, %c0_36, %c0_37], %88 {strides = array<i32>} : memref<1x1x256xbf16, #tpu.memory_space<vmem>>, vector<1x1x256xbf16>,
    return
  }
  func.func @transform_0(%arg0: i32) -> (i32, i32, i32) {
    %c0_i32 = arith.constant 0 : i32
    %c0_i32_0 = arith.constant 0 : i32
    %c0_i32_1 = arith.constant 0 : i32
    return %arg0, %c0_i32, %c0_i32_0 : i32, i32, i32
  }
  func.func @transform_1(%arg0: i32) -> (i32, i32) {
    %c0_i32 = arith.constant 0 : i32
    %c0_i32_0 = arith.constant 0 : i32
    %c0_i32_1 = arith.constant 0 : i32
    return %c0_i32, %c0_i32_0 : i32, i32
  }
  func.func @transform_2(%arg0: i32) -> (i32, i32) {
    %c0_i32 = arith.constant 0 : i32
    %c0_i32_0 = arith.constant 0 : i32
    %c0_i32_1 = arith.constant 0 : i32
    return %c0_i32, %c0_i32_0 : i32, i32
  }
  func.func @transform_3(%arg0: i32) -> (i32, i32) {
    %c0_i32 = arith.constant 0 : i32
    %c0_i32_0 = arith.constant 0 : i32
    %c0_i32_1 = arith.constant 0 : i32
    return %c0_i32, %c0_i32_0 : i32, i32
  }
  func.func @transform_4(%arg0: i32) -> (i32, i32, i32) {
    %c0_i32 = arith.constant 0 : i32
    %c0_i32_0 = arith.constant 0 : i32
    %c0_i32_1 = arith.constant 0 : i32
    return %arg0, %c0_i32, %c0_i32_0 : i32, i32, i32
  }
  func.func @transform_5(%arg0: i32) -> (i32, i32, i32) {
    %c0_i32 = arith.constant 0 : i32
    %c0_i32_0 = arith.constant 0 : i32
    %c0_i32_1 = arith.constant 0 : i32
    return %arg0, %c0_i32, %c0_i32_0 : i32, i32, i32
  }
  func.func @transform_6(%arg0: i32) -> (i32, i32, i32) {
    %c0_i32 = arith.constant 0 : i32
    %c0_i32_0 = arith.constant 0 : i32
    %c0_i32_1 = arith.constant 0 : i32
    return %arg0, %c0_i32, %c0_i32_0 : i32, i32, i32
  }
  func.func @transform_7(%arg0: i32) -> (i32, i32, i32) {
    %c0_i32 = arith.constant 0 : i32
    %c0_i32_0 = arith.constant 0 : i32
    %c0_i32_1 = arith.constant 0 : i32
    return %arg0, %c0_i32, %c0_i32_0 : i32, i32, i32
  }
  func.func @transform_8(%arg0: i32) -> (i32, i32, i32) {
    %c0_i32 = arith.constant 0 : i32
    %c0_i32_0 = arith.constant 0 : i32
    %c0_i32_1 = arith.constant 0 : i32
    return %arg0, %c0_i32, %c0_i32_0 : i32, i32, i32
  }
}

module attributes {stable_mosaic.version = 11 : i64} {
  func.func @_convt_kernel(%arg0: i32, %arg1: memref<1x4x1152xbf16, #tpu.memory_space<vmem>>, %arg2: memref<1152x128xbf16, #tpu.memory_space<vmem>>, %arg3: memref<1x128xf32, #tpu.memory_space<vmem>>, %arg4: memref<1x1x128xf32, #tpu.memory_space<vmem>>, %arg5: memref<1x4x128xbf16, #tpu.memory_space<vmem>>) attributes {dimension_semantics = [#tpu.dimension_semantics<parallel>], iteration_bounds = array<i64: 2>, scalar_prefetch = 0 : i64, scratch_operands = 0 : i64, tpu.core_type = #tpu.core_type<tc>, window_params = [{transform_indices = @transform_0, window_bounds = array<i64: 1, 4, 1152>}, {pipeline_mode = #tpu.pipeline_mode<synchronous>, transform_indices = @transform_1, window_bounds = array<i64: 1152, 128>}, {pipeline_mode = #tpu.pipeline_mode<synchronous>, transform_indices = @transform_2, window_bounds = array<i64: 1, 128>}, {transform_indices = @transform_3, window_bounds = array<i64: 1, 1, 128>}, {transform_indices = @transform_4, window_bounds = array<i64: 1, 4, 128>}]} {
    %c0 = arith.constant 0 : index
    %c0_0 = arith.constant 0 : index
    %c0_1 = arith.constant 0 : index
    %0 = vector.load %arg1[%c0, %c0_0, %c0_1] : memref<1x4x1152xbf16, #tpu.memory_space<vmem>>, vector<1x4x1152xbf16>
    %1 = vector.shape_cast %0 : vector<1x4x1152xbf16> to vector<4x1152xbf16>
    %c0_2 = arith.constant 0 : index
    %c0_3 = arith.constant 0 : index
    %2 = vector.load %arg2[%c0_2, %c0_3] : memref<1152x128xbf16, #tpu.memory_space<vmem>>, vector<1152x128xbf16>
    %cst = arith.constant dense<0.000000e+00> : vector<4x128xf32>
    %3 = tpu.matmul %1, %2, %cst {dimension_numbers = #tpu.dot_dimension_numbers<[1], [0], [0], [1], [0, 0, 1, 1], [], []>} : vector<4x1152xbf16>, vector<1152x128xbf16>, vector<4x128xf32> -> vector<4x128xf32>
    %c0_4 = arith.constant 0 : index
    %c0_5 = arith.constant 0 : index
    %4 = vector.load %arg3[%c0_4, %c0_5] : memref<1x128xf32, #tpu.memory_space<vmem>>, vector<1x128xf32>
    %5 = vector.broadcast %4 : vector<1x128xf32> to vector<4x128xf32>
    %6 = arith.addf %3, %5 : vector<4x128xf32>
    %cst_6 = arith.constant dense<0.000000e+00> : vector<128xf32>
    %7 = vector.multi_reduction <add>, %6, %cst_6 [0] : vector<4x128xf32> to vector<128xf32>
    %8 = vector.shape_cast %7 : vector<128xf32> to vector<1x128xf32>
    %9 = vector.extract_strided_slice %8 {offsets = [0, 0], sizes = [1, 32], strides = [1, 1]} : vector<1x128xf32> to vector<1x32xf32>
    %10 = vector.extract_strided_slice %8 {offsets = [0, 32], sizes = [1, 32], strides = [1, 1]} : vector<1x128xf32> to vector<1x32xf32>
    %11 = arith.addf %9, %10 : vector<1x32xf32>
    %12 = vector.extract_strided_slice %8 {offsets = [0, 64], sizes = [1, 32], strides = [1, 1]} : vector<1x128xf32> to vector<1x32xf32>
    %13 = arith.addf %11, %12 : vector<1x32xf32>
    %14 = vector.extract_strided_slice %8 {offsets = [0, 96], sizes = [1, 32], strides = [1, 1]} : vector<1x128xf32> to vector<1x32xf32>
    %15 = arith.addf %13, %14 : vector<1x32xf32>
    %cst_7 = arith.constant 1.600000e+01 : f32
    %16 = vector.broadcast %cst_7 : f32 to vector<1x32xf32>
    %17 = arith.divf %15, %16 : vector<1x32xf32>
    %18 = tpu.concatenate %17, %17, %17, %17 in 1 : vector<1x32xf32>, vector<1x32xf32>, vector<1x32xf32>, vector<1x32xf32> -> vector<1x128xf32>
    %19 = vector.broadcast %18 : vector<1x128xf32> to vector<4x128xf32>
    %20 = arith.subf %6, %19 : vector<4x128xf32>
    %21 = arith.mulf %20, %20 : vector<4x128xf32>
    %cst_8 = arith.constant dense<0.000000e+00> : vector<128xf32>
    %22 = vector.multi_reduction <add>, %21, %cst_8 [0] : vector<4x128xf32> to vector<128xf32>
    %23 = vector.shape_cast %22 : vector<128xf32> to vector<1x128xf32>
    %24 = vector.extract_strided_slice %23 {offsets = [0, 0], sizes = [1, 32], strides = [1, 1]} : vector<1x128xf32> to vector<1x32xf32>
    %25 = vector.extract_strided_slice %23 {offsets = [0, 32], sizes = [1, 32], strides = [1, 1]} : vector<1x128xf32> to vector<1x32xf32>
    %26 = arith.addf %24, %25 : vector<1x32xf32>
    %27 = vector.extract_strided_slice %23 {offsets = [0, 64], sizes = [1, 32], strides = [1, 1]} : vector<1x128xf32> to vector<1x32xf32>
    %28 = arith.addf %26, %27 : vector<1x32xf32>
    %29 = vector.extract_strided_slice %23 {offsets = [0, 96], sizes = [1, 32], strides = [1, 1]} : vector<1x128xf32> to vector<1x32xf32>
    %30 = arith.addf %28, %29 : vector<1x32xf32>
    %cst_9 = arith.constant 1.600000e+01 : f32
    %31 = vector.broadcast %cst_9 : f32 to vector<1x32xf32>
    %32 = arith.divf %30, %31 : vector<1x32xf32>
    %cst_10 = arith.constant 9.99999974E-6 : f32
    %33 = vector.broadcast %cst_10 : f32 to vector<1x32xf32>
    %34 = arith.addf %32, %33 : vector<1x32xf32>
    %35 = math.rsqrt %34 : vector<1x32xf32>
    %36 = tpu.concatenate %35, %35, %35, %35 in 1 : vector<1x32xf32>, vector<1x32xf32>, vector<1x32xf32>, vector<1x32xf32> -> vector<1x128xf32>
    %37 = vector.broadcast %36 : vector<1x128xf32> to vector<4x128xf32>
    %38 = arith.mulf %20, %37 : vector<4x128xf32>
    %cst_11 = arith.constant 0.000000e+00 : f32
    %39 = vector.broadcast %cst_11 : f32 to vector<4x128xf32>
    %40 = arith.maximumf %38, %39 : vector<4x128xf32>
    %c0_12 = arith.constant 0 : index
    %c0_13 = arith.constant 0 : index
    %c0_14 = arith.constant 0 : index
    %41 = vector.load %arg4[%c0_12, %c0_13, %c0_14] : memref<1x1x128xf32, #tpu.memory_space<vmem>>, vector<1x1x128xf32>
    %42 = vector.shape_cast %41 : vector<1x1x128xf32> to vector<1x128xf32>
    %43 = vector.broadcast %42 : vector<1x128xf32> to vector<4x128xf32>
    %44 = arith.addf %40, %43 : vector<4x128xf32>
    %45 = arith.truncf %44 : vector<4x128xf32> to vector<4x128xbf16>
    %c0_15 = arith.constant 0 : index
    %c0_16 = arith.constant 0 : index
    %c0_17 = arith.constant 0 : index
    %46 = vector.load %arg5[%c0_15, %c0_16, %c0_17] : memref<1x4x128xbf16, #tpu.memory_space<vmem>>, vector<1x4x128xbf16>
    %47 = vector.shape_cast %46 : vector<1x4x128xbf16> to vector<4x128xbf16>
    %48 = vector.shape_cast %45 : vector<4x128xbf16> to vector<1x4x128xbf16>
    tpu.vector_store %arg5[%c0_15, %c0_16, %c0_17], %48 {strides = array<i32>} : memref<1x4x128xbf16, #tpu.memory_space<vmem>>, vector<1x4x128xbf16>,
    return
  }
  func.func @transform_0(%arg0: i32) -> (i32, i32, i32) {
    %c0_i32 = arith.constant 0 : i32
    %c0_i32_0 = arith.constant 0 : i32
    %c0_i32_1 = arith.constant 0 : i32
    return %arg0, %c0_i32, %c0_i32_0 : i32, i32, i32
  }
  func.func @transform_1(%arg0: i32) -> (i32, i32) {
    %c0_i32 = arith.constant 0 : i32
    %c0_i32_0 = arith.constant 0 : i32
    %c0_i32_1 = arith.constant 0 : i32
    return %c0_i32, %c0_i32_0 : i32, i32
  }
  func.func @transform_2(%arg0: i32) -> (i32, i32) {
    %c0_i32 = arith.constant 0 : i32
    %c0_i32_0 = arith.constant 0 : i32
    %c0_i32_1 = arith.constant 0 : i32
    return %c0_i32, %c0_i32_0 : i32, i32
  }
  func.func @transform_3(%arg0: i32) -> (i32, i32, i32) {
    %c0_i32 = arith.constant 0 : i32
    %c0_i32_0 = arith.constant 0 : i32
    %c0_i32_1 = arith.constant 0 : i32
    return %arg0, %c0_i32, %c0_i32_0 : i32, i32, i32
  }
  func.func @transform_4(%arg0: i32) -> (i32, i32, i32) {
    %c0_i32 = arith.constant 0 : i32
    %c0_i32_0 = arith.constant 0 : i32
    %c0_i32_1 = arith.constant 0 : i32
    return %arg0, %c0_i32, %c0_i32_0 : i32, i32, i32
  }
}

module attributes {stable_mosaic.version = 11 : i64} {
  func.func @_convt_kernel(%arg0: i32, %arg1: memref<1x16x576xbf16, #tpu.memory_space<vmem>>, %arg2: memref<576x64xbf16, #tpu.memory_space<vmem>>, %arg3: memref<1x64xf32, #tpu.memory_space<vmem>>, %arg4: memref<1x1x64xf32, #tpu.memory_space<vmem>>, %arg5: memref<1x16x64xbf16, #tpu.memory_space<vmem>>) attributes {dimension_semantics = [#tpu.dimension_semantics<parallel>], iteration_bounds = array<i64: 2>, scalar_prefetch = 0 : i64, scratch_operands = 0 : i64, tpu.core_type = #tpu.core_type<tc>, window_params = [{transform_indices = @transform_0, window_bounds = array<i64: 1, 16, 576>}, {pipeline_mode = #tpu.pipeline_mode<synchronous>, transform_indices = @transform_1, window_bounds = array<i64: 576, 64>}, {pipeline_mode = #tpu.pipeline_mode<synchronous>, transform_indices = @transform_2, window_bounds = array<i64: 1, 64>}, {transform_indices = @transform_3, window_bounds = array<i64: 1, 1, 64>}, {transform_indices = @transform_4, window_bounds = array<i64: 1, 16, 64>}]} {
    %c0 = arith.constant 0 : index
    %c0_0 = arith.constant 0 : index
    %c0_1 = arith.constant 0 : index
    %0 = vector.load %arg1[%c0, %c0_0, %c0_1] : memref<1x16x576xbf16, #tpu.memory_space<vmem>>, vector<1x16x576xbf16>
    %1 = vector.shape_cast %0 : vector<1x16x576xbf16> to vector<16x576xbf16>
    %c0_2 = arith.constant 0 : index
    %c0_3 = arith.constant 0 : index
    %2 = vector.load %arg2[%c0_2, %c0_3] : memref<576x64xbf16, #tpu.memory_space<vmem>>, vector<576x64xbf16>
    %cst = arith.constant dense<0.000000e+00> : vector<16x64xf32>
    %3 = tpu.matmul %1, %2, %cst {dimension_numbers = #tpu.dot_dimension_numbers<[1], [0], [0], [1], [0, 0, 1, 1], [], []>} : vector<16x576xbf16>, vector<576x64xbf16>, vector<16x64xf32> -> vector<16x64xf32>
    %c0_4 = arith.constant 0 : index
    %c0_5 = arith.constant 0 : index
    %4 = vector.load %arg3[%c0_4, %c0_5] : memref<1x64xf32, #tpu.memory_space<vmem>>, vector<1x64xf32>
    %5 = vector.broadcast %4 : vector<1x64xf32> to vector<16x64xf32>
    %6 = arith.addf %3, %5 : vector<16x64xf32>
    %cst_6 = arith.constant dense<0.000000e+00> : vector<64xf32>
    %7 = vector.multi_reduction <add>, %6, %cst_6 [0] : vector<16x64xf32> to vector<64xf32>
    %8 = vector.shape_cast %7 : vector<64xf32> to vector<1x64xf32>
    %9 = vector.extract_strided_slice %8 {offsets = [0, 0], sizes = [1, 16], strides = [1, 1]} : vector<1x64xf32> to vector<1x16xf32>
    %10 = vector.extract_strided_slice %8 {offsets = [0, 16], sizes = [1, 16], strides = [1, 1]} : vector<1x64xf32> to vector<1x16xf32>
    %11 = arith.addf %9, %10 : vector<1x16xf32>
    %12 = vector.extract_strided_slice %8 {offsets = [0, 32], sizes = [1, 16], strides = [1, 1]} : vector<1x64xf32> to vector<1x16xf32>
    %13 = arith.addf %11, %12 : vector<1x16xf32>
    %14 = vector.extract_strided_slice %8 {offsets = [0, 48], sizes = [1, 16], strides = [1, 1]} : vector<1x64xf32> to vector<1x16xf32>
    %15 = arith.addf %13, %14 : vector<1x16xf32>
    %cst_7 = arith.constant 6.400000e+01 : f32
    %16 = vector.broadcast %cst_7 : f32 to vector<1x16xf32>
    %17 = arith.divf %15, %16 : vector<1x16xf32>
    %18 = tpu.concatenate %17, %17, %17, %17 in 1 : vector<1x16xf32>, vector<1x16xf32>, vector<1x16xf32>, vector<1x16xf32> -> vector<1x64xf32>
    %19 = vector.broadcast %18 : vector<1x64xf32> to vector<16x64xf32>
    %20 = arith.subf %6, %19 : vector<16x64xf32>
    %21 = arith.mulf %20, %20 : vector<16x64xf32>
    %cst_8 = arith.constant dense<0.000000e+00> : vector<64xf32>
    %22 = vector.multi_reduction <add>, %21, %cst_8 [0] : vector<16x64xf32> to vector<64xf32>
    %23 = vector.shape_cast %22 : vector<64xf32> to vector<1x64xf32>
    %24 = vector.extract_strided_slice %23 {offsets = [0, 0], sizes = [1, 16], strides = [1, 1]} : vector<1x64xf32> to vector<1x16xf32>
    %25 = vector.extract_strided_slice %23 {offsets = [0, 16], sizes = [1, 16], strides = [1, 1]} : vector<1x64xf32> to vector<1x16xf32>
    %26 = arith.addf %24, %25 : vector<1x16xf32>
    %27 = vector.extract_strided_slice %23 {offsets = [0, 32], sizes = [1, 16], strides = [1, 1]} : vector<1x64xf32> to vector<1x16xf32>
    %28 = arith.addf %26, %27 : vector<1x16xf32>
    %29 = vector.extract_strided_slice %23 {offsets = [0, 48], sizes = [1, 16], strides = [1, 1]} : vector<1x64xf32> to vector<1x16xf32>
    %30 = arith.addf %28, %29 : vector<1x16xf32>
    %cst_9 = arith.constant 6.400000e+01 : f32
    %31 = vector.broadcast %cst_9 : f32 to vector<1x16xf32>
    %32 = arith.divf %30, %31 : vector<1x16xf32>
    %cst_10 = arith.constant 9.99999974E-6 : f32
    %33 = vector.broadcast %cst_10 : f32 to vector<1x16xf32>
    %34 = arith.addf %32, %33 : vector<1x16xf32>
    %35 = math.rsqrt %34 : vector<1x16xf32>
    %36 = tpu.concatenate %35, %35, %35, %35 in 1 : vector<1x16xf32>, vector<1x16xf32>, vector<1x16xf32>, vector<1x16xf32> -> vector<1x64xf32>
    %37 = vector.broadcast %36 : vector<1x64xf32> to vector<16x64xf32>
    %38 = arith.mulf %20, %37 : vector<16x64xf32>
    %cst_11 = arith.constant 0.000000e+00 : f32
    %39 = vector.broadcast %cst_11 : f32 to vector<16x64xf32>
    %40 = arith.maximumf %38, %39 : vector<16x64xf32>
    %c0_12 = arith.constant 0 : index
    %c0_13 = arith.constant 0 : index
    %c0_14 = arith.constant 0 : index
    %41 = vector.load %arg4[%c0_12, %c0_13, %c0_14] : memref<1x1x64xf32, #tpu.memory_space<vmem>>, vector<1x1x64xf32>
    %42 = vector.shape_cast %41 : vector<1x1x64xf32> to vector<1x64xf32>
    %43 = vector.broadcast %42 : vector<1x64xf32> to vector<16x64xf32>
    %44 = arith.addf %40, %43 : vector<16x64xf32>
    %45 = arith.truncf %44 : vector<16x64xf32> to vector<16x64xbf16>
    %c0_15 = arith.constant 0 : index
    %c0_16 = arith.constant 0 : index
    %c0_17 = arith.constant 0 : index
    %46 = vector.load %arg5[%c0_15, %c0_16, %c0_17] : memref<1x16x64xbf16, #tpu.memory_space<vmem>>, vector<1x16x64xbf16>
    %47 = vector.shape_cast %46 : vector<1x16x64xbf16> to vector<16x64xbf16>
    %48 = vector.shape_cast %45 : vector<16x64xbf16> to vector<1x16x64xbf16>
    tpu.vector_store %arg5[%c0_15, %c0_16, %c0_17], %48 {strides = array<i32>} : memref<1x16x64xbf16, #tpu.memory_space<vmem>>, vector<1x16x64xbf16>,
    return
  }
  func.func @transform_0(%arg0: i32) -> (i32, i32, i32) {
    %c0_i32 = arith.constant 0 : i32
    %c0_i32_0 = arith.constant 0 : i32
    %c0_i32_1 = arith.constant 0 : i32
    return %arg0, %c0_i32, %c0_i32_0 : i32, i32, i32
  }
  func.func @transform_1(%arg0: i32) -> (i32, i32) {
    %c0_i32 = arith.constant 0 : i32
    %c0_i32_0 = arith.constant 0 : i32
    %c0_i32_1 = arith.constant 0 : i32
    return %c0_i32, %c0_i32_0 : i32, i32
  }
  func.func @transform_2(%arg0: i32) -> (i32, i32) {
    %c0_i32 = arith.constant 0 : i32
    %c0_i32_0 = arith.constant 0 : i32
    %c0_i32_1 = arith.constant 0 : i32
    return %c0_i32, %c0_i32_0 : i32, i32
  }
  func.func @transform_3(%arg0: i32) -> (i32, i32, i32) {
    %c0_i32 = arith.constant 0 : i32
    %c0_i32_0 = arith.constant 0 : i32
    %c0_i32_1 = arith.constant 0 : i32
    return %arg0, %c0_i32, %c0_i32_0 : i32, i32, i32
  }
  func.func @transform_4(%arg0: i32) -> (i32, i32, i32) {
    %c0_i32 = arith.constant 0 : i32
    %c0_i32_0 = arith.constant 0 : i32
    %c0_i32_1 = arith.constant 0 : i32
    return %arg0, %c0_i32, %c0_i32_0 : i32, i32, i32
  }
}

module attributes {stable_mosaic.version = 11 : i64} {
  func.func @_convt_kernel(%arg0: i32, %arg1: memref<1x64x288xbf16, #tpu.memory_space<vmem>>, %arg2: memref<288x4xbf16, #tpu.memory_space<vmem>>, %arg3: memref<1x4xf32, #tpu.memory_space<vmem>>, %arg4: memref<1x1x4xf32, #tpu.memory_space<vmem>>, %arg5: memref<1x64x4xf32, #tpu.memory_space<vmem>>) attributes {dimension_semantics = [#tpu.dimension_semantics<parallel>], iteration_bounds = array<i64: 2>, scalar_prefetch = 0 : i64, scratch_operands = 0 : i64, tpu.core_type = #tpu.core_type<tc>, window_params = [{transform_indices = @transform_0, window_bounds = array<i64: 1, 64, 288>}, {pipeline_mode = #tpu.pipeline_mode<synchronous>, transform_indices = @transform_1, window_bounds = array<i64: 288, 4>}, {pipeline_mode = #tpu.pipeline_mode<synchronous>, transform_indices = @transform_2, window_bounds = array<i64: 1, 4>}, {transform_indices = @transform_3, window_bounds = array<i64: 1, 1, 4>}, {transform_indices = @transform_4, window_bounds = array<i64: 1, 64, 4>}]} {
    %c0 = arith.constant 0 : index
    %c0_0 = arith.constant 0 : index
    %c0_1 = arith.constant 0 : index
    %0 = vector.load %arg1[%c0, %c0_0, %c0_1] : memref<1x64x288xbf16, #tpu.memory_space<vmem>>, vector<1x64x288xbf16>
    %1 = vector.shape_cast %0 : vector<1x64x288xbf16> to vector<64x288xbf16>
    %c0_2 = arith.constant 0 : index
    %c0_3 = arith.constant 0 : index
    %2 = vector.load %arg2[%c0_2, %c0_3] : memref<288x4xbf16, #tpu.memory_space<vmem>>, vector<288x4xbf16>
    %cst = arith.constant dense<0.000000e+00> : vector<64x4xf32>
    %3 = tpu.matmul %1, %2, %cst {dimension_numbers = #tpu.dot_dimension_numbers<[1], [0], [0], [1], [0, 0, 1, 1], [], []>} : vector<64x288xbf16>, vector<288x4xbf16>, vector<64x4xf32> -> vector<64x4xf32>
    %c0_4 = arith.constant 0 : index
    %c0_5 = arith.constant 0 : index
    %4 = vector.load %arg3[%c0_4, %c0_5] : memref<1x4xf32, #tpu.memory_space<vmem>>, vector<1x4xf32>
    %5 = vector.broadcast %4 : vector<1x4xf32> to vector<64x4xf32>
    %6 = arith.addf %3, %5 : vector<64x4xf32>
    %c0_6 = arith.constant 0 : index
    %c0_7 = arith.constant 0 : index
    %c0_8 = arith.constant 0 : index
    %7 = vector.load %arg4[%c0_6, %c0_7, %c0_8] : memref<1x1x4xf32, #tpu.memory_space<vmem>>, vector<1x1x4xf32>
    %8 = vector.shape_cast %7 : vector<1x1x4xf32> to vector<1x4xf32>
    %9 = vector.broadcast %8 : vector<1x4xf32> to vector<64x4xf32>
    %10 = arith.addf %6, %9 : vector<64x4xf32>
    %c0_9 = arith.constant 0 : index
    %c0_10 = arith.constant 0 : index
    %c0_11 = arith.constant 0 : index
    %11 = vector.load %arg5[%c0_9, %c0_10, %c0_11] : memref<1x64x4xf32, #tpu.memory_space<vmem>>, vector<1x64x4xf32>
    %12 = vector.shape_cast %11 : vector<1x64x4xf32> to vector<64x4xf32>
    %13 = vector.shape_cast %10 : vector<64x4xf32> to vector<1x64x4xf32>
    tpu.vector_store %arg5[%c0_9, %c0_10, %c0_11], %13 {strides = array<i32>} : memref<1x64x4xf32, #tpu.memory_space<vmem>>, vector<1x64x4xf32>,
    return
  }
  func.func @transform_0(%arg0: i32) -> (i32, i32, i32) {
    %c0_i32 = arith.constant 0 : i32
    %c0_i32_0 = arith.constant 0 : i32
    %c0_i32_1 = arith.constant 0 : i32
    return %arg0, %c0_i32, %c0_i32_0 : i32, i32, i32
  }
  func.func @transform_1(%arg0: i32) -> (i32, i32) {
    %c0_i32 = arith.constant 0 : i32
    %c0_i32_0 = arith.constant 0 : i32
    %c0_i32_1 = arith.constant 0 : i32
    return %c0_i32, %c0_i32_0 : i32, i32
  }
  func.func @transform_2(%arg0: i32) -> (i32, i32) {
    %c0_i32 = arith.constant 0 : i32
    %c0_i32_0 = arith.constant 0 : i32
    %c0_i32_1 = arith.constant 0 : i32
    return %c0_i32, %c0_i32_0 : i32, i32
  }
  func.func @transform_3(%arg0: i32) -> (i32, i32, i32) {
    %c0_i32 = arith.constant 0 : i32
    %c0_i32_0 = arith.constant 0 : i32
    %c0_i32_1 = arith.constant 0 : i32
    return %arg0, %c0_i32, %c0_i32_0 : i32, i32, i32
  }
  func.func @transform_4(%arg0: i32) -> (i32, i32, i32) {
    %c0_i32 = arith.constant 0 : i32
    %c0_i32_0 = arith.constant 0 : i32
    %c0_i32_1 = arith.constant 0 : i32
    return %arg0, %c0_i32, %c0_i32_0 : i32, i32, i32
  }
}

</mosaic_0001>

<bundles_post_ra>
// kernel: vector_field_unet_forward.7
= control target key start
LH: loop header
LB: loop body
LE: loop exit
PB: predicated region body
PF: predicated region fallthrough
CT: control target
= control target key end

     0   :  { %s1069_s15 = smov 0   ;;  %s1277_s0 = inlined_call_operand.vmem [shape: bf16[2,256,36], index: 0, kind: input, shape index: {}]   ;;  %s1278_s1 = inlined_call_operand.vmem [shape: bf16[36,16], index: 1, kind: input, shape index: {}]   ;;  %s1279_s2 = inlined_call_operand.vmem [shape: f32[1,16], index: 2, kind: input, shape index: {}]   ;;  %s1280_s3 = inlined_call_operand.vmem [shape: f32[2,1,16], index: 3, kind: input, shape index: {}]   ;;  %s1281_s4 = inlined_call_operand.vmem [shape: bf16[2,256,16], index: 4, kind: output, shape index: {}]  }
   0x1 LB: > { %s830_s16 = sadd.s32 4294967295, %s1042_s15   ;;  %p834_p0 = scmp.ge.s32.totalorder %s1042_s15, 1  ;;  %s1042_s15 = sphi %s1069_s15, %s14_s15  }
   0x2   : > { %p170_p1 = scmp.lt.s32.totalorder %s1042_s15, 3 }
   0x4   : > { %p171_p2 = pnand %p834_p0, %p170_p1 }
   0x5   : > { %p199_p3 = scmp.lt.s32.totalorder (!%p171_p2), %s830_s16, 1 }
   0x6   : > { %174 = sbr.rel (%p171_p2) target bundleno = 254 (0xfe), region = 36 }
   0xb   : > { %v1017_v0 = vld [vmem:[%s1278_s1 + $0x10] ss:$0 sps:$4 sm:$0x33]   ;;  %vm401_vm0 = vcmask 1041408   ;;  %v1018_v1 = vld [vmem:[%s1278_s1 + $0x8] sm:$0xff]   ;;  %s1283_s16 = smov (!%p199_p3, %s830_s16), 1 }
   0xc   : > { %1007 = vmatprep.subr.msk.bf16.mxu0 %vm401_vm0, %v1017_v0  ;;  %1008 = vmatprep.subr.msk.bf16.mxu1 %vm401_vm0, %v1017_v0  ;;  %v403_v2 = vsel %vm401_vm0, %v1017_v0, 0  ;;  %v1019_v3 = vld [vmem:[%s1278_s1] sm:$0xff]   ;;  %s910_s23 = sshll.u32 %s1283_s16, 7  ;;  %vm352_vm1 = vcmask 293888   ;;  %s206_s29 = scalar_lea.vmem %s1280_s3, %s1283_s16  ;;  %vm733_vm2 = vcmask 125952  }
   0xd   : > { %964 = vmatpush3.bf16.msra.mxu0 %v403_v2  ;;  %1004 = vmatpush3.bf16.msra.mxu1 %v403_v2  ;;  %s1094_s26 = scalar_lea.vmem %s1277_s0, %s910_s23  ;;  %v1135_v20 = vld [vmem:[%s1279_s2] ss:$0 sm:$0xff]  ;;  %s1150_s8 = scalar_lea.vmem %s1281_s4, %s910_s23 }
   0xe   : > { %965 = vmatprep.subr.bf16.mxu0 %v1018_v1  ;;  %1002 = vmatprep.subr.bf16.mxu1 %v1018_v1  ;;  %v1020_v4 = vld [vmem:[%s1094_s26] sm:$0xff]   ;;  %v1022_v6 = vld [vmem:[%s1094_s26 + $0x8] sm:$0xff]   ;;  %v1024_v8 = vld [vmem:[%s1094_s26 + $0x10] sm:$0xff]  }
   0xf   : > { %v1021_v5 = vld [vmem:[%s1094_s26 + $0x40] sm:$0xff]   ;;  %969 = vmatprep.mubr.msk.bf16.mxu0 %vm352_vm1, %v1020_v4  ;;  %v1023_v7 = vld [vmem:[%s1094_s26 + $0x48] sm:$0xff]   ;;  %v1025_v9 = vld [vmem:[%s1094_s26 + $0x50] sm:$0xff]  }
  0x10   : > { %985 = vmatprep.mubr.msk.bf16.mxu1 %vm352_vm1, %v1021_v5  ;;  %v1026_v10 = vld [vmem:[%s1094_s26 + $0x18] sm:$0xff]   ;;  %v1028_v12 = vld [vmem:[%s1094_s26 + $0x20] sm:$0xff]   ;;  %v1030_v14 = vld [vmem:[%s1094_s26 + $0x28] sm:$0xff]  }
  0x11   : > { %966 = vmatpush3.bf16.msra.mxu0 %v1018_v1  ;;  %1005 = vmatpush3.bf16.msra.mxu1 %v1018_v1  ;;  %v1027_v11 = vld [vmem:[%s1094_s26 + $0x58] sm:$0xff]   ;;  %v1029_v13 = vld [vmem:[%s1094_s26 + $0x60] sm:$0xff]   ;;  %v1031_v15 = vld [vmem:[%s1094_s26 + $0x68] sm:$0xff]  }
  0x12   : > { %967 = vmatprep.subr.bf16.mxu0 %v1019_v3  ;;  %1003 = vmatprep.subr.bf16.mxu1 %v1019_v3  ;;  %v1032_v16 = vld [vmem:[%s1094_s26 + $0x30] sm:$0xff]   ;;  %v1034_v18 = vld [vmem:[%s1094_s26 + $0x38] sm:$0xff]   ;;  %v1137_v22 = vld [vmem:[%s206_s29] ss:$0 sm:$0xff] }
  0x13   : > { %v1033_v17 = vld [vmem:[%s1094_s26 + $0x70] sm:$0xff]   ;;  %v1035_v19 = vld [vmem:[%s1094_s26 + $0x78] sm:$0xff]  }
  0x15   : > { %968 = vmatpush3.bf16.msra.mxu0 %v1019_v3  ;;  %1006 = vmatpush3.bf16.msra.mxu1 %v1019_v3 }
  0x18   : > { %970 = vmatmul.mubr.msk.bf16.vlgmr.msra.gmra.mxu0 %vm352_vm1, %v1022_v6  ;;  %986 = vmatmul.mubr.msk.bf16.vlgmr.msra.gmra.mxu1 %vm352_vm1, %v1023_v7 }
  0x19   : > { %973 = vmatprep.mubr.msk.bf16.mxu0 %vm352_vm1, %v1024_v8  ;;  %989 = vmatprep.mubr.msk.bf16.mxu1 %vm352_vm1, %v1025_v9 }
  0x20   : > { %974 = vmatmul.mubr.msk.bf16.gmra.mxu0 %vm352_vm1, %v1026_v10  ;;  %990 = vmatmul.mubr.msk.bf16.gmra.mxu1 %vm352_vm1, %v1027_v11 }
  0x21   : > { %977 = vmatprep.mubr.msk.bf16.mxu0 %vm352_vm1, %v1028_v12  ;;  %993 = vmatprep.mubr.msk.bf16.mxu1 %vm352_vm1, %v1029_v13 }
  0x28   : > { %978 = vmatmul.mubr.msk.bf16.gmra.mxu0 %vm352_vm1, %v1030_v14  ;;  %994 = vmatmul.mubr.msk.bf16.gmra.mxu1 %vm352_vm1, %v1031_v15 }
  0x29   : > { %981 = vmatprep.mubr.msk.bf16.mxu0 %vm352_vm1, %v1032_v16  ;;  %997 = vmatprep.mubr.msk.bf16.mxu1 %vm352_vm1, %v1033_v17 }
  0x30   : > { %982 = vmatmul.mubr.msk.bf16.gmra.mxu0 %vm352_vm1, %v1034_v18  ;;  %998 = vmatmul.mubr.msk.bf16.gmra.mxu1 %vm352_vm1, %v1035_v19 }
  0xd8   : > { %v971_v21 = vpop.f32.mrf.mxu0  ;;  %v987_v23 = vpop.f32.mrf.mxu1 }
  0xd9   : > { %v448_v24 = vadd.f32 %v971_v21, %v1135_v20  ;;  %v512_v25 = vadd.f32 %v987_v23, %v1135_v20 }
  0xda   : > { %v439_v26 = vpop.f32.mrf.mxu0  ;;  %v503_v27 = vpop.f32.mrf.mxu1 }
  0xdb   : > { %v575_v28 = vadd.f32 %v1137_v22, %v448_v24  ;;  %v591_v29 = vadd.f32 %v1137_v22, %v512_v25  ;;  %v440_v30 = vadd.f32 %v1135_v20, %v439_v26  ;;  %v504_v31 = vadd.f32 %v1135_v20, %v503_v27 }
  0xdc   : > { %v972_v32 = vpop.f32.mrf.mxu0  ;;  %v988_v33 = vpop.f32.mrf.mxu1 }
  0xdd   : > { %v914_v34 = vpack.c.bf16 %v575_v28, %v575_v28  ;;  %v930_v35 = vpack.c.bf16 %v591_v29, %v591_v29  ;;  %v573_v36 = vadd.f32 %v1137_v22, %v440_v30  ;;  %v589_v37 = vadd.f32 %v1137_v22, %v504_v31 }
  0xde   : > { %v451_v38 = vadd.f32 %v972_v32, %v1135_v20  ;;  %v515_v39 = vadd.f32 %v988_v33, %v1135_v20  ;;  %v442_v40 = vpop.f32.mrf.mxu0  ;;  %v506_v41 = vpop.f32.mrf.mxu1 }
  0xdf   : > { %736 = vst.msk [vmem:[%s1150_s8 + $0x8] sm:$0xf] %vm733_vm2, %v914_v34  ;;  %752 = vst.msk [vmem:[%s1150_s8 + $0x48] sm:$0xf] %vm733_vm2, %v930_v35  ;;  %v912_v42 = vpack.c.bf16 %v573_v36, %v573_v36  ;;  %v928_v43 = vpack.c.bf16 %v589_v37, %v589_v37  ;;  %v443_v44 = vadd.f32 %v1135_v20, %v442_v40 }
  0xe0   : > { %v507_v45 = vadd.f32 %v1135_v20, %v506_v41  ;;  %v576_v46 = vadd.f32 %v1137_v22, %v451_v38  ;;  %v592_v47 = vadd.f32 %v1137_v22, %v515_v39  ;;  %v975_v48 = vpop.f32.mrf.mxu0  ;;  %v991_v49 = vpop.f32.mrf.mxu1 }
  0xe1   : > { %734 = vst.msk [vmem:[%s1150_s8] sm:$0xf] %vm733_vm2, %v912_v42  ;;  %750 = vst.msk [vmem:[%s1150_s8 + $0x40] sm:$0xf] %vm733_vm2, %v928_v43  ;;  %v574_v50 = vadd.f32 %v1137_v22, %v443_v44  ;;  %v464_v52 = vadd.f32 %v975_v48, %v1135_v20  ;;  %v528_v53 = vadd.f32 %v991_v49, %v1135_v20 }
  0xe2   : > { %v590_v51 = vadd.f32 %v1137_v22, %v507_v45  ;;  %v915_v54 = vpack.c.bf16 %v576_v46, %v576_v46  ;;  %v931_v55 = vpack.c.bf16 %v592_v47, %v592_v47  ;;  %v455_v56 = vpop.f32.mrf.mxu0  ;;  %v519_v57 = vpop.f32.mrf.mxu1 }
  0xe3   : > { %v913_v58 = vpack.c.bf16 %v574_v50, %v574_v50  ;;  %v579_v60 = vadd.f32 %v1137_v22, %v464_v52  ;;  %v595_v61 = vadd.f32 %v1137_v22, %v528_v53  ;;  %v456_v62 = vadd.f32 %v1135_v20, %v455_v56 }
  0xe4   : > { %v929_v59 = vpack.c.bf16 %v590_v51, %v590_v51  ;;  %737 = vst.msk [vmem:[%s1150_s8 + $0xc] sm:$0xf] %vm733_vm2, %v915_v54  ;;  %753 = vst.msk [vmem:[%s1150_s8 + $0x4c] sm:$0xf] %vm733_vm2, %v931_v55  ;;  %v520_v63 = vadd.f32 %v1135_v20, %v519_v57  ;;  %v976_v0 = vpop.f32.mrf.mxu0  ;;  %v992_v1 = vpop.f32.mrf.mxu1 }
  0xe5   : > { %735 = vst.msk [vmem:[%s1150_s8 + $0x4] sm:$0xf] %vm733_vm2, %v913_v58  ;;  %v918_v2 = vpack.c.bf16 %v579_v60, %v579_v60  ;;  %v934_v3 = vpack.c.bf16 %v595_v61, %v595_v61  ;;  %v467_v4 = vadd.f32 %v976_v0, %v1135_v20  ;;  %v531_v5 = vadd.f32 %v992_v1, %v1135_v20 }
  0xe6   : > { %751 = vst.msk [vmem:[%s1150_s8 + $0x44] sm:$0xf] %vm733_vm2, %v929_v59  ;;  %v577_v6 = vadd.f32 %v1137_v22, %v456_v62  ;;  %v593_v7 = vadd.f32 %v1137_v22, %v520_v63  ;;  %v458_v8 = vpop.f32.mrf.mxu0  ;;  %v522_v9 = vpop.f32.mrf.mxu1 }
  0xe7   : > { %740 = vst.msk [vmem:[%s1150_s8 + $0x18] sm:$0xf] %vm733_vm2, %v918_v2  ;;  %756 = vst.msk [vmem:[%s1150_s8 + $0x58] sm:$0xf] %vm733_vm2, %v934_v3  ;;  %v580_v10 = vadd.f32 %v1137_v22, %v467_v4  ;;  %v596_v11 = vadd.f32 %v1137_v22, %v531_v5  ;;  %v459_v12 = vadd.f32 %v1135_v20, %v458_v8 }
  0xe8   : > { %v523_v13 = vadd.f32 %v1135_v20, %v522_v9  ;;  %v916_v14 = vpack.c.bf16 %v577_v6, %v577_v6  ;;  %v932_v15 = vpack.c.bf16 %v593_v7, %v593_v7  ;;  %v979_v16 = vpop.f32.mrf.mxu0  ;;  %v995_v17 = vpop.f32.mrf.mxu1 }
  0xe9   : > { %v919_v18 = vpack.c.bf16 %v580_v10, %v580_v10  ;;  %v935_v19 = vpack.c.bf16 %v596_v11, %v596_v11  ;;  %v578_v21 = vadd.f32 %v1137_v22, %v459_v12  ;;  %v480_v24 = vadd.f32 %v979_v16, %v1135_v20 }
  0xea   : > { %v594_v23 = vadd.f32 %v1137_v22, %v523_v13  ;;  %738 = vst.msk [vmem:[%s1150_s8 + $0x10] sm:$0xf] %vm733_vm2, %v916_v14  ;;  %754 = vst.msk [vmem:[%s1150_s8 + $0x50] sm:$0xf] %vm733_vm2, %v932_v15  ;;  %v544_v25 = vadd.f32 %v995_v17, %v1135_v20  ;;  %v471_v26 = vpop.f32.mrf.mxu0  ;;  %v535_v27 = vpop.f32.mrf.mxu1 }
  0xeb   : > { %741 = vst.msk [vmem:[%s1150_s8 + $0x1c] sm:$0xf] %vm733_vm2, %v919_v18  ;;  %757 = vst.msk [vmem:[%s1150_s8 + $0x5c] sm:$0xf] %vm733_vm2, %v935_v19  ;;  %v917_v28 = vpack.c.bf16 %v578_v21, %v578_v21  ;;  %v472_v30 = vadd.f32 %v1135_v20, %v471_v26  ;;  %v536_v31 = vadd.f32 %v1135_v20, %v535_v27 }
  0xec   : > { %v933_v29 = vpack.c.bf16 %v594_v23, %v594_v23  ;;  %v583_v32 = vadd.f32 %v1137_v22, %v480_v24  ;;  %v599_v33 = vadd.f32 %v1137_v22, %v544_v25  ;;  %v980_v34 = vpop.f32.mrf.mxu0  ;;  %v996_v35 = vpop.f32.mrf.mxu1 }
  0xed   : > { %739 = vst.msk [vmem:[%s1150_s8 + $0x14] sm:$0xf] %vm733_vm2, %v917_v28  ;;  %v581_v36 = vadd.f32 %v1137_v22, %v472_v30  ;;  %v597_v37 = vadd.f32 %v1137_v22, %v536_v31  ;;  %v483_v38 = vadd.f32 %v980_v34, %v1135_v20  ;;  %v547_v39 = vadd.f32 %v996_v35, %v1135_v20 }
  0xee   : > { %755 = vst.msk [vmem:[%s1150_s8 + $0x54] sm:$0xf] %vm733_vm2, %v933_v29  ;;  %v922_v40 = vpack.c.bf16 %v583_v32, %v583_v32  ;;  %v938_v41 = vpack.c.bf16 %v599_v33, %v599_v33  ;;  %v474_v42 = vpop.f32.mrf.mxu0  ;;  %v538_v43 = vpop.f32.mrf.mxu1 }
  0xef   : > { %v920_v44 = vpack.c.bf16 %v581_v36, %v581_v36  ;;  %v936_v45 = vpack.c.bf16 %v597_v37, %v597_v37  ;;  %v584_v46 = vadd.f32 %v1137_v22, %v483_v38  ;;  %v600_v47 = vadd.f32 %v1137_v22, %v547_v39 }
  0xf0   : > { %744 = vst.msk [vmem:[%s1150_s8 + $0x28] sm:$0xf] %vm733_vm2, %v922_v40  ;;  %760 = vst.msk [vmem:[%s1150_s8 + $0x68] sm:$0xf] %vm733_vm2, %v938_v41  ;;  %v475_v48 = vadd.f32 %v1135_v20, %v474_v42  ;;  %v539_v49 = vadd.f32 %v1135_v20, %v538_v43  ;;  %v983_v50 = vpop.f32.mrf.mxu0  ;;  %v999_v51 = vpop.f32.mrf.mxu1 }
  0xf1   : > { %742 = vst.msk [vmem:[%s1150_s8 + $0x20] sm:$0xf] %vm733_vm2, %v920_v44  ;;  %758 = vst.msk [vmem:[%s1150_s8 + $0x60] sm:$0xf] %vm733_vm2, %v936_v45  ;;  %v923_v52 = vpack.c.bf16 %v584_v46, %v584_v46  ;;  %v939_v53 = vpack.c.bf16 %v600_v47, %v600_v47  ;;  %v496_v54 = vadd.f32 %v983_v50, %v1135_v20 }
  0xf2   : > { %v560_v55 = vadd.f32 %v999_v51, %v1135_v20  ;;  %v582_v56 = vadd.f32 %v1137_v22, %v475_v48  ;;  %v598_v57 = vadd.f32 %v1137_v22, %v539_v49  ;;  %v487_v58 = vpop.f32.mrf.mxu0  ;;  %v551_v59 = vpop.f32.mrf.mxu1 }
  0xf3   : > { %745 = vst.msk [vmem:[%s1150_s8 + $0x2c] sm:$0xf] %vm733_vm2, %v923_v52  ;;  %761 = vst.msk [vmem:[%s1150_s8 + $0x6c] sm:$0xf] %vm733_vm2, %v939_v53  ;;  %v587_v60 = vadd.f32 %v1137_v22, %v496_v54  ;;  %v488_v62 = vadd.f32 %v1135_v20, %v487_v58  ;;  %v552_v63 = vadd.f32 %v1135_v20, %v551_v59 }
  0xf4   : > { %v603_v61 = vadd.f32 %v1137_v22, %v560_v55  ;;  %v921_v0 = vpack.c.bf16 %v582_v56, %v582_v56  ;;  %v937_v1 = vpack.c.bf16 %v598_v57, %v598_v57  ;;  %v984_v2 = vpop.f32.mrf.mxu0  ;;  %v1000_v3 = vpop.f32.mrf.mxu1 }
  0xf5   : > { %v926_v4 = vpack.c.bf16 %v587_v60, %v587_v60  ;;  %v585_v6 = vadd.f32 %v1137_v22, %v488_v62  ;;  %v601_v7 = vadd.f32 %v1137_v22, %v552_v63  ;;  %v499_v8 = vadd.f32 %v984_v2, %v1135_v20 }
  0xf6   : > { %v942_v5 = vpack.c.bf16 %v603_v61, %v603_v61  ;;  %743 = vst.msk [vmem:[%s1150_s8 + $0x24] sm:$0xf] %vm733_vm2, %v921_v0  ;;  %759 = vst.msk [vmem:[%s1150_s8 + $0x64] sm:$0xf] %vm733_vm2, %v937_v1  ;;  %v563_v9 = vadd.f32 %v1000_v3, %v1135_v20  ;;  %v490_v10 = vpop.f32.mrf.mxu0  ;;  %v554_v11 = vpop.f32.mrf.mxu1 }
  0xf7   : > { %748 = vst.msk [vmem:[%s1150_s8 + $0x38] sm:$0xf] %vm733_vm2, %v926_v4  ;;  %v924_v12 = vpack.c.bf16 %v585_v6, %v585_v6  ;;  %v940_v13 = vpack.c.bf16 %v601_v7, %v601_v7  ;;  %v491_v14 = vadd.f32 %v1135_v20, %v490_v10  ;;  %v555_v15 = vadd.f32 %v1135_v20, %v554_v11 }
  0xf8   : > { %764 = vst.msk [vmem:[%s1150_s8 + $0x78] sm:$0xf] %vm733_vm2, %v942_v5  ;;  %v588_v16 = vadd.f32 %v1137_v22, %v499_v8  ;;  %v604_v17 = vadd.f32 %v1137_v22, %v563_v9 }
  0xf9   : > { %746 = vst.msk [vmem:[%s1150_s8 + $0x30] sm:$0xf] %vm733_vm2, %v924_v12  ;;  %762 = vst.msk [vmem:[%s1150_s8 + $0x70] sm:$0xf] %vm733_vm2, %v940_v13  ;;  %v586_v18 = vadd.f32 %v1137_v22, %v491_v14  ;;  %v602_v19 = vadd.f32 %v1137_v22, %v555_v15 }
  0xfa   : > { %v927_v21 = vpack.c.bf16 %v588_v16, %v588_v16  ;;  %v943_v23 = vpack.c.bf16 %v604_v17, %v604_v17 }
  0xfb   : > { %v925_v24 = vpack.c.bf16 %v586_v18, %v586_v18  ;;  %v941_v25 = vpack.c.bf16 %v602_v19, %v602_v19 }
  0xfc   : > { %749 = vst.msk [vmem:[%s1150_s8 + $0x3c] sm:$0xf] %vm733_vm2, %v927_v21  ;;  %765 = vst.msk [vmem:[%s1150_s8 + $0x7c] sm:$0xf] %vm733_vm2, %v943_v23 }
  0xfd   : > { %747 = vst.msk [vmem:[%s1150_s8 + $0x34] sm:$0xf] %vm733_vm2, %v925_v24  ;;  %763 = vst.msk [vmem:[%s1150_s8 + $0x74] sm:$0xf] %vm733_vm2, %v941_v25 }
  0xfe PF: > { %s14_s15 = sadd.s32 1, %s1042_s15  }
  0xff   : > { %p11_p4 = scmp.ge.s32.totalorder %s14_s15, 4  }
 0x101   :  { %13 = sbr.rel (!%p11_p4) target bundleno = 1 (0x1), region = 69 }

// kernel: vector_field_unet_forward.8
= control target key start
LH: loop header
LB: loop body
LE: loop exit
PB: predicated region body
PF: predicated region fallthrough
CT: control target
= control target key end

     0   :  { %s785_s15 = smov 0   ;;  %s909_s0 = inlined_call_operand.vmem [shape: bf16[2,64,256], index: 0, kind: input, shape index: {}]   ;;  %s910_s1 = inlined_call_operand.vmem [shape: bf16[256,16], index: 1, kind: input, shape index: {}]   ;;  %s911_s2 = inlined_call_operand.vmem [shape: f32[1,16], index: 2, kind: input, shape index: {}]   ;;  %s912_s3 = inlined_call_operand.vmem [shape: f32[2,1,16], index: 3, kind: input, shape index: {}]   ;;  %s913_s4 = inlined_call_operand.vmem [shape: bf16[2,64,16], index: 4, kind: output, shape index: {}]  }
   0x1 LB: > { %s605_s16 = sadd.s32 4294967295, %s758_s15   ;;  %p609_p0 = scmp.ge.s32.totalorder %s758_s15, 1  ;;  %s758_s15 = sphi %s785_s15, %s14_s15  }
   0x2   : > { %p170_p1 = scmp.lt.s32.totalorder %s758_s15, 3 }
   0x4   : > { %p171_p2 = pnand %p609_p0, %p170_p1 }
   0x5   : > { %p199_p3 = scmp.lt.s32.totalorder (!%p171_p2), %s605_s16, 1 }
   0x6   : > { %174 = sbr.rel (%p171_p2) target bundleno = 265 (0x109), region = 36 }
   0xb   : > { %v724_v0 = vld [vmem:[%s910_s1 + $0x78] sm:$0xff]   ;;  %v726_v2 = vld [vmem:[%s910_s1 + $0x70] sm:$0xff]   ;;  %v728_v4 = vld [vmem:[%s910_s1 + $0x68] sm:$0xff]   ;;  %s915_s16 = smov (!%p199_p3, %s605_s16), 1  ;;  %vm532_vm2 = vcmask 125952  }
   0xc   : > { %v725_v1 = vld [vmem:[%s910_s1 + $0x38] sm:$0xff]   ;;  %660 = vmatprep.subr.bf16.mxu0 %v724_v0  ;;  %700 = vmatprep.subr.bf16.mxu1 %v724_v0  ;;  %v727_v3 = vld [vmem:[%s910_s1 + $0x30] sm:$0xff]   ;;  %v729_v5 = vld [vmem:[%s910_s1 + $0x28] sm:$0xff]   ;;  %s650_s7 = sshll.u32 %s915_s16, 6  ;;  %s651_s8 = sshll.u32 %s915_s16, 5 }
   0xd   : > { %661 = vmatpush3.bf16.msra.mxu0 %v725_v1  ;;  %708 = vmatpush3.bf16.msra.mxu1 %v725_v1  ;;  %v730_v6 = vld [vmem:[%s910_s1 + $0x60] sm:$0xff]   ;;  %v732_v8 = vld [vmem:[%s910_s1 + $0x58] sm:$0xff]   ;;  %s826_s12 = scalar_lea.vmem %s909_s0, %s650_s7  ;;  %v734_v10 = vld [vmem:[%s910_s1 + $0x50] sm:$0xff]   ;;  %s206_s7 = scalar_lea.vmem %s912_s3, %s915_s16 }
   0xe   : > { %662 = vmatprep.subr.bf16.mxu0 %v726_v2  ;;  %701 = vmatprep.subr.bf16.mxu1 %v726_v2  ;;  %v731_v7 = vld [vmem:[%s910_s1 + $0x20] sm:$0xff]   ;;  %v733_v9 = vld [vmem:[%s910_s1 + $0x18] sm:$0xff]   ;;  %v735_v13 = vld [vmem:[%s910_s1 + $0x10] sm:$0xff]   ;;  %s878_s16 = scalar_lea.vmem %s913_s4, %s651_s8 }
   0xf   : > { %v742_v11 = vld [vmem:[%s826_s12 + $0x4] ss:$8 sps:$4 sm:$0xff]   ;;  %v740_v18 = vld [vmem:[%s826_s12] ss:$8 sps:$4 sm:$0xff]   ;;  %v746_v20 = vld [vmem:[%s826_s12 + $0x14] ss:$8 sps:$4 sm:$0xff]  }
  0x10   : > { %v745_v12 = vld [vmem:[%s826_s12 + $0x24] ss:$8 sps:$4 sm:$0xff]   ;;  %428 = vmatprep.mubr.bf16.mxu0 %v742_v11  ;;  %v743_v19 = vld [vmem:[%s826_s12 + $0x20] ss:$8 sps:$4 sm:$0xff]   ;;  %v748_v21 = vld [vmem:[%s826_s12 + $0x34] ss:$8 sps:$4 sm:$0xff]  }
  0x11   : > { %663 = vmatpush3.bf16.msra.mxu0 %v727_v3  ;;  %709 = vmatpush3.bf16.msra.mxu1 %v727_v3  ;;  %v736_v14 = vld [vmem:[%s910_s1 + $0x48] sm:$0xff]   ;;  %v738_v16 = vld [vmem:[%s910_s1 + $0x40] sm:$0xff]   ;;  %v750_v22 = vld [vmem:[%s826_s12 + $0x10] ss:$8 sps:$4 sm:$0xff]  }
  0x12   : > { %664 = vmatprep.subr.bf16.mxu0 %v728_v4  ;;  %702 = vmatprep.subr.bf16.mxu1 %v728_v4  ;;  %v737_v15 = vld [vmem:[%s910_s1 + $0x8] sm:$0xff]   ;;  %v739_v17 = vld [vmem:[%s910_s1] sm:$0xff]   ;;  %v751_v23 = vld [vmem:[%s826_s12 + $0x30] ss:$8 sps:$4 sm:$0xff]  }
  0x13   : > { %444 = vmatprep.mubr.bf16.mxu1 %v745_v12  ;;  %v860_v26 = vld [vmem:[%s911_s2] ss:$0 sm:$0xff] }
  0x14   : > { %v868_v35 = vld [vmem:[%s206_s7] ss:$0 sm:$0xff] }
  0x15   : > { %665 = vmatpush3.bf16.msra.mxu0 %v729_v5  ;;  %710 = vmatpush3.bf16.msra.mxu1 %v729_v5 }
  0x16   : > { %666 = vmatprep.subr.bf16.mxu0 %v730_v6  ;;  %703 = vmatprep.subr.bf16.mxu1 %v730_v6 }
  0x19   : > { %667 = vmatpush3.bf16.msra.mxu0 %v731_v7  ;;  %711 = vmatpush3.bf16.msra.mxu1 %v731_v7 }
  0x1a   : > { %668 = vmatprep.subr.bf16.mxu0 %v732_v8  ;;  %704 = vmatprep.subr.bf16.mxu1 %v732_v8 }
  0x1d   : > { %669 = vmatpush3.bf16.msra.mxu0 %v733_v9  ;;  %712 = vmatpush3.bf16.msra.mxu1 %v733_v9 }
  0x1e   : > { %670 = vmatprep.subr.bf16.mxu0 %v734_v10  ;;  %705 = vmatprep.subr.bf16.mxu1 %v734_v10 }
  0x21   : > { %671 = vmatpush3.bf16.msra.mxu0 %v735_v13  ;;  %713 = vmatpush3.bf16.msra.mxu1 %v735_v13 }
  0x22   : > { %672 = vmatprep.subr.bf16.mxu0 %v736_v14  ;;  %706 = vmatprep.subr.bf16.mxu1 %v736_v14 }
  0x25   : > { %673 = vmatpush3.bf16.msra.mxu0 %v737_v15  ;;  %714 = vmatpush3.bf16.msra.mxu1 %v737_v15 }
  0x26   : > { %674 = vmatprep.subr.bf16.mxu0 %v738_v16  ;;  %707 = vmatprep.subr.bf16.mxu1 %v738_v16 }
  0x29   : > { %675 = vmatpush3.bf16.msra.mxu0 %v739_v17  ;;  %715 = vmatpush3.bf16.msra.mxu1 %v739_v17 }
  0x2c   : > { %429 = vmatmul.mubr.bf16.vlgmr.msra.gmra.mxu0 %v740_v18  ;;  %445 = vmatmul.mubr.bf16.vlgmr.msra.gmra.mxu1 %v743_v19 }
  0x2d   : > { %436 = vmatprep.mubr.bf16.mxu0 %v746_v20  ;;  %452 = vmatprep.mubr.bf16.mxu1 %v748_v21 }
  0x34   : > { %437 = vmatmul.mubr.bf16.gmra.mxu0 %v750_v22  ;;  %453 = vmatmul.mubr.bf16.gmra.mxu1 %v751_v23 }
  0xec   : > { %v676_v24 = vpop.f32.mrf.mxu0  ;;  %v688_v25 = vpop.f32.mrf.mxu1 }
  0xee   : > { %v677_v27 = vpop.f32.mrf.mxu0  ;;  %v689_v28 = vpop.f32.mrf.mxu1 }
  0xef   : > { %v678_v29 = vadd.f32 %v677_v27, %v676_v24  ;;  %v690_v30 = vadd.f32 %v689_v28, %v688_v25 }
  0xf0   : > { %v679_v31 = vpop.f32.mrf.mxu0  ;;  %v691_v32 = vpop.f32.mrf.mxu1 }
  0xf1   : > { %v431_v33 = vadd.f32 %v678_v29, %v860_v26  ;;  %v447_v34 = vadd.f32 %v690_v30, %v860_v26 }
  0xf2   : > { %v680_v36 = vpop.f32.mrf.mxu0  ;;  %v692_v37 = vpop.f32.mrf.mxu1 }
  0xf3   : > { %vm461_vm0 = vcmp.ge.f32.partialorder %v431_v33, 0.0  ;;  %v469_v38 = vmul.f32 0.2, %v431_v33  ;;  %vm465_vm1 = vcmp.ge.f32.partialorder %v447_v34, 0.0  ;;  %v473_v39 = vmul.f32 0.2, %v447_v34 }
  0xf4   : > { %v681_v40 = vadd.f32 %v680_v36, %v679_v31  ;;  %v693_v41 = vadd.f32 %v692_v37, %v691_v32  ;;  %v682_v42 = vpop.f32.mrf.mxu0  ;;  %v694_v43 = vpop.f32.mrf.mxu1 }
  0xf5   : > { %v477_v44 = vsel %vm461_vm0, %v431_v33, %v469_v38  ;;  %v481_v45 = vsel %vm465_vm1, %v447_v34, %v473_v39 }
  0xf6   : > { %v492_v46 = vadd.f32 %v868_v35, %v477_v44  ;;  %v496_v47 = vadd.f32 %v868_v35, %v481_v45  ;;  %v434_v48 = vadd.f32 %v681_v40, %v860_v26  ;;  %v450_v49 = vadd.f32 %v693_v41, %v860_v26  ;;  %v683_v50 = vpop.f32.mrf.mxu0  ;;  %v695_v51 = vpop.f32.mrf.mxu1 }
  0xf7   : > { %v684_v52 = vadd.f32 %v683_v50, %v682_v42  ;;  %v696_v53 = vadd.f32 %v695_v51, %v694_v43 }
  0xf8   : > { %v652_v54 = vpack.c.bf16 %v492_v46, %v492_v46  ;;  %v656_v55 = vpack.c.bf16 %v496_v47, %v496_v47  ;;  %vm462_vm3 = vcmp.ge.f32.partialorder %v434_v48, 0.0  ;;  %v470_v56 = vmul.f32 0.2, %v434_v48  ;;  %v685_v57 = vpop.f32.mrf.mxu0  ;;  %v697_v58 = vpop.f32.mrf.mxu1 }
  0xf9   : > { %vm466_vm4 = vcmp.ge.f32.partialorder %v450_v49, 0.0  ;;  %v474_v59 = vmul.f32 0.2, %v450_v49  ;;  %v439_v60 = vadd.f32 %v684_v52, %v860_v26  ;;  %v455_v61 = vadd.f32 %v696_v53, %v860_v26 }
  0xfa   : > { %533 = vst.msk [vmem:[%s878_s16] sm:$0xf] %vm532_vm2, %v652_v54  ;;  %537 = vst.msk [vmem:[%s878_s16 + $0x10] sm:$0xf] %vm532_vm2, %v656_v55  ;;  %v478_v62 = vsel %vm462_vm3, %v434_v48, %v470_v56  ;;  %v686_v63 = vpop.f32.mrf.mxu0  ;;  %v698_v0 = vpop.f32.mrf.mxu1 }
  0xfb   : > { %v493_v1 = vadd.f32 %v868_v35, %v478_v62  ;;  %v482_v2 = vsel %vm466_vm4, %v450_v49, %v474_v59  ;;  %vm463_vm5 = vcmp.ge.f32.partialorder %v439_v60, 0.0  ;;  %v471_v3 = vmul.f32 0.2, %v439_v60 }
  0xfc   : > { %v497_v4 = vadd.f32 %v868_v35, %v482_v2  ;;  %vm467_vm6 = vcmp.ge.f32.partialorder %v455_v61, 0.0  ;;  %v475_v5 = vmul.f32 0.2, %v455_v61  ;;  %v687_v6 = vadd.f32 %v686_v63, %v685_v57 }
  0xfd   : > { %v653_v7 = vpack.c.bf16 %v493_v1, %v493_v1  ;;  %v479_v8 = vsel %vm463_vm5, %v439_v60, %v471_v3  ;;  %v699_v9 = vadd.f32 %v698_v0, %v697_v58 }
  0xfe   : > { %v657_v10 = vpack.c.bf16 %v497_v4, %v497_v4  ;;  %v494_v11 = vadd.f32 %v868_v35, %v479_v8  ;;  %v483_v12 = vsel %vm467_vm6, %v455_v61, %v475_v5  ;;  %v442_v13 = vadd.f32 %v687_v6, %v860_v26 }
  0xff   : > { %534 = vst.msk [vmem:[%s878_s16 + $0x4] sm:$0xf] %vm532_vm2, %v653_v7  ;;  %v498_v14 = vadd.f32 %v868_v35, %v483_v12  ;;  %v458_v15 = vadd.f32 %v699_v9, %v860_v26 }
 0x100   : > { %538 = vst.msk [vmem:[%s878_s16 + $0x14] sm:$0xf] %vm532_vm2, %v657_v10  ;;  %v654_v16 = vpack.c.bf16 %v494_v11, %v494_v11  ;;  %vm464_vm7 = vcmp.ge.f32.partialorder %v442_v13, 0.0  ;;  %v472_v17 = vmul.f32 0.2, %v442_v13 }
 0x101   : > { %v658_v18 = vpack.c.bf16 %v498_v14, %v498_v14  ;;  %vm468_vm8 = vcmp.ge.f32.partialorder %v458_v15, 0.0  ;;  %v476_v19 = vmul.f32 0.2, %v458_v15 }
 0x102   : > { %535 = vst.msk [vmem:[%s878_s16 + $0x8] sm:$0xf] %vm532_vm2, %v654_v16  ;;  %v480_v20 = vsel %vm464_vm7, %v442_v13, %v472_v17 }
 0x103   : > { %539 = vst.msk [vmem:[%s878_s16 + $0x18] sm:$0xf] %vm532_vm2, %v658_v18  ;;  %v495_v21 = vadd.f32 %v868_v35, %v480_v20  ;;  %v484_v22 = vsel %vm468_vm8, %v458_v15, %v476_v19 }
 0x104   : > { %v499_v23 = vadd.f32 %v868_v35, %v484_v22 }
 0x105   : > { %v655_v24 = vpack.c.bf16 %v495_v21, %v495_v21 }
 0x106   : > { %v659_v25 = vpack.c.bf16 %v499_v23, %v499_v23 }
 0x107   : > { %536 = vst.msk [vmem:[%s878_s16 + $0xc] sm:$0xf] %vm532_vm2, %v655_v24 }
 0x108   : > { %540 = vst.msk [vmem:[%s878_s16 + $0x1c] sm:$0xf] %vm532_vm2, %v659_v25 }
 0x109 PF: > { %s14_s15 = sadd.s32 1, %s758_s15  }
 0x10a   : > { %p11_p4 = scmp.ge.s32.totalorder %s14_s15, 4  }
 0x10c   :  { %13 = sbr.rel (!%p11_p4) target bundleno = 1 (0x1), region = 69 }

// kernel: vector_field_unet_forward.9
= control target key start
LH: loop header
LB: loop body
LE: loop exit
PB: predicated region body
PF: predicated region fallthrough
CT: control target
= control target key end

     0   :  { %s642_s15 = smov 0   ;;  %s722_s0 = inlined_call_operand.vmem [shape: bf16[2,16,256], index: 0, kind: input, shape index: {}]   ;;  %s723_s1 = inlined_call_operand.vmem [shape: bf16[256,32], index: 1, kind: input, shape index: {}]   ;;  %s724_s2 = inlined_call_operand.vmem [shape: f32[1,32], index: 2, kind: input, shape index: {}]   ;;  %s725_s3 = inlined_call_operand.vmem [shape: f32[2,1,32], index: 3, kind: input, shape index: {}]   ;;  %s726_s4 = inlined_call_operand.vmem [shape: bf16[2,16,32], index: 4, kind: output, shape index: {}]  }
   0x1 LB: > { %s521_s16 = sadd.s32 4294967295, %s615_s15   ;;  %p525_p0 = scmp.ge.s32.totalorder %s615_s15, 1  ;;  %s615_s15 = sphi %s642_s15, %s14_s15  }
   0x2   : > { %p170_p1 = scmp.lt.s32.totalorder %s615_s15, 3 }
   0x4   : > { %p171_p2 = pnand %p525_p0, %p170_p1 }
   0x5   : > { %p199_p3 = scmp.lt.s32.totalorder (!%p171_p2), %s521_s16, 1 }
   0x6   : > { %174 = sbr.rel (%p171_p2) target bundleno = 311 (0x137), region = 36 }
   0xb   : > { %v588_v0 = vld [vmem:[%s723_s1 + $0x78] sm:$0xff]   ;;  %v590_v2 = vld [vmem:[%s723_s1 + $0x70] sm:$0xff]   ;;  %v592_v4 = vld [vmem:[%s723_s1 + $0x68] sm:$0xff]   ;;  %s728_s16 = smov (!%p199_p3, %s521_s16), 1  ;;  %vm401_vm0 = vcmask 261120   ;;  %vm454_vm3 = vcmask 257024  }
   0xc   : > { %v589_v1 = vld [vmem:[%s723_s1 + $0x38] sm:$0xff]   ;;  %558 = vmatprep.subr.bf16.mxu0 %v588_v0  ;;  %v591_v3 = vld [vmem:[%s723_s1 + $0x30] sm:$0xff]   ;;  %v593_v5 = vld [vmem:[%s723_s1 + $0x28] sm:$0xff]   ;;  %s554_s7 = sshll.u32 %s728_s16, 4  ;;  %s555_s8 = sshll.u32 %s728_s16, 3 }
   0xd   : > { %559 = vmatpush3.bf16.msra.mxu0 %v589_v1  ;;  %v594_v6 = vld [vmem:[%s723_s1 + $0x60] sm:$0xff]   ;;  %v596_v8 = vld [vmem:[%s723_s1 + $0x58] sm:$0xff]   ;;  %s203_s12 = scalar_lea.vmem %s722_s0, %s554_s7  ;;  %v598_v10 = vld [vmem:[%s723_s1 + $0x50] sm:$0xff]   ;;  %s206_s7 = scalar_lea.vmem %s725_s3, %s728_s16 }
   0xe   : > { %560 = vmatprep.subr.bf16.mxu0 %v590_v2  ;;  %v595_v7 = vld [vmem:[%s723_s1 + $0x20] sm:$0xff]   ;;  %v597_v9 = vld [vmem:[%s723_s1 + $0x18] sm:$0xff]   ;;  %v599_v12 = vld [vmem:[%s723_s1 + $0x10] sm:$0xff]   ;;  %s211_s11 = scalar_lea.vmem %s726_s4, %s555_s8 }
   0xf   : > { %v606_v11 = vld [vmem:[%s203_s12 + $0x4] ss:$8 sps:$4 sm:$0xff]   ;;  %v604_v17 = vld [vmem:[%s203_s12] ss:$8 sps:$4 sm:$0xff]  }
  0x10   : > { %392 = vmatprep.mubr.bf16.mxu0 %v606_v11  ;;  %v600_v13 = vld [vmem:[%s723_s1 + $0x48] sm:$0xff]   ;;  %v602_v15 = vld [vmem:[%s723_s1 + $0x40] sm:$0xff]  }
  0x11   : > { %561 = vmatpush3.bf16.msra.mxu0 %v591_v3  ;;  %v601_v14 = vld [vmem:[%s723_s1 + $0x8] sm:$0xff]   ;;  %v603_v16 = vld [vmem:[%s723_s1] sm:$0xff]  }
  0x12   : > { %562 = vmatprep.subr.bf16.mxu0 %v592_v4  ;;  %v530_v21 = vld [vmem:[%s724_s2] ss:$0 sm:$0xff] }
  0x13   : > { %v549_v55 = vld [vmem:[%s206_s7] ss:$0 sm:$0xff] }
  0x15   : > { %563 = vmatpush3.bf16.msra.mxu0 %v593_v5 }
  0x16   : > { %564 = vmatprep.subr.bf16.mxu0 %v594_v6 }
  0x19   : > { %565 = vmatpush3.bf16.msra.mxu0 %v595_v7 }
  0x1a   : > { %566 = vmatprep.subr.bf16.mxu0 %v596_v8 }
  0x1d   : > { %567 = vmatpush3.bf16.msra.mxu0 %v597_v9 }
  0x1e   : > { %568 = vmatprep.subr.bf16.mxu0 %v598_v10 }
  0x21   : > { %569 = vmatpush3.bf16.msra.mxu0 %v599_v12 }
  0x22   : > { %570 = vmatprep.subr.bf16.mxu0 %v600_v13 }
  0x25   : > { %571 = vmatpush3.bf16.msra.mxu0 %v601_v14 }
  0x26   : > { %572 = vmatprep.subr.bf16.mxu0 %v602_v15 }
  0x29   : > { %573 = vmatpush3.bf16.msra.mxu0 %v603_v16 }
  0x2c   : > { %393 = vmatmul.mubr.bf16.vlgmr.msra.gmra.mxu0 %v604_v17 }
  0xec   : > { %v574_v18 = vpop.f32.mrf.mxu0 }
  0xee   : > { %v575_v19 = vpop.f32.mrf.mxu0 }
  0xef   : > { %v576_v20 = vadd.f32 %v575_v19, %v574_v18 }
  0xf0   : > { %v577_v22 = vpop.f32.mrf.mxu0 }
  0xf1   : > { %v395_v24 = vadd.f32 %v576_v20, %v530_v21 }
  0xf2   : > { %v578_v23 = vpop.f32.mrf.mxu0 }
  0xf3   : > { %v579_v25 = vadd.f32 %v578_v23, %v577_v22  ;;  %v402_v27 = vsel %vm401_vm0, %v395_v24, 0.0 }
  0xf5   : > { %v398_v26 = vadd.f32 %v579_v25, %v530_v21 }
  0xf7   : > { %v403_v28 = vsel %vm401_vm0, %v398_v26, 0.0 }
  0xf8   : > { %v404_v29 = vadd.f32 %v403_v28, %v402_v27 }
  0xfa   : > { %v405_v30 = vrot.slane %v404_v29, 4 }
  0xfc   : > { %v406_v31 = vadd.f32 %v405_v30, %v404_v29 }
  0xfe   : > { %v407_v32 = vrot.slane %v406_v31, 2 }
 0x100   : > { %v408_v33 = vadd.f32 %v407_v32, %v406_v31 }
 0x102   : > { %v409_v34 = vrot.slane %v408_v33, 1 }
 0x104   : > { %v410_v35 = vadd.f32 %v409_v34, %v408_v33 }
 0x106   : > { %v412_v36 = vmul.f32 0.0625, %v410_v35 }
 0x108   : > { %v413_v37 = vsub.f32 %v395_v24, %v412_v36  ;;  %v414_v38 = vsub.f32 %v398_v26, %v412_v36 }
 0x10a   : > { %v415_v39 = vmul.f32 %v413_v37, %v413_v37  ;;  %v416_v40 = vmul.f32 %v414_v38, %v414_v38 }
 0x10c   : > { %v417_v41 = vsel %vm401_vm0, %v415_v39, 0.0  ;;  %v418_v42 = vsel %vm401_vm0, %v416_v40, 0.0 }
 0x10d   : > { %v419_v43 = vadd.f32 %v418_v42, %v417_v41 }
 0x10f   : > { %v420_v44 = vrot.slane %v419_v43, 4 }
 0x111   : > { %v421_v45 = vadd.f32 %v420_v44, %v419_v43 }
 0x113   : > { %v422_v46 = vrot.slane %v421_v45, 2 }
 0x115   : > { %v423_v47 = vadd.f32 %v422_v46, %v421_v45 }
 0x117   : > { %v424_v48 = vrot.slane %v423_v47, 1 }
 0x119   : > { %v425_v49 = vadd.f32 %v424_v48, %v423_v47 }
 0x11b   : > { %v426_v50 = vmul.f32 0.0625, %v425_v49 }
 0x11d   : > { %v427_v51 = vadd.f32 1e-05, %v426_v50 }
 0x11f   : > { %607 = vrsqrt.f32 %v427_v51 }
 0x12c   : > { %v608_v52 = vpop.eup %607 }
 0x12d   : > { %v429_v53 = vmul.f32 %v608_v52, %v413_v37  ;;  %v430_v54 = vmul.f32 %v608_v52, %v414_v38 }
 0x12f   : > { %vm431_vm1 = vcmp.ge.f32.partialorder %v429_v53, 0.0  ;;  %vm432_vm2 = vcmp.ge.f32.partialorder %v430_v54, 0.0  ;;  %v433_v56 = vmul.f32 0.2, %v429_v53  ;;  %v434_v57 = vmul.f32 0.2, %v430_v54 }
 0x131   : > { %v435_v58 = vsel %vm431_vm1, %v429_v53, %v433_v56  ;;  %v436_v59 = vsel %vm432_vm2, %v430_v54, %v434_v57 }
 0x132   : > { %v444_v60 = vadd.f32 %v549_v55, %v435_v58  ;;  %v445_v61 = vadd.f32 %v549_v55, %v436_v59 }
 0x134   : > { %v556_v62 = vpack.c.bf16 %v444_v60, %v444_v60  ;;  %v557_v63 = vpack.c.bf16 %v445_v61, %v445_v61 }
 0x136   : > { %455 = vst.msk [vmem:[%s211_s11] sm:$0xf] %vm454_vm3, %v556_v62  ;;  %456 = vst.msk [vmem:[%s211_s11 + $0x4] sm:$0xf] %vm454_vm3, %v557_v63 }
 0x137 PF: > { %s14_s15 = sadd.s32 1, %s615_s15  }
 0x138   : > { %p11_p4 = scmp.ge.s32.totalorder %s14_s15, 4  }
 0x13a   :  { %13 = sbr.rel (!%p11_p4) target bundleno = 1 (0x1), region = 69 }

// kernel: vector_field_unet_forward.10
= control target key start
LH: loop header
LB: loop body
LE: loop exit
PB: predicated region body
PF: predicated region fallthrough
CT: control target
= control target key end

     0   :  { %s1516_s27 = smov 0   ;;  %s1749_s0 = inlined_call_operand.vmem [shape: bf16[2,4,512], index: 0, kind: input, shape index: {}]   ;;  %s1750_s1 = inlined_call_operand.vmem [shape: bf16[512,64], index: 1, kind: input, shape index: {}]   ;;  %s1751_s2 = inlined_call_operand.vmem [shape: bf16[256,64], index: 2, kind: input, shape index: {}]   ;;  %s1752_s3 = inlined_call_operand.vmem [shape: bf16[64,256], index: 3, kind: input, shape index: {}]   ;;  %s1753_s4 = inlined_call_operand.vmem [shape: f32[2,1,64], index: 4, kind: input, shape index: {}]   ;;  %s1754_s5 = inlined_call_operand.vmem [shape: f32[2,1,64], index: 5, kind: input, shape index: {}]   ;;  %s1755_s6 = inlined_call_operand.vmem [shape: f32[2,1,256], index: 6, kind: input, shape index: {}]   ;;  %s1756_s7 = inlined_call_operand.vmem [shape: bf16[2,4,64], index: 7, kind: output, shape index: {0}]   ;;  %s1757_s8 = inlined_call_operand.vmem [shape: bf16[2,1,256], index: 8, kind: output, shape index: {1}]  }
   0x1 LB: > { %s1244_s28 = sadd.s32 4294967295, %s1465_s27   ;;  %p1248_p0 = scmp.ge.s32.totalorder %s1465_s27, 1  ;;  %s1465_s27 = sphi %s1516_s27, %s19_s27  }
   0x2   : > { %p290_p1 = scmp.lt.s32.totalorder %s1465_s27, 3 }
   0x4   : > { %p291_p2 = pnand %p1248_p0, %p290_p1 }
   0x5   : > { %p337_p3 = scmp.lt.s32.totalorder (!%p291_p2), %s1244_s28, 1  ;;  %s1468_s18 = smov (!%p291_p2), 64  }
   0x6   : > { %294 = sbr.rel (%p291_p2) target bundleno = 1337 (0x539), region = 48 }
   0xb   : > { %v1394_v0 = vld [vmem:[%s1750_s1 + $0x78] sm:$0xff]   ;;  %v1398_v4 = vld [vmem:[%s1750_s1 + $0x70] sm:$0xff]   ;;  %v1402_v8 = vld [vmem:[%s1750_s1 + $0x68] sm:$0xff]   ;;  %s1759_s28 = smov (!%p337_p3, %s1244_s28), 1  ;;  %v431_v28 = vlaneseq  ;;  %v1467_v35 = vmov 1983009808  }
   0xc   : > { %v1395_v1 = vld [vmem:[%s1750_s1 + $0xf8] sm:$0xff]   ;;  %1316 = vmatprep.subr.bf16.mxu0 %v1394_v0  ;;  %v1399_v5 = vld [vmem:[%s1750_s1 + $0xf0] sm:$0xff]   ;;  %v1403_v9 = vld [vmem:[%s1750_s1 + $0xe8] sm:$0xff]   ;;  %s1315_s21 = sshll.u32 %s1759_s28, 3  ;;  %v429_v36 = vunpack.c.l.s4 %v1467_v35  ;;  %vm720_vm0 = vcmask 519168   ;;  %s344_s25 = scalar_lea.vmem %s1753_s4, %s1759_s28  ;;  %vm747_vm2 = vcmask 517120  }
   0xd   : > { %v1396_v2 = vld [vmem:[%s1750_s1 + $0x38] sm:$0xff]   ;;  %1338 = vmatprep.subr.bf16.mxu1 %v1395_v1  ;;  %v1400_v6 = vld [vmem:[%s1750_s1 + $0x30] sm:$0xff]   ;;  %v1404_v10 = vld [vmem:[%s1750_s1 + $0x28] sm:$0xff]   ;;  %s341_s10 = scalar_lea.vmem %s1749_s0, %s1315_s21  ;;  %v1630_v33 = vshrl.u32 %v431_v28, 7  ;;  %vm768_vm3 = vcmask 523264   ;;  %s347_s14 = scalar_lea.vmem %s1754_s5, %s1759_s28  ;;  %vm1120_vm5 = vcmask 1040384  }
   0xe   : > { %v1397_v3 = vld [vmem:[%s1750_s1 + $0xb8] sm:$0xff]   ;;  %1317 = vmatpush3.bf16.msra.mxu0 %v1396_v2  ;;  %v1401_v7 = vld [vmem:[%s1750_s1 + $0xb0] sm:$0xff]   ;;  %v1405_v11 = vld [vmem:[%s1750_s1 + $0xa8] sm:$0xff]   ;;  %v430_v37 = vunpack.c.0.s8 %v429_v36  ;;  %vm1121_vm6 = vsmask.f32 256  ;;  %vm1123_vm7 = vcmask 1041409  }
   0xf   : > { %1339 = vmatpush3.bf16.msra.mxu1 %v1397_v3  ;;  %1318 = vmatprep.subr.bf16.mxu0 %v1398_v4  ;;  %v1406_v12 = vld [vmem:[%s1750_s1 + $0x60] sm:$0xff]   ;;  %v1410_v16 = vld [vmem:[%s1750_s1 + $0x58] sm:$0xff]   ;;  %v1414_v20 = vld [vmem:[%s1750_s1 + $0x50] sm:$0xff]   ;;  %vm1124_vm8 = vsmask.f32 1280 }
  0x10   : > { %1340 = vmatprep.subr.bf16.mxu1 %v1399_v5  ;;  %v1407_v13 = vld [vmem:[%s1750_s1 + $0xe0] sm:$0xff]   ;;  %v1411_v17 = vld [vmem:[%s1750_s1 + $0xd8] sm:$0xff]   ;;  %v1415_v21 = vld [vmem:[%s1750_s1 + $0xd0] sm:$0xff]   ;;  %v433_v39 = vsub.s32 %v430_v37, %v1630_v33 }
  0x11   : > { %v1408_v14 = vld [vmem:[%s1750_s1 + $0x20] sm:$0xff]   ;;  %v1412_v18 = vld [vmem:[%s1750_s1 + $0x18] sm:$0xff]   ;;  %v1416_v22 = vld [vmem:[%s1750_s1 + $0x10] sm:$0xff]  }
  0x12   : > { %1319 = vmatpush3.bf16.msra.mxu0 %v1400_v6  ;;  %v1409_v15 = vld [vmem:[%s1750_s1 + $0xa0] sm:$0xff]   ;;  %v1413_v19 = vld [vmem:[%s1750_s1 + $0x98] sm:$0xff]   ;;  %v1417_v23 = vld [vmem:[%s1750_s1 + $0x90] sm:$0xff]  }
  0x13   : > { %1341 = vmatpush3.bf16.msra.mxu1 %v1401_v7  ;;  %1320 = vmatprep.subr.bf16.mxu0 %v1402_v8  ;;  %v1418_v24 = vld [vmem:[%s1750_s1 + $0x48] sm:$0xff]   ;;  %v1422_v29 = vld [vmem:[%s1750_s1 + $0x40] sm:$0xff]   ;;  %v1427_v44 = vld [vmem:[%s1751_s2 + $0x78] sm:$0xff]  }
  0x14   : > { %1342 = vmatprep.subr.bf16.mxu1 %v1403_v9  ;;  %v1419_v25 = vld [vmem:[%s1750_s1 + $0xc8] sm:$0xff]   ;;  %v1423_v30 = vld [vmem:[%s1750_s1 + $0xc0] sm:$0xff]   ;;  %v1428_v45 = vld [vmem:[%s1751_s2 + $0x38] sm:$0xff]  }
  0x15   : > { %v1420_v26 = vld [vmem:[%s1750_s1 + $0x8] sm:$0xff]   ;;  %v1424_v31 = vld [vmem:[%s1750_s1] sm:$0xff]   ;;  %v1429_v46 = vld [vmem:[%s1751_s2 + $0x70] sm:$0xff]  }
  0x16   : > { %1321 = vmatpush3.bf16.msra.mxu0 %v1404_v10  ;;  %v1421_v27 = vld [vmem:[%s1750_s1 + $0x88] sm:$0xff]   ;;  %v1425_v32 = vld [vmem:[%s1750_s1 + $0x80] sm:$0xff]   ;;  %v1430_v47 = vld [vmem:[%s1751_s2 + $0x30] sm:$0xff]  }
  0x17   : > { %1343 = vmatpush3.bf16.msra.mxu1 %v1405_v11  ;;  %1322 = vmatprep.subr.bf16.mxu0 %v1406_v12  ;;  %v361_v34 = vld [vmem:[%s341_s10] sm:$0xff]  ;;  %v1431_v48 = vld [vmem:[%s1751_s2 + $0x68] sm:$0xff]   ;;  %v1435_v52 = vld [vmem:[%s1751_s2 + $0x58] sm:$0xff]   ;;  %s1688_s10 = sshll.u32 %s1759_s28, 1 }
  0x18   : > { %1344 = vmatprep.subr.bf16.mxu1 %v1407_v13  ;;  %v427_v38 = vcombine.high %v361_v34, %v361_v34  ;;  %v434_v40 = vrot.slane %v361_v34, %v433_v39  ;;  %v1432_v49 = vld [vmem:[%s1751_s2 + $0x28] sm:$0xff]   ;;  %v1433_v50 = vld [vmem:[%s1751_s2 + $0x60] sm:$0xff]   ;;  %v1436_v53 = vld [vmem:[%s1751_s2 + $0x18] sm:$0xff]   ;;  %s355_s13 = scalar_lea.vmem %s1756_s7, %s1688_s10  ;;  %s351_s16 = scalar_lea.vmem %s1755_s6, %s1688_s10 }
  0x19   : > { %v1434_v51 = vld [vmem:[%s1751_s2 + $0x20] sm:$0xff]   ;;  %v1437_v54 = vld [vmem:[%s1751_s2 + $0x50] sm:$0xff]   ;;  %v1439_v56 = vld [vmem:[%s1751_s2 + $0x48] sm:$0xff]   ;;  %s359_s19 = scalar_lea.vmem %s1757_s8, %s1688_s10 }
  0x1a   : > { %1323 = vmatpush3.bf16.msra.mxu0 %v1408_v14  ;;  %v441_v41 = vrot.slane %v427_v38, %v433_v39  ;;  %v442_v42 = vcombine.high %v434_v40, %v434_v40  ;;  %v1438_v55 = vld [vmem:[%s1751_s2 + $0x10] sm:$0xff]   ;;  %v1440_v57 = vld [vmem:[%s1751_s2 + $0x8] sm:$0xff]   ;;  %vm1122_vm9 = vmand %vm1120_vm5, %vm1121_vm6 }
  0x1b   : > { %1345 = vmatpush3.bf16.msra.mxu1 %v1409_v15  ;;  %1324 = vmatprep.subr.bf16.mxu0 %v1410_v16  ;;  %v1443_v34 = vld [vmem:[%s1752_s3 + $0x30] ss:$8 sps:$4 sm:$0xff]   ;;  %v1445_v35 = vld [vmem:[%s1752_s3 + $0x34] ss:$8 sps:$4 sm:$0xff]   ;;  %vm1125_vm10 = vmand %vm1123_vm7, %vm1124_vm8 }
  0x1c   : > { %1346 = vmatprep.subr.bf16.mxu1 %v1411_v17  ;;  %v443_v43 = vcombine.high %v441_v41, %v441_v41  ;;  %672 = vmatprep.mubr.bf16.mxu0 %v442_v42  ;;  %vm1126_vm11 = vmor %vm1125_vm10, %vm1122_vm9 }
  0x1e   : > { %1325 = vmatpush3.bf16.msra.mxu0 %v1412_v18  ;;  %712 = vmatprep.mubr.bf16.mxu1 %v443_v43 }
  0x1f   : > { %1347 = vmatpush3.bf16.msra.mxu1 %v1413_v19  ;;  %1326 = vmatprep.subr.bf16.mxu0 %v1414_v20 }
  0x20   : > { %1348 = vmatprep.subr.bf16.mxu1 %v1415_v21 }
  0x22   : > { %1327 = vmatpush3.bf16.msra.mxu0 %v1416_v22 }
  0x23   : > { %1349 = vmatpush3.bf16.msra.mxu1 %v1417_v23  ;;  %1328 = vmatprep.subr.bf16.mxu0 %v1418_v24 }
  0x24   : > { %1350 = vmatprep.subr.bf16.mxu1 %v1419_v25  ;;  %v1441_v25 = vld [vmem:[%s1751_s2 + $0x40] sm:$0xff]  }
  0x26   : > { %1329 = vmatpush3.bf16.msra.mxu0 %v1420_v26 }
  0x27   : > { %1351 = vmatpush3.bf16.msra.mxu1 %v1421_v27  ;;  %1330 = vmatprep.subr.bf16.mxu0 %v1422_v29  ;;  %v1442_v27 = vld [vmem:[%s1751_s2] sm:$0xff]  }
  0x28   : > { %1352 = vmatprep.subr.bf16.mxu1 %v1423_v30  ;;  %v1286_v29 = vld [vmem:[%s344_s25] ss:$0 sm:$0xff] }
  0x2a   : > { %1331 = vmatpush3.bf16.msra.mxu0 %v1424_v31 }
  0x2b   : > { %1353 = vmatpush3.bf16.msra.mxu1 %v1425_v32  ;;  %1360 = vmatprep.subr.bf16.mxu0 %v1427_v44  ;;  %v1448_v44 = vld [vmem:[%s1752_s3 + $0x24] ss:$8 sps:$4 sm:$0xff]  }
  0x2c   : > { %1009 = vmatprep.subr.bf16.mxu1 %v1445_v35 }
  0x2d   : > { %673 = vmatmul.mubr.bf16.vlgmr.msra.gmra.mxu0 %v434_v40 }
  0x2e   : > { %713 = vmatmul.mubr.bf16.vlgmr.msra.gmra.mxu1 %v441_v41  ;;  %1361 = vmatpush3.bf16.msra.mxu0 %v1428_v45  ;;  %v1446_v45 = vld [vmem:[%s1752_s3 + $0x20] ss:$8 sps:$4 sm:$0xff]  }
  0x2f   : > { %1362 = vmatprep.subr.bf16.mxu0 %v1429_v46  ;;  %1010 = vmatpush1.bf16.msra.mxu1 %v1443_v34  ;;  %v1451_v46 = vld [vmem:[%s1752_s3 + $0x14] ss:$8 sps:$4 sm:$0xff]  }
  0x30   : > { %1011 = vmatprep.subr.bf16.mxu1 %v1448_v44 }
  0x32   : > { %1363 = vmatpush3.bf16.msra.mxu0 %v1430_v47  ;;  %v1449_v47 = vld [vmem:[%s1752_s3 + $0x10] ss:$8 sps:$4 sm:$0xff]  }
  0x33   : > { %1364 = vmatprep.subr.bf16.mxu0 %v1431_v48  ;;  %1012 = vmatpush1.bf16.msra.mxu1 %v1446_v45  ;;  %v1454_v48 = vld [vmem:[%s1752_s3 + $0x4] ss:$8 sps:$4 sm:$0xff]  }
  0x34   : > { %1013 = vmatprep.subr.bf16.mxu1 %v1451_v46 }
  0x36   : > { %1365 = vmatpush3.bf16.msra.mxu0 %v1432_v49  ;;  %v1452_v49 = vld [vmem:[%s1752_s3] ss:$8 sps:$4 sm:$0xff]  }
  0x37   : > { %1366 = vmatprep.subr.bf16.mxu0 %v1433_v50  ;;  %1014 = vmatpush1.bf16.msra.mxu1 %v1449_v47  ;;  %v1469_v50 = vmov 0  }
  0x38   : > { %1015 = vmatprep.subr.bf16.mxu1 %v1454_v48  ;;  %1033 = vmatprep.mubr.bf16.mxu1 %v1469_v50 }
  0x3a   : > { %1367 = vmatpush3.bf16.msra.mxu0 %v1434_v51 }
  0x3b   : > { %1368 = vmatprep.subr.bf16.mxu0 %v1435_v52  ;;  %1016 = vmatpush1.bf16.msra.mxu1 %v1452_v49 }
  0x3e   : > { %1369 = vmatpush3.bf16.msra.mxu0 %v1436_v53 }
  0x3f   : > { %1370 = vmatprep.subr.bf16.mxu0 %v1437_v54 }
  0x42   : > { %1371 = vmatpush3.bf16.msra.mxu0 %v1438_v55 }
  0x43   : > { %1372 = vmatprep.subr.bf16.mxu0 %v1439_v56  ;;  %v947_v56 = vld [vmem:[%s347_s14] sm:$0x1] }
  0x46   : > { %1373 = vmatpush3.bf16.msra.mxu0 %v1440_v57 }
  0x47   : > { %1374 = vmatprep.subr.bf16.mxu0 %v1441_v25 }
  0x4a   : > { %1375 = vmatpush3.bf16.msra.mxu0 %v1442_v27 }
  0xed   : > { %v1332_v58 = vpop.f32.mrf.mxu0 }
  0xee   : > { %v1354_v59 = vpop.f32.mrf.mxu1 }
  0xef   : > { %v1333_v60 = vpop.f32.mrf.mxu0 }
  0xf0   : > { %v1355_v61 = vpop.f32.mrf.mxu1  ;;  %v1334_v62 = vadd.f32 %v1333_v60, %v1332_v58 }
  0xf1   : > { %v1356_v63 = vadd.f32 %v1355_v61, %v1354_v59  ;;  %v1335_v0 = vpop.f32.mrf.mxu0 }
  0xf2   : > { %v1357_v1 = vpop.f32.mrf.mxu1 }
  0xf3   : > { %v715_v2 = vadd.f32 %v1356_v63, %v1334_v62  ;;  %v1336_v3 = vpop.f32.mrf.mxu0 }
  0xf4   : > { %v1358_v4 = vpop.f32.mrf.mxu1 }
  0xf5   : > { %v721_v5 = vsel %vm720_vm0, %v715_v2, 0.0 }
  0xf6   : > { %v722_v6 = vrot.slane %v721_v5, 4 }
  0xf8   : > { %v723_v7 = vadd.f32 %v722_v6, %v721_v5 }
  0xfa   : > { %v724_v8 = vrot.slane %v723_v7, 2 }
  0xfc   : > { %v725_v9 = vadd.f32 %v724_v8, %v723_v7 }
  0xfe   : > { %v726_v10 = vrot.slane %v725_v9, 1 }
 0x100   : > { %v727_v11 = vadd.f32 %v726_v10, %v725_v9 }
 0x102   : > { %v729_v12 = vmul.f32 0.25, %v727_v11 }
 0x104   : > { %v730_v13 = vsub.f32 %v715_v2, %v729_v12 }
 0x106   : > { %v731_v14 = vmul.f32 %v730_v13, %v730_v13 }
 0x108   : > { %v732_v15 = vsel %vm720_vm0, %v731_v14, 0.0 }
 0x109   : > { %v733_v16 = vrot.slane %v732_v15, 4 }
 0x10b   : > { %v734_v17 = vadd.f32 %v733_v16, %v732_v15 }
 0x10d   : > { %v735_v18 = vrot.slane %v734_v17, 2 }
 0x10f   : > { %v736_v19 = vadd.f32 %v735_v18, %v734_v17 }
 0x111   : > { %v737_v20 = vrot.slane %v736_v19, 1 }
 0x113   : > { %v738_v21 = vadd.f32 %v737_v20, %v736_v19 }
 0x115   : > { %v739_v22 = vmul.f32 0.25, %v738_v21  ;;  %v1090_v21 = vsub.s32 0, %v1630_v33 }
 0x117   : > { %v740_v23 = vadd.f32 1e-05, %v739_v22  ;;  %v1086_v22 = vld [vmem:[%s351_s16] sm:$0x3] }
 0x118   : > { %v1091_v27 = vrot.slane %v1086_v22, %v1090_v21 }
 0x119   : > { %1455 = vrsqrt.f32 %v740_v23  ;;  %v1094_v23 = vsub.s32 1, %v1630_v33 }
 0x126   : > { %v1456_v24 = vpop.eup %1455 }
 0x127   : > { %v742_v26 = vmul.f32 %v1456_v24, %v730_v13  ;;  %v1470_v24 = vmov 1966171168  }
 0x128   : > { %v1106_v25 = vunpack.c.l.s4 %v1470_v24 }
 0x129   : > { %vm743_vm1 = vcmp.ge.f32.partialorder %v742_v26, 0.0  ;;  %v744_v28 = vmul.f32 0.2, %v742_v26 }
 0x12b   : > { %v745_v30 = vsel %vm743_vm1, %v742_v26, %v744_v28 }
 0x12c   : > { %v756_v31 = vadd.f32 %v1286_v29, %v745_v30  ;;  %v746_v32 = vpack.c.bf16 %v745_v30, %v745_v30  ;;  %v1095_v29 = vrot.slane %v1086_v22, %v1094_v23  ;;  %v1107_v30 = vunpack.c.0.s8 %v1106_v25 }
 0x12e   : > { %v757_v36 = vpack.c.bf16 %v756_v31, %v756_v31  ;;  %748 = vst.msk [vmem:[%s355_s13] sm:$0x3] %vm747_vm2, %v746_v32 }
 0x130   : > { %v759_v37 = vshrl.u32 %v757_v36, 16  ;;  %v764_v39 = vrot.slane %v757_v36, 1 }
 0x132   : > { %v765_v38 = vrot.slane %v759_v37, 1 }
 0x134   : > { %766 = vrot.lane.b32.xlu0 %v765_v38, %s1468_s18 }
 0x138   : > { %761 = vrot.lane.b32.xlu0 %v759_v37, %s1468_s18 }
 0x1a6   : > { %v767_v40 = vpop.permute.xlu0 %766 }
 0x1a7   : > { %v774_v41 = vsel %vm768_vm3, %v764_v39, %v767_v40 }
 0x1a8   : > { %936 = vmatprep.mubr.bf16.mxu0 %v774_v41  ;;  %v1127_v41 = vld [vmem:[%s359_s19] sm:$0x3] }
 0x1aa   : > { %v762_v42 = vpop.permute.xlu0 %761 }
 0x1ab   : > { %v770_v43 = vsel %vm768_vm3, %v757_v36, %v762_v42  ;;  %v1110_v36 = vsub.s32 %v1107_v30, %v1630_v33 }
 0x1ac   : > { %937 = vmatmul.mubr.bf16.vlgmr.msra.gmra.mxu0 %v770_v43 }
 0x26c   : > { %v1376_v51 = vpop.f32.mrf.mxu0 }
 0x26e   : > { %v1377_v52 = vpop.f32.mrf.mxu0 }
 0x26f   : > { %v1378_v53 = vadd.f32 %v1377_v52, %v1376_v51 }
 0x270   : > { %v1379_v54 = vpop.f32.mrf.mxu0 }
 0x271   : > { %vm944_vm4 = vcmp.ge.f32.partialorder %v1378_v53, 0.0  ;;  %v945_v55 = vmul.f32 0.2, %v1378_v53 }
 0x272   : > { %v1380_v57 = vpop.f32.mrf.mxu0 }
 0x273   : > { %v946_v58 = vsel %vm944_vm4, %v1378_v53, %v945_v55 }
 0x274   : > { %v948_v59 = vadd.f32 %v947_v56, %v946_v58 }
 0x276   : > { %v949_v60 = vpack.c.bf16 %v948_v59, %v948_v59 }
 0x278   : > { %1311 = vmatmul.mubr.msk.bf16.vlgmr.msra.gmra.mxu1 %vm768_vm3, %v949_v60 }
 0x338   : > { %v1035_v61 = vpop.f32.mrf.mxu1 }
 0x339   : > { %1043 = vrot.lane.b32.xlu1 %v1035_v61, %s1468_s18 }
 0x33a   : > { %v1037_v62 = vpop.f32.mrf.mxu1 }
 0x33c   : > { %v1039_v63 = vpop.f32.mrf.mxu1 }
 0x33d   : > { %1049 = vrot.lane.b32.xlu1 %v1037_v62, %s1468_s18 }
 0x33e   : > { %v1040_v0 = vpop.f32.mrf.mxu1 }
 0x3ab   : > { %v1044_v1 = vpop.permute.xlu1 %1043 }
 0x3ac   : > { %v1046_v2 = vadd.f32 %v1044_v1, %v1035_v61 }
 0x3ae   : > { %v1047_v3 = vadd.f32 %v1046_v2, %v1037_v62 }
 0x3af   : > { %v1050_v4 = vpop.permute.xlu1 %1049 }
 0x3b0   : > { %v1052_v5 = vadd.f32 %v1050_v4, %v1047_v3 }
 0x3b2   : > { %v1053_v6 = vmul.f32 0.25, %v1052_v5 }
 0x3b4   : > { %1055 = vrot.lane.b32.xlu0 %v1053_v6, %s1468_s18 }
 0x426   : > { %v1056_v7 = vpop.permute.xlu0 %1055 }
 0x427   : > { %v1058_v8 = vsel %vm768_vm3, %v1053_v6, %v1056_v7 }
 0x428   : > { %v1059_v9 = vsub.f32 %v1035_v61, %v1058_v8  ;;  %v1060_v10 = vsub.f32 %v1037_v62, %v1058_v8 }
 0x42a   : > { %v1062_v11 = vmul.f32 %v1060_v10, %v1060_v10  ;;  %v1061_v12 = vmul.f32 %v1059_v9, %v1059_v9 }
 0x42c   : > { %1070 = vrot.lane.b32.xlu0 %v1062_v11, %s1468_s18  ;;  %1064 = vrot.lane.b32.xlu1 %v1061_v12, %s1468_s18 }
 0x49e   : > { %v1065_v13 = vpop.permute.xlu1 %1064  ;;  %v1071_v16 = vpop.permute.xlu0 %1070 }
 0x49f   : > { %v1067_v14 = vadd.f32 %v1065_v13, %v1061_v12 }
 0x4a1   : > { %v1068_v15 = vadd.f32 %v1067_v14, %v1062_v11 }
 0x4a3   : > { %v1073_v17 = vadd.f32 %v1071_v16, %v1068_v15 }
 0x4a5   : > { %v1074_v18 = vmul.f32 0.25, %v1073_v17 }
 0x4a7   : > { %v1075_v19 = vadd.f32 1e-05, %v1074_v18 }
 0x4a9   : > { %1457 = vrsqrt.f32 %v1075_v19 }
 0x4b6   : > { %v1458_v20 = vpop.eup %1457 }
 0x4b7   : > { %1078 = vrot.lane.b32.xlu1 %v1458_v20, %s1468_s18 }
 0x529   : > { %v1079_v26 = vpop.permute.xlu1 %1078 }
 0x52a   : > { %v1081_v28 = vsel %vm768_vm3, %v1458_v20, %v1079_v26 }
 0x52b   : > { %v1082_v31 = vmul.f32 %v1081_v28, %v1059_v9  ;;  %v1083_v32 = vmul.f32 %v1081_v28, %v1060_v10 }
 0x52d   : > { %v1084_v34 = vmax.f32 %v1082_v31, 0.0  ;;  %v1085_v35 = vmax.f32 %v1083_v32, 0.0 }
 0x52f   : > { %v1098_v37 = vadd.f32 %v1091_v27, %v1084_v34  ;;  %v1099_v38 = vadd.f32 %v1095_v29, %v1085_v35 }
 0x531   : > { %v1312_v39 = vpack.c.bf16 %v1099_v38, %v1098_v37 }
 0x533   : > { %v1111_v40 = vrot.slane %v1312_v39, %v1110_v36 }
 0x535   : > { %v1118_v42 = vrot.slane %v1111_v40, %v1110_v36 }
 0x537   : > { %v1128_v43 = vsel %vm1126_vm11, %v1118_v42, %v1127_v41 }
 0x538   : > { %1129 = vst [vmem:[%s359_s19] sm:$0x3] %v1128_v43 }
 0x539 PF: > { %s19_s27 = sadd.s32 1, %s1465_s27  }
 0x53a   : > { %p16_p4 = scmp.ge.s32.totalorder %s19_s27, 4  }
 0x53c   :  { %18 = sbr.rel (!%p16_p4) target bundleno = 1 (0x1), region = 99 }

// kernel: vector_field_unet_forward.11
= control target key start
LH: loop header
LB: loop body
LE: loop exit
PB: predicated region body
PF: predicated region fallthrough
CT: control target
= control target key end

     0   :  { %s1540_s15 = smov 0   ;;  %s1823_s0 = inlined_call_operand.vmem [shape: bf16[2,4,1152], index: 0, kind: input, shape index: {}]   ;;  %s1824_s1 = inlined_call_operand.vmem [shape: bf16[1152,128], index: 1, kind: input, shape index: {}]   ;;  %s1825_s2 = inlined_call_operand.vmem [shape: f32[1,128], index: 2, kind: input, shape index: {}]   ;;  %s1826_s3 = inlined_call_operand.vmem [shape: f32[2,1,128], index: 3, kind: input, shape index: {}]   ;;  %s1827_s4 = inlined_call_operand.vmem [shape: bf16[2,4,128], index: 4, kind: output, shape index: {}]  }
   0x1 LB: > { %s1209_s16 = sadd.s32 4294967295, %s1507_s15   ;;  %p1213_p0 = scmp.ge.s32.totalorder %s1507_s15, 1  ;;  %s1507_s15 = sphi %s1540_s15, %s14_s15  }
   0x2   : > { %p170_p1 = scmp.lt.s32.totalorder %s1507_s15, 3 }
   0x4   : > { %p171_p2 = pnand %p1213_p0, %p170_p1 }
   0x5   : > { %p198_p3 = scmp.lt.s32.totalorder (!%p171_p2), %s1209_s16, 1  ;;  %s1512_s25 = smov (!%p171_p2), 32  }
   0x6   : > { %174 = sbr.rel (%p171_p2) target bundleno = 850 (0x352), region = 36  ;;  %s1513_s26 = smov (!%p171_p2), 96  }
   0x7   : > { %s1514_s27 = smov (!%p171_p2), 64  }
   0xb   : > { %v1425_v0 = vld [vmem:[%s1824_s1 + $0x78] sm:$0xff]   ;;  %v1429_v4 = vld [vmem:[%s1824_s1 + $0x70] sm:$0xff]   ;;  %v1433_v8 = vld [vmem:[%s1824_s1 + $0x68] sm:$0xff]   ;;  %s1829_s16 = smov (!%p198_p3, %s1209_s16), 1  ;;  %v372_v27 = vlaneseq  ;;  %v1509_v35 = vmov 1983009808  }
   0xc   : > { %v1426_v1 = vld [vmem:[%s1824_s1 + $0x38] sm:$0xff]   ;;  %1293 = vmatprep.subr.bf16.mxu0 %v1425_v0  ;;  %v1430_v5 = vld [vmem:[%s1824_s1 + $0x30] sm:$0xff]   ;;  %v1434_v9 = vld [vmem:[%s1824_s1 + $0x28] sm:$0xff]   ;;  %s1410_s19 = smul.u32 18, %s1829_s16  ;;  %v370_v36 = vunpack.c.l.s4 %v1509_v35  ;;  %vm1511_vm0 = vmmov 0   ;;  %vm1050_vm1 = vcmask 1043456   ;;  %s205_s5 = scalar_lea.vmem %s1826_s3, %s1829_s16 }
   0xd   : > { %v1427_v2 = vld [vmem:[%s1824_s1 + $0xf8] sm:$0xff]   ;;  %1294 = vmatpush3.bf16.msra.mxu0 %v1426_v1  ;;  %v1431_v6 = vld [vmem:[%s1824_s1 + $0xf0] sm:$0xff]   ;;  %v1435_v10 = vld [vmem:[%s1824_s1 + $0xe8] sm:$0xff]   ;;  %v1653_v32 = vshrl.u32 %v372_v27, 7  ;;  %vm1083_vm2 = vcmask 261120   ;;  %vm1085_vm3 = vcmask 523264  }
   0xe   : > { %v1428_v3 = vld [vmem:[%s1824_s1 + $0xb8] sm:$0xff]   ;;  %1315 = vmatprep.subr.bf16.mxu1 %v1427_v2  ;;  %1295 = vmatprep.subr.bf16.mxu0 %v1429_v4  ;;  %v1432_v7 = vld [vmem:[%s1824_s1 + $0xb0] sm:$0xff]   ;;  %v1436_v11 = vld [vmem:[%s1824_s1 + $0xa8] sm:$0xff]   ;;  %s1645_s30 = scalar_lea.vmem %s1823_s0, %s1410_s19  ;;  %v371_v38 = vunpack.c.0.s8 %v370_v36  ;;  %vm1087_vm4 = vcmask 785408   ;;  %s1215_s6 = sshll.u32 %s1829_s16, 1 }
   0xf   : > { %1316 = vmatpush3.bf16.msra.mxu1 %v1428_v3  ;;  %v1437_v12 = vld [vmem:[%s1824_s1 + $0x60] sm:$0xff]   ;;  %v1441_v16 = vld [vmem:[%s1824_s1 + $0x58] sm:$0xff]   ;;  %v1445_v20 = vld [vmem:[%s1824_s1 + $0x50] sm:$0xff]   ;;  %s209_s9 = scalar_lea.vmem %s1827_s4, %s1215_s6 }
  0x10   : > { %1317 = vmatprep.subr.bf16.mxu1 %v1431_v6  ;;  %v1438_v13 = vld [vmem:[%s1824_s1 + $0x20] sm:$0xff]   ;;  %v1442_v17 = vld [vmem:[%s1824_s1 + $0x18] sm:$0xff]   ;;  %v1446_v21 = vld [vmem:[%s1824_s1 + $0x10] sm:$0xff]   ;;  %v1666_v41 = vsub.s32 %v371_v38, %v1653_v32 }
  0x11   : > { %1296 = vmatpush3.bf16.msra.mxu0 %v1430_v5  ;;  %v1439_v14 = vld [vmem:[%s1824_s1 + $0xe0] sm:$0xff]   ;;  %v1443_v18 = vld [vmem:[%s1824_s1 + $0xd8] sm:$0xff]   ;;  %v1447_v22 = vld [vmem:[%s1824_s1 + $0xd0] sm:$0xff]  }
  0x12   : > { %1297 = vmatprep.subr.bf16.mxu0 %v1433_v8  ;;  %v1440_v15 = vld [vmem:[%s1824_s1 + $0xa0] sm:$0xff]   ;;  %v1444_v19 = vld [vmem:[%s1824_s1 + $0x98] sm:$0xff]   ;;  %v1448_v23 = vld [vmem:[%s1824_s1 + $0x90] sm:$0xff]  }
  0x13   : > { %1318 = vmatpush3.bf16.msra.mxu1 %v1432_v7  ;;  %v1449_v24 = vld [vmem:[%s1824_s1 + $0x48] sm:$0xff]   ;;  %v1453_v29 = vld [vmem:[%s1824_s1 + $0x40] sm:$0xff]   ;;  %v1457_v37 = vld [vmem:[%s1824_s1 + $0x178] sm:$0xff]  }
  0x14   : > { %1319 = vmatprep.subr.bf16.mxu1 %v1435_v10  ;;  %v1450_v25 = vld [vmem:[%s1824_s1 + $0x8] sm:$0xff]   ;;  %v1454_v30 = vld [vmem:[%s1824_s1] sm:$0xff]   ;;  %v1460_v40 = vld [vmem:[%s1824_s1 + $0x1f8] sm:$0xff]  }
  0x15   : > { %1298 = vmatpush3.bf16.msra.mxu0 %v1434_v9  ;;  %v1451_v26 = vld [vmem:[%s1824_s1 + $0xc8] sm:$0xff]   ;;  %v1455_v31 = vld [vmem:[%s1824_s1 + $0xc0] sm:$0xff]   ;;  %v1459_v44 = vld [vmem:[%s1824_s1 + $0x138] sm:$0xff]  }
  0x16   : > { %1299 = vmatprep.subr.bf16.mxu0 %v1437_v12  ;;  %v1452_v28 = vld [vmem:[%s1824_s1 + $0x88] sm:$0xff]   ;;  %v211_v33 = vld [vmem:[%s1645_s30] sm:$0xff]  ;;  %v1461_v45 = vld [vmem:[%s1824_s1 + $0x1b8] sm:$0xff]  }
  0x17   : > { %1320 = vmatpush3.bf16.msra.mxu1 %v1436_v11  ;;  %v1456_v34 = vld [vmem:[%s1824_s1 + $0x80] sm:$0xff]   ;;  %v368_v39 = vcombine.high %v211_v33, %v211_v33  ;;  %v375_v42 = vrot.slane %v211_v33, %v1666_v41  ;;  %v1462_v48 = vld [vmem:[%s1824_s1 + $0x170] sm:$0xff]   ;;  %v1466_v52 = vld [vmem:[%s1824_s1 + $0x168] sm:$0xff]  }
  0x18   : > { %1321 = vmatprep.subr.bf16.mxu1 %v1439_v14  ;;  %v1464_v49 = vld [vmem:[%s1824_s1 + $0x1f0] sm:$0xff]   ;;  %v1468_v53 = vld [vmem:[%s1824_s1 + $0x1e8] sm:$0xff]   ;;  %v1470_v56 = vld [vmem:[%s1824_s1 + $0x160] sm:$0xff]  }
  0x19   : > { %1300 = vmatpush3.bf16.msra.mxu0 %v1438_v13  ;;  %v382_v43 = vrot.slane %v368_v39, %v1666_v41  ;;  %v383_v46 = vcombine.high %v375_v42, %v375_v42  ;;  %v1463_v50 = vld [vmem:[%s1824_s1 + $0x130] sm:$0xff]   ;;  %v1467_v54 = vld [vmem:[%s1824_s1 + $0x128] sm:$0xff]   ;;  %v1472_v57 = vld [vmem:[%s1824_s1 + $0x1e0] sm:$0xff]  }
  0x1a   : > { %1301 = vmatprep.subr.bf16.mxu0 %v1441_v16  ;;  %v1465_v51 = vld [vmem:[%s1824_s1 + $0x1b0] sm:$0xff]   ;;  %v1469_v55 = vld [vmem:[%s1824_s1 + $0x1a8] sm:$0xff]   ;;  %v1471_v58 = vld [vmem:[%s1824_s1 + $0x120] sm:$0xff]  }
  0x1b   : > { %1322 = vmatpush3.bf16.msra.mxu1 %v1440_v15  ;;  %v384_v47 = vcombine.high %v382_v43, %v382_v43  ;;  %882 = vmatprep.mubr.bf16.mxu0 %v383_v46  ;;  %v1473_v59 = vld [vmem:[%s1824_s1 + $0x1a0] sm:$0xff]   ;;  %v1474_v60 = vld [vmem:[%s1824_s1 + $0x158] sm:$0xff]   ;;  %v1478_v0 = vld [vmem:[%s1824_s1 + $0x150] sm:$0xff]  }
  0x1c   : > { %1323 = vmatprep.subr.bf16.mxu1 %v1443_v18  ;;  %v1476_v61 = vld [vmem:[%s1824_s1 + $0x1d8] sm:$0xff]   ;;  %v1480_v1 = vld [vmem:[%s1824_s1 + $0x1d0] sm:$0xff]   ;;  %v1482_v4 = vld [vmem:[%s1824_s1 + $0x148] sm:$0xff]  }
  0x1d   : > { %1302 = vmatpush3.bf16.msra.mxu0 %v1442_v17  ;;  %922 = vmatprep.mubr.bf16.mxu1 %v384_v47  ;;  %v1475_v62 = vld [vmem:[%s1824_s1 + $0x118] sm:$0xff]   ;;  %v1479_v2 = vld [vmem:[%s1824_s1 + $0x110] sm:$0xff]   ;;  %v1484_v5 = vld [vmem:[%s1824_s1 + $0x1c8] sm:$0xff]  }
  0x1e   : > { %1303 = vmatprep.subr.bf16.mxu0 %v1445_v20  ;;  %v1477_v63 = vld [vmem:[%s1824_s1 + $0x198] sm:$0xff]   ;;  %v1481_v3 = vld [vmem:[%s1824_s1 + $0x190] sm:$0xff]   ;;  %v1483_v6 = vld [vmem:[%s1824_s1 + $0x108] sm:$0xff]  }
  0x1f   : > { %1324 = vmatpush3.bf16.msra.mxu1 %v1444_v19  ;;  %v1485_v7 = vld [vmem:[%s1824_s1 + $0x188] sm:$0xff]   ;;  %v1486_v9 = vld [vmem:[%s1824_s1 + $0x140] sm:$0xff]   ;;  %v1491_v18 = vld [vmem:[%s1824_s1 + $0x238] sm:$0xff]   ;;  %v1510_v19 = vmov 0.0  }
  0x20   : > { %1325 = vmatprep.subr.bf16.mxu1 %v1447_v22  ;;  %v212_v8 = vld [vmem:[%s1645_s30 + $0x8] sm:$0xff]  ;;  %v1488_v12 = vld [vmem:[%s1824_s1 + $0x1c0] sm:$0xff]   ;;  %v1492_v20 = vld [vmem:[%s1824_s1 + $0x230] sm:$0xff]  }
  0x21   : > { %1304 = vmatpush3.bf16.msra.mxu0 %v1446_v21  ;;  %v392_v10 = vrot.slane %v212_v8, %v1666_v41  ;;  %v385_v11 = vcombine.high %v212_v8, %v212_v8  ;;  %v1487_v15 = vld [vmem:[%s1824_s1 + $0x100] sm:$0xff]   ;;  %v1493_v21 = vld [vmem:[%s1824_s1 + $0x228] sm:$0xff]   ;;  %v1217_v27 = vld.sshfl [vmem:[%s1645_s30 + $0x10] sm:$0x3 pattern:$0x76325410] }
  0x22   : > { %1305 = vmatprep.subr.bf16.mxu0 %v1449_v24  ;;  %v1489_v16 = vld [vmem:[%s1824_s1 + $0x180] sm:$0xff]   ;;  %v1496_v24 = vld [vmem:[%s1824_s1 + $0x210] sm:$0xff]  }
  0x23   : > { %1326 = vmatpush3.bf16.msra.mxu1 %v1448_v23  ;;  %v400_v13 = vcombine.high %v392_v10, %v392_v10  ;;  %v399_v14 = vrot.slane %v385_v11, %v1666_v41  ;;  %v1494_v22 = vld [vmem:[%s1824_s1 + $0x220] sm:$0xff]   ;;  %v1495_v23 = vld [vmem:[%s1824_s1 + $0x218] sm:$0xff]  }
  0x24   : > { %1327 = vmatprep.subr.bf16.mxu1 %v1451_v26  ;;  %v1498_v26 = vld [vmem:[%s1824_s1 + $0x200] sm:$0xff]  }
  0x25   : > { %1306 = vmatpush3.bf16.msra.mxu0 %v1450_v25  ;;  %v401_v17 = vcombine.high %v399_v14, %v399_v14  ;;  %v1497_v25 = vld [vmem:[%s1824_s1 + $0x208] sm:$0xff]   ;;  %v1216_v46 = vld [vmem:[%s1825_s2] ss:$0 sm:$0xff] }
  0x26   : > { %1307 = vmatprep.subr.bf16.mxu0 %v1453_v29 }
  0x27   : > { %1328 = vmatpush3.bf16.msra.mxu1 %v1452_v28 }
  0x28   : > { %1329 = vmatprep.subr.bf16.mxu1 %v1455_v31 }
  0x29   : > { %1308 = vmatpush3.bf16.msra.mxu0 %v1454_v30 }
  0x2a   : > { %1337 = vmatprep.subr.bf16.mxu0 %v1457_v37 }
  0x2b   : > { %1330 = vmatpush3.bf16.msra.mxu1 %v1456_v34 }
  0x2c   : > { %1359 = vmatprep.subr.bf16.mxu1 %v1460_v40  ;;  %883 = vmatmul.mubr.bf16.vlgmr.msra.gmra.mxu0 %v375_v42 }
  0x2d   : > { %1338 = vmatpush3.bf16.msra.mxu0 %v1459_v44  ;;  %962 = vmatprep.mubr.bf16.mxu0 %v400_v13 }
  0x2e   : > { %923 = vmatmul.mubr.bf16.vlgmr.msra.gmra.mxu1 %v382_v43  ;;  %1339 = vmatprep.subr.bf16.mxu0 %v1462_v48 }
  0x2f   : > { %1360 = vmatpush3.bf16.msra.mxu1 %v1461_v45  ;;  %1002 = vmatprep.mubr.bf16.mxu1 %v401_v17 }
  0x30   : > { %1361 = vmatprep.subr.bf16.mxu1 %v1464_v49 }
  0x31   : > { %1340 = vmatpush3.bf16.msra.mxu0 %v1463_v50 }
  0x32   : > { %1341 = vmatprep.subr.bf16.mxu0 %v1466_v52 }
  0x33   : > { %1362 = vmatpush3.bf16.msra.mxu1 %v1465_v51 }
  0x34   : > { %1363 = vmatprep.subr.bf16.mxu1 %v1468_v53 }
  0x35   : > { %1342 = vmatpush3.bf16.msra.mxu0 %v1467_v54 }
  0x36   : > { %1343 = vmatprep.subr.bf16.mxu0 %v1470_v56 }
  0x37   : > { %1364 = vmatpush3.bf16.msra.mxu1 %v1469_v55 }
  0x38   : > { %1365 = vmatprep.subr.bf16.mxu1 %v1472_v57 }
  0x39   : > { %1344 = vmatpush3.bf16.msra.mxu0 %v1471_v58 }
  0x3a   : > { %1345 = vmatprep.subr.bf16.mxu0 %v1474_v60 }
  0x3b   : > { %1366 = vmatpush3.bf16.msra.mxu1 %v1473_v59 }
  0x3c   : > { %1367 = vmatprep.subr.bf16.mxu1 %v1476_v61 }
  0x3d   : > { %1346 = vmatpush3.bf16.msra.mxu0 %v1475_v62 }
  0x3e   : > { %1347 = vmatprep.subr.bf16.mxu0 %v1478_v0 }
  0x3f   : > { %1368 = vmatpush3.bf16.msra.mxu1 %v1477_v63 }
  0x40   : > { %1369 = vmatprep.subr.bf16.mxu1 %v1480_v1 }
  0x41   : > { %1348 = vmatpush3.bf16.msra.mxu0 %v1479_v2 }
  0x42   : > { %1349 = vmatprep.subr.bf16.mxu0 %v1482_v4 }
  0x43   : > { %1370 = vmatpush3.bf16.msra.mxu1 %v1481_v3 }
  0x44   : > { %1371 = vmatprep.subr.bf16.mxu1 %v1484_v5 }
  0x45   : > { %1350 = vmatpush3.bf16.msra.mxu0 %v1483_v6 }
  0x46   : > { %1351 = vmatprep.subr.bf16.mxu0 %v1486_v9 }
  0x47   : > { %1372 = vmatpush3.bf16.msra.mxu1 %v1485_v7 }
  0x48   : > { %1373 = vmatprep.subr.bf16.mxu1 %v1488_v12  ;;  %v1091_v12 = vsub.s32 0, %v1653_v32 }
  0x49   : > { %1352 = vmatpush3.bf16.msra.mxu0 %v1487_v15 }
  0x4a   : > { %1390 = vmatprep.subr.bf16.mxu0 %v1510_v19 }
  0x4b   : > { %1374 = vmatpush3.bf16.msra.mxu1 %v1489_v16 }
  0x4c   : > { %963 = vmatmul.mubr.bf16.vlgmr.msra.gmra.mxu0 %v392_v10 }
  0x4d   : > { %1391 = vmatpush3.bf16.msra.mxu0 %v1491_v18  ;;  %1406 = vmatprep.mubr.msk.bf16.mxu0 %vm1511_vm0, %v1510_v19 }
  0x4e   : > { %1003 = vmatmul.mubr.bf16.vlgmr.msra.gmra.mxu1 %v399_v14  ;;  %1392 = vmatprep.subr.bf16.mxu0 %v1510_v19 }
  0x51   : > { %1393 = vmatpush3.bf16.msra.mxu0 %v1492_v20 }
  0x52   : > { %1394 = vmatprep.subr.bf16.mxu0 %v1510_v19 }
  0x55   : > { %1395 = vmatpush3.bf16.msra.mxu0 %v1493_v21 }
  0x56   : > { %1396 = vmatprep.subr.bf16.mxu0 %v1510_v19 }
  0x59   : > { %1397 = vmatpush3.bf16.msra.mxu0 %v1494_v22 }
  0x5a   : > { %1398 = vmatprep.subr.bf16.mxu0 %v1510_v19 }
  0x5d   : > { %1399 = vmatpush3.bf16.msra.mxu0 %v1495_v23 }
  0x5e   : > { %1400 = vmatprep.subr.bf16.mxu0 %v1510_v19 }
  0x61   : > { %1401 = vmatpush3.bf16.msra.mxu0 %v1496_v24 }
  0x62   : > { %1402 = vmatprep.subr.bf16.mxu0 %v1510_v19 }
  0x65   : > { %1403 = vmatpush3.bf16.msra.mxu0 %v1497_v25 }
  0x66   : > { %1404 = vmatprep.subr.bf16.mxu0 %v1510_v19 }
  0x69   : > { %1405 = vmatpush3.bf16.msra.mxu0 %v1498_v26 }
  0x6c   : > { %1407 = vmatmul.mubr.bf16.vlgmr.msra.gmra.mxu0 %v1217_v27 }
  0xec   : > { %v1309_v28 = vpop.f32.mrf.mxu0 }
  0xee   : > { %v1331_v29 = vpop.f32.mrf.mxu1  ;;  %v1310_v30 = vpop.f32.mrf.mxu0 }
  0xef   : > { %v1311_v45 = vadd.f32 %v1310_v30, %v1309_v28 }
  0xf0   : > { %v1332_v31 = vpop.f32.mrf.mxu1  ;;  %v1312_v33 = vpop.f32.mrf.mxu0 }
  0xf1   : > { %v885_v47 = vadd.f32 %v1311_v45, %v1216_v46  ;;  %v1333_v48 = vadd.f32 %v1332_v31, %v1331_v29 }
  0xf2   : > { %v1334_v34 = vpop.f32.mrf.mxu1  ;;  %v1313_v35 = vpop.f32.mrf.mxu0 }
  0xf3   : > { %v925_v50 = vadd.f32 %v1333_v48, %v885_v47 }
  0xf4   : > { %v1335_v36 = vpop.f32.mrf.mxu1 }
 0x10c   : > { %v1353_v37 = vpop.f32.mrf.mxu0 }
 0x10e   : > { %v1375_v38 = vpop.f32.mrf.mxu1  ;;  %v1354_v39 = vpop.f32.mrf.mxu0 }
 0x10f   : > { %v1355_v49 = vadd.f32 %v1354_v39, %v1353_v37 }
 0x110   : > { %v1376_v40 = vpop.f32.mrf.mxu1  ;;  %v1356_v41 = vpop.f32.mrf.mxu0 }
 0x111   : > { %v965_v51 = vadd.f32 %v1355_v49, %v925_v50  ;;  %v1377_v52 = vadd.f32 %v1376_v40, %v1375_v38 }
 0x112   : > { %v1378_v42 = vpop.f32.mrf.mxu1  ;;  %v1357_v43 = vpop.f32.mrf.mxu0 }
 0x113   : > { %v1005_v53 = vadd.f32 %v1377_v52, %v965_v51  ;;  %v1290_v43 = vld [vmem:[%s205_s5] ss:$0 sm:$0xff] }
 0x114   : > { %v1379_v44 = vpop.f32.mrf.mxu1 }
 0x12c   : > { %v1044_v54 = vpop.f32.mrf.mxu0 }
 0x12d   : > { %v1045_v55 = vadd.f32 %v1044_v54, %v1005_v53 }
 0x12e   : > { %v1408_v56 = vpop.f32.mrf.mxu0 }
 0x12f   : > { %v1051_v57 = vsel %vm1050_vm1, %v1045_v55, 0.0 }
 0x130   : > { %v1052_v58 = vrot.slane %v1051_v57, 4  ;;  %v1047_v59 = vpop.f32.mrf.mxu0 }
 0x132   : > { %v1053_v60 = vadd.f32 %v1052_v58, %v1051_v57  ;;  %v1409_v61 = vpop.f32.mrf.mxu0 }
 0x134   : > { %v1054_v62 = vrot.slane %v1053_v60, 2 }
 0x136   : > { %v1055_v63 = vadd.f32 %v1054_v62, %v1053_v60 }
 0x138   : > { %v1056_v0 = vrot.slane %v1055_v63, 1 }
 0x13a   : > { %v1057_v1 = vadd.f32 %v1056_v0, %v1055_v63 }
 0x13c   : > { %1067 = vrot.lane.b32.xlu1 %v1057_v1, %s1512_s25  ;;  %1059 = vrot.lane.b32.xlu0 %v1057_v1, %s1513_s26 }
 0x140   : > { %1063 = vrot.lane.b32.xlu0 %v1057_v1, %s1514_s27 }
 0x1ae   : > { %v1060_v2 = vpop.permute.xlu0 %1059  ;;  %v1068_v6 = vpop.permute.xlu1 %1067 }
 0x1af   : > { %v1062_v3 = vadd.f32 %v1060_v2, %v1057_v1 }
 0x1b2   : > { %v1064_v4 = vpop.permute.xlu0 %1063 }
 0x1b3   : > { %v1066_v5 = vadd.f32 %v1064_v4, %v1062_v3 }
 0x1b5   : > { %v1070_v7 = vadd.f32 %v1068_v6, %v1066_v5 }
 0x1b7   : > { %v1072_v8 = vmul.f32 0.0625, %v1070_v7 }
 0x1b9   : > { %1077 = vrot.lane.b32.xlu0 %v1072_v8, %s1514_s27  ;;  %1074 = vrot.lane.b32.xlu1 %v1072_v8, %s1512_s25 }
 0x1bd   : > { %1080 = vrot.lane.b32.xlu1 %v1072_v8, %s1513_s26 }
 0x22b   : > { %v1075_v9 = vpop.permute.xlu1 %1074  ;;  %v1078_v10 = vpop.permute.xlu0 %1077 }
 0x22c   : > { %v1084_v11 = vsel %vm1083_vm2, %v1072_v8, %v1075_v9 }
 0x22d   : > { %v1086_v13 = vsel %vm1085_vm3, %v1084_v11, %v1078_v10 }
 0x22f   : > { %v1081_v14 = vpop.permute.xlu1 %1080 }
 0x230   : > { %v1088_v15 = vsel %vm1087_vm4, %v1086_v13, %v1081_v14 }
 0x231   : > { %v1092_v16 = vrot.slane %v1088_v15, %v1091_v12 }
 0x233   : > { %v1093_v17 = vsub.f32 %v1045_v55, %v1092_v16 }
 0x235   : > { %v1094_v18 = vmul.f32 %v1093_v17, %v1093_v17 }
 0x237   : > { %v1095_v19 = vsel %vm1050_vm1, %v1094_v18, 0.0 }
 0x238   : > { %v1096_v20 = vrot.slane %v1095_v19, 4 }
 0x23a   : > { %v1097_v21 = vadd.f32 %v1096_v20, %v1095_v19 }
 0x23c   : > { %v1098_v22 = vrot.slane %v1097_v21, 2 }
 0x23e   : > { %v1099_v23 = vadd.f32 %v1098_v22, %v1097_v21 }
 0x240   : > { %v1100_v24 = vrot.slane %v1099_v23, 1 }
 0x242   : > { %v1101_v25 = vadd.f32 %v1100_v24, %v1099_v23 }
 0x244   : > { %1107 = vrot.lane.b32.xlu1 %v1101_v25, %s1514_s27  ;;  %1103 = vrot.lane.b32.xlu0 %v1101_v25, %s1513_s26 }
 0x248   : > { %1111 = vrot.lane.b32.xlu0 %v1101_v25, %s1512_s25 }
 0x2b6   : > { %v1104_v32 = vpop.permute.xlu0 %1103  ;;  %v1108_v27 = vpop.permute.xlu1 %1107 }
 0x2b7   : > { %v1106_v26 = vadd.f32 %v1104_v32, %v1101_v25 }
 0x2b9   : > { %v1110_v28 = vadd.f32 %v1108_v27, %v1106_v26 }
 0x2ba   : > { %v1112_v29 = vpop.permute.xlu0 %1111 }
 0x2bb   : > { %v1114_v30 = vadd.f32 %v1112_v29, %v1110_v28 }
 0x2bd   : > { %v1115_v31 = vmul.f32 0.0625, %v1114_v30 }
 0x2bf   : > { %v1116_v33 = vadd.f32 1e-05, %v1115_v31 }
 0x2c1   : > { %1499 = vrsqrt.f32 %v1116_v33 }
 0x2ce   : > { %v1500_v34 = vpop.eup %1499 }
 0x2cf   : > { %1122 = vrot.lane.b32.xlu0 %v1500_v34, %s1514_s27  ;;  %1119 = vrot.lane.b32.xlu1 %v1500_v34, %s1512_s25 }
 0x2d3   : > { %1125 = vrot.lane.b32.xlu1 %v1500_v34, %s1513_s26 }
 0x341   : > { %v1120_v35 = vpop.permute.xlu1 %1119  ;;  %v1123_v36 = vpop.permute.xlu0 %1122 }
 0x342   : > { %v1128_v37 = vsel %vm1083_vm2, %v1500_v34, %v1120_v35 }
 0x343   : > { %v1129_v38 = vsel %vm1085_vm3, %v1128_v37, %v1123_v36 }
 0x345   : > { %v1126_v39 = vpop.permute.xlu1 %1125 }
 0x346   : > { %v1130_v40 = vsel %vm1087_vm4, %v1129_v38, %v1126_v39 }
 0x347   : > { %v1134_v41 = vrot.slane %v1130_v40, %v1091_v12 }
 0x349   : > { %v1135_v42 = vmul.f32 %v1134_v41, %v1093_v17 }
 0x34b   : > { %v1136_v44 = vmax.f32 %v1135_v42, 0.0 }
 0x34d   : > { %v1144_v45 = vadd.f32 %v1290_v43, %v1136_v44 }
 0x34f   : > { %v1145_v46 = vpack.c.bf16 %v1144_v45, %v1144_v45 }
 0x351   : > { %1146 = vst [vmem:[%s209_s9] sm:$0x3] %v1145_v46 }
 0x352 PF: > { %s14_s15 = sadd.s32 1, %s1507_s15  }
 0x353   : > { %p11_p4 = scmp.ge.s32.totalorder %s14_s15, 4  }
 0x355   :  { %13 = sbr.rel (!%p11_p4) target bundleno = 1 (0x1), region = 69 }

// kernel: vector_field_unet_forward.12
= control target key start
LH: loop header
LB: loop body
LE: loop exit
PB: predicated region body
PF: predicated region fallthrough
CT: control target
= control target key end

     0   :  { %s1067_s15 = smov 0   ;;  %s1237_s0 = inlined_call_operand.vmem [shape: bf16[2,16,576], index: 0, kind: input, shape index: {}]   ;;  %s1238_s1 = inlined_call_operand.vmem [shape: bf16[576,64], index: 1, kind: input, shape index: {}]   ;;  %s1239_s2 = inlined_call_operand.vmem [shape: f32[1,64], index: 2, kind: input, shape index: {}]   ;;  %s1240_s3 = inlined_call_operand.vmem [shape: f32[2,1,64], index: 3, kind: input, shape index: {}]   ;;  %s1241_s4 = inlined_call_operand.vmem [shape: bf16[2,16,64], index: 4, kind: output, shape index: {}]  }
   0x1 LB: > { %s844_s16 = sadd.s32 4294967295, %s1032_s15   ;;  %p848_p0 = scmp.ge.s32.totalorder %s1032_s15, 1  ;;  %s1032_s15 = sphi %s1067_s15, %s14_s15  }
   0x2   : > { %p170_p1 = scmp.lt.s32.totalorder %s1032_s15, 3 }
   0x4   : > { %p171_p2 = pnand %p848_p0, %p170_p1 }
   0x5   : > { %p199_p3 = scmp.lt.s32.totalorder (!%p171_p2), %s844_s16, 1  ;;  %s1036_s23 = smov (!%p171_p2), 80  }
   0x6   : > { %174 = sbr.rel (%p171_p2) target bundleno = 810 (0x32a), region = 36  ;;  %s1037_s24 = smov (!%p171_p2), 112  }
   0x7   : > { %s1038_s25 = smov (!%p171_p2), 96   ;;  %s1039_s26 = smov (!%p171_p2), 32  }
   0x8   : > { %s1040_s27 = smov (!%p171_p2), 16   ;;  %s1041_s28 = smov (!%p171_p2), 48  }
   0xb   : > { %v981_v0 = vld [vmem:[%s1238_s1 + $0x78] sm:$0xff]   ;;  %v985_v4 = vld [vmem:[%s1238_s1 + $0x70] sm:$0xff]   ;;  %v989_v8 = vld [vmem:[%s1238_s1 + $0x68] sm:$0xff]   ;;  %s1243_s16 = smov (!%p199_p3, %s844_s16), 1  ;;  %v1034_v33 = vmov 0.0   ;;  %vm1035_vm0 = vmmov 0  }
   0xc   : > { %v982_v1 = vld [vmem:[%s1238_s1 + $0x38] sm:$0xff]   ;;  %903 = vmatprep.subr.bf16.mxu0 %v981_v0  ;;  %v986_v5 = vld [vmem:[%s1238_s1 + $0x30] sm:$0xff]   ;;  %v990_v9 = vld [vmem:[%s1238_s1 + $0x28] sm:$0xff]   ;;  %s964_s19 = smul.u32 40, %s1243_s16  ;;  %vm539_vm1 = vcmask 523264   ;;  %vm700_vm2 = vcmask 130048   ;;  %s206_s5 = scalar_lea.vmem %s1240_s3, %s1243_s16 }
   0xd   : > { %v983_v2 = vld [vmem:[%s1238_s1 + $0xf8] sm:$0xff]   ;;  %904 = vmatpush3.bf16.msra.mxu0 %v982_v1  ;;  %v987_v6 = vld [vmem:[%s1238_s1 + $0xf0] sm:$0xff]   ;;  %v991_v10 = vld [vmem:[%s1238_s1 + $0xe8] sm:$0xff]   ;;  %vm702_vm3 = vcmask 261120   ;;  %vm704_vm4 = vcmask 392192   ;;  %s900_s6 = sshll.u32 %s1243_s16, 3 }
   0xe   : > { %v984_v3 = vld [vmem:[%s1238_s1 + $0xb8] sm:$0xff]   ;;  %925 = vmatprep.subr.bf16.mxu1 %v983_v2  ;;  %905 = vmatprep.subr.bf16.mxu0 %v985_v4  ;;  %v988_v7 = vld [vmem:[%s1238_s1 + $0xb0] sm:$0xff]   ;;  %v992_v11 = vld [vmem:[%s1238_s1 + $0xa8] sm:$0xff]   ;;  %s1172_s30 = scalar_lea.vmem %s1237_s0, %s964_s19  ;;  %s211_s9 = scalar_lea.vmem %s1241_s4, %s900_s6  ;;  %vm777_vm5 = vcmask 519168  }
   0xf   : > { %926 = vmatpush3.bf16.msra.mxu1 %v984_v3  ;;  %v993_v12 = vld [vmem:[%s1238_s1 + $0x60] sm:$0xff]   ;;  %v997_v16 = vld [vmem:[%s1238_s1 + $0x58] sm:$0xff]   ;;  %v1001_v20 = vld [vmem:[%s1238_s1 + $0x50] sm:$0xff]  }
  0x10   : > { %927 = vmatprep.subr.bf16.mxu1 %v987_v6  ;;  %v994_v13 = vld [vmem:[%s1238_s1 + $0x20] sm:$0xff]   ;;  %v998_v17 = vld [vmem:[%s1238_s1 + $0x18] sm:$0xff]   ;;  %v1002_v21 = vld [vmem:[%s1238_s1 + $0x10] sm:$0xff]  }
  0x11   : > { %906 = vmatpush3.bf16.msra.mxu0 %v986_v5  ;;  %v995_v14 = vld [vmem:[%s1238_s1 + $0xe0] sm:$0xff]   ;;  %v999_v18 = vld [vmem:[%s1238_s1 + $0xd8] sm:$0xff]   ;;  %v1003_v22 = vld [vmem:[%s1238_s1 + $0xd0] sm:$0xff]  }
  0x12   : > { %907 = vmatprep.subr.bf16.mxu0 %v989_v8  ;;  %v996_v15 = vld [vmem:[%s1238_s1 + $0xa0] sm:$0xff]   ;;  %v1000_v19 = vld [vmem:[%s1238_s1 + $0x98] sm:$0xff]   ;;  %v1004_v23 = vld [vmem:[%s1238_s1 + $0x90] sm:$0xff]  }
  0x13   : > { %928 = vmatpush3.bf16.msra.mxu1 %v988_v7  ;;  %v1005_v24 = vld [vmem:[%s1238_s1 + $0x48] sm:$0xff]   ;;  %v1009_v28 = vld [vmem:[%s1238_s1 + $0x40] sm:$0xff]   ;;  %v1019_v37 = vld [vmem:[%s1238_s1 + $0x118] sm:$0xff]  }
  0x14   : > { %929 = vmatprep.subr.bf16.mxu1 %v991_v10  ;;  %v1006_v25 = vld [vmem:[%s1238_s1 + $0x8] sm:$0xff]   ;;  %v1010_v29 = vld [vmem:[%s1238_s1] sm:$0xff]   ;;  %v1020_v38 = vld [vmem:[%s1238_s1 + $0x110] sm:$0xff]  }
  0x15   : > { %908 = vmatpush3.bf16.msra.mxu0 %v990_v9  ;;  %v1007_v26 = vld [vmem:[%s1238_s1 + $0xc8] sm:$0xff]   ;;  %v1011_v30 = vld [vmem:[%s1238_s1 + $0xc0] sm:$0xff]  }
  0x16   : > { %909 = vmatprep.subr.bf16.mxu0 %v993_v12  ;;  %v1008_v27 = vld [vmem:[%s1238_s1 + $0x88] sm:$0xff]   ;;  %v1012_v31 = vld [vmem:[%s1172_s30] ss:$20 sps:$4 sm:$0xff]   ;;  %v1014_v32 = vld [vmem:[%s1172_s30 + $0x4] ss:$20 sps:$4 sm:$0xff]  }
  0x17   : > { %930 = vmatpush3.bf16.msra.mxu1 %v992_v11  ;;  %v1015_v34 = vld [vmem:[%s1238_s1 + $0x80] sm:$0xff]   ;;  %575 = vmatprep.mubr.bf16.mxu0 %v1014_v32  ;;  %v1016_v35 = vld [vmem:[%s1172_s30 + $0x8] ss:$20 sps:$4 sm:$0xff]  }
  0x18   : > { %931 = vmatprep.subr.bf16.mxu1 %v995_v14  ;;  %v1018_v36 = vld [vmem:[%s1172_s30 + $0xc] ss:$20 sps:$4 sm:$0xff]   ;;  %v1023_v41 = vld [vmem:[%s1172_s30 + $0x10] ss:$20 sps:$4 sm:$0xff]  }
  0x19   : > { %910 = vmatpush3.bf16.msra.mxu0 %v994_v13  ;;  %616 = vmatprep.mubr.bf16.mxu1 %v1018_v36  ;;  %v1021_v39 = vld [vmem:[%s1238_s1 + $0x108] sm:$0xff]   ;;  %v1022_v40 = vld [vmem:[%s1238_s1 + $0x100] sm:$0xff]  }
  0x1a   : > { %911 = vmatprep.subr.bf16.mxu0 %v997_v16  ;;  %v852_v50 = vld [vmem:[%s1239_s2] ss:$0 sm:$0xff] }
  0x1b   : > { %932 = vmatpush3.bf16.msra.mxu1 %v996_v15 }
  0x1c   : > { %933 = vmatprep.subr.bf16.mxu1 %v999_v18 }
  0x1d   : > { %912 = vmatpush3.bf16.msra.mxu0 %v998_v17  ;;  %v706_v17 = vlaneseq }
  0x1e   : > { %913 = vmatprep.subr.bf16.mxu0 %v1001_v20 }
  0x1f   : > { %934 = vmatpush3.bf16.msra.mxu1 %v1000_v19  ;;  %v707_v18 = vshrl.u32 %v706_v17, 7 }
  0x20   : > { %935 = vmatprep.subr.bf16.mxu1 %v1003_v22 }
  0x21   : > { %914 = vmatpush3.bf16.msra.mxu0 %v1002_v21  ;;  %v708_v22 = vsub.s32 0, %v707_v18 }
  0x22   : > { %915 = vmatprep.subr.bf16.mxu0 %v1005_v24 }
  0x23   : > { %936 = vmatpush3.bf16.msra.mxu1 %v1004_v23 }
  0x24   : > { %937 = vmatprep.subr.bf16.mxu1 %v1007_v26 }
  0x25   : > { %916 = vmatpush3.bf16.msra.mxu0 %v1006_v25 }
  0x26   : > { %917 = vmatprep.subr.bf16.mxu0 %v1009_v28 }
  0x27   : > { %938 = vmatpush3.bf16.msra.mxu1 %v1008_v27 }
  0x28   : > { %939 = vmatprep.subr.bf16.mxu1 %v1011_v30 }
  0x29   : > { %918 = vmatpush3.bf16.msra.mxu0 %v1010_v29 }
  0x2a   : > { %952 = vmatprep.subr.bf16.mxu0 %v1034_v33 }
  0x2b   : > { %940 = vmatpush3.bf16.msra.mxu1 %v1015_v34 }
  0x2c   : > { %576 = vmatmul.mubr.bf16.vlgmr.msra.gmra.mxu0 %v1012_v31 }
  0x2d   : > { %960 = vmatprep.mubr.msk.bf16.mxu0 %vm1035_vm0, %v1034_v33  ;;  %953 = vmatpush3.bf16.msra.mxu0 %v1019_v37 }
  0x2e   : > { %617 = vmatmul.mubr.bf16.vlgmr.msra.gmra.mxu1 %v1016_v35  ;;  %954 = vmatprep.subr.bf16.mxu0 %v1034_v33 }
  0x31   : > { %955 = vmatpush3.bf16.msra.mxu0 %v1020_v38 }
  0x32   : > { %956 = vmatprep.subr.bf16.mxu0 %v1034_v33 }
  0x35   : > { %957 = vmatpush3.bf16.msra.mxu0 %v1021_v39 }
  0x36   : > { %958 = vmatprep.subr.bf16.mxu0 %v1034_v33 }
  0x39   : > { %959 = vmatpush3.bf16.msra.mxu0 %v1022_v40 }
  0x3c   : > { %961 = vmatmul.mubr.msk.bf16.vlgmr.msra.gmra.mxu0 %vm539_vm1, %v1023_v41 }
  0xec   : > { %v919_v42 = vpop.f32.mrf.mxu0 }
  0xee   : > { %v920_v43 = vpop.f32.mrf.mxu0  ;;  %v941_v44 = vpop.f32.mrf.mxu1 }
  0xef   : > { %v921_v49 = vadd.f32 %v920_v43, %v919_v42 }
  0xf0   : > { %v922_v45 = vpop.f32.mrf.mxu0  ;;  %v942_v46 = vpop.f32.mrf.mxu1 }
  0xf1   : > { %v578_v53 = vadd.f32 %v921_v49, %v852_v50  ;;  %v943_v54 = vadd.f32 %v942_v46, %v941_v44 }
  0xf2   : > { %v923_v47 = vpop.f32.mrf.mxu0  ;;  %v944_v48 = vpop.f32.mrf.mxu1 }
  0xf3   : > { %v924_v51 = vadd.f32 %v923_v47, %v922_v45  ;;  %v619_v58 = vadd.f32 %v943_v54, %v578_v53 }
  0xf4   : > { %v945_v52 = vpop.f32.mrf.mxu1 }
  0xf5   : > { %v581_v55 = vadd.f32 %v924_v51, %v852_v50  ;;  %v946_v56 = vadd.f32 %v945_v52, %v944_v48 }
  0xf7   : > { %v622_v61 = vadd.f32 %v946_v56, %v581_v55 }
  0xfc   : > { %v659_v57 = vpop.f32.mrf.mxu0 }
  0xfd   : > { %v660_v60 = vadd.f32 %v659_v57, %v619_v58  ;;  %v895_v58 = vld [vmem:[%s206_s5] ss:$0 sm:$0xff] }
  0xfe   : > { %v962_v59 = vpop.f32.mrf.mxu0 }
  0xff   : > { %v666_v1 = vsel %vm539_vm1, %v660_v60, 0.0 }
 0x100   : > { %v662_v62 = vpop.f32.mrf.mxu0 }
 0x101   : > { %v663_v63 = vadd.f32 %v662_v62, %v622_v61 }
 0x102   : > { %v963_v0 = vpop.f32.mrf.mxu0 }
 0x103   : > { %v667_v2 = vsel %vm539_vm1, %v663_v63, 0.0 }
 0x104   : > { %v668_v3 = vadd.f32 %v667_v2, %v666_v1 }
 0x106   : > { %v669_v4 = vrot.slane %v668_v3, 4 }
 0x108   : > { %v670_v5 = vadd.f32 %v669_v4, %v668_v3 }
 0x10a   : > { %v671_v6 = vrot.slane %v670_v5, 2 }
 0x10c   : > { %v672_v7 = vadd.f32 %v671_v6, %v670_v5 }
 0x10e   : > { %v673_v8 = vrot.slane %v672_v7, 1 }
 0x110   : > { %v674_v9 = vadd.f32 %v673_v8, %v672_v7 }
 0x112   : > { %684 = vrot.lane.b32.xlu1 %v674_v9, %s1036_s23  ;;  %676 = vrot.lane.b32.xlu0 %v674_v9, %s1037_s24 }
 0x116   : > { %680 = vrot.lane.b32.xlu0 %v674_v9, %s1038_s25 }
 0x184   : > { %v677_v10 = vpop.permute.xlu0 %676  ;;  %v685_v14 = vpop.permute.xlu1 %684 }
 0x185   : > { %v679_v11 = vadd.f32 %v677_v10, %v674_v9 }
 0x188   : > { %v681_v12 = vpop.permute.xlu0 %680 }
 0x189   : > { %v683_v13 = vadd.f32 %v681_v12, %v679_v11 }
 0x18b   : > { %v687_v15 = vadd.f32 %v685_v14, %v683_v13 }
 0x18d   : > { %v689_v16 = vmul.f32 0.015625, %v687_v15 }
 0x18f   : > { %694 = vrot.lane.b32.xlu0 %v689_v16, %s1039_s26  ;;  %691 = vrot.lane.b32.xlu1 %v689_v16, %s1040_s27 }
 0x193   : > { %697 = vrot.lane.b32.xlu1 %v689_v16, %s1041_s28 }
 0x201   : > { %v692_v19 = vpop.permute.xlu1 %691  ;;  %v695_v20 = vpop.permute.xlu0 %694 }
 0x202   : > { %v701_v21 = vsel %vm700_vm2, %v689_v16, %v692_v19 }
 0x203   : > { %v703_v23 = vsel %vm702_vm3, %v701_v21, %v695_v20 }
 0x205   : > { %v698_v24 = vpop.permute.xlu1 %697 }
 0x206   : > { %v705_v25 = vsel %vm704_vm4, %v703_v23, %v698_v24 }
 0x207   : > { %v709_v26 = vrot.slane %v705_v25, %v708_v22 }
 0x209   : > { %v710_v27 = vsub.f32 %v660_v60, %v709_v26  ;;  %v711_v28 = vsub.f32 %v663_v63, %v709_v26 }
 0x20b   : > { %v712_v29 = vmul.f32 %v710_v27, %v710_v27  ;;  %v713_v30 = vmul.f32 %v711_v28, %v711_v28 }
 0x20d   : > { %v714_v31 = vsel %vm539_vm1, %v712_v29, 0.0  ;;  %v715_v32 = vsel %vm539_vm1, %v713_v30, 0.0 }
 0x20e   : > { %v716_v33 = vadd.f32 %v715_v32, %v714_v31 }
 0x210   : > { %v717_v34 = vrot.slane %v716_v33, 4 }
 0x212   : > { %v718_v35 = vadd.f32 %v717_v34, %v716_v33 }
 0x214   : > { %v719_v36 = vrot.slane %v718_v35, 2 }
 0x216   : > { %v720_v37 = vadd.f32 %v719_v36, %v718_v35 }
 0x218   : > { %v721_v38 = vrot.slane %v720_v37, 1 }
 0x21a   : > { %v722_v39 = vadd.f32 %v721_v38, %v720_v37 }
 0x21c   : > { %728 = vrot.lane.b32.xlu1 %v722_v39, %s1038_s25  ;;  %724 = vrot.lane.b32.xlu0 %v722_v39, %s1037_s24 }
 0x220   : > { %732 = vrot.lane.b32.xlu0 %v722_v39, %s1036_s23 }
 0x28e   : > { %v725_v40 = vpop.permute.xlu0 %724  ;;  %v729_v42 = vpop.permute.xlu1 %728 }
 0x28f   : > { %v727_v41 = vadd.f32 %v725_v40, %v722_v39 }
 0x291   : > { %v731_v43 = vadd.f32 %v729_v42, %v727_v41 }
 0x292   : > { %v733_v44 = vpop.permute.xlu0 %732 }
 0x293   : > { %v735_v45 = vadd.f32 %v733_v44, %v731_v43 }
 0x295   : > { %v736_v46 = vmul.f32 0.015625, %v735_v45 }
 0x297   : > { %v737_v47 = vadd.f32 1e-05, %v736_v46 }
 0x299   : > { %1024 = vrsqrt.f32 %v737_v47 }
 0x2a6   : > { %v1025_v48 = vpop.eup %1024 }
 0x2a7   : > { %743 = vrot.lane.b32.xlu0 %v1025_v48, %s1039_s26  ;;  %740 = vrot.lane.b32.xlu1 %v1025_v48, %s1040_s27 }
 0x2ab   : > { %746 = vrot.lane.b32.xlu1 %v1025_v48, %s1041_s28 }
 0x319   : > { %v741_v49 = vpop.permute.xlu1 %740  ;;  %v744_v50 = vpop.permute.xlu0 %743 }
 0x31a   : > { %v749_v51 = vsel %vm700_vm2, %v1025_v48, %v741_v49 }
 0x31b   : > { %v750_v52 = vsel %vm702_vm3, %v749_v51, %v744_v50 }
 0x31d   : > { %v747_v53 = vpop.permute.xlu1 %746 }
 0x31e   : > { %v751_v54 = vsel %vm704_vm4, %v750_v52, %v747_v53 }
 0x31f   : > { %v755_v55 = vrot.slane %v751_v54, %v708_v22 }
 0x321   : > { %v756_v56 = vmul.f32 %v755_v55, %v710_v27  ;;  %v757_v57 = vmul.f32 %v755_v55, %v711_v28 }
 0x323   : > { %v758_v59 = vmax.f32 %v756_v56, 0.0  ;;  %v759_v60 = vmax.f32 %v757_v57, 0.0 }
 0x325   : > { %v767_v61 = vadd.f32 %v895_v58, %v758_v59  ;;  %v768_v62 = vadd.f32 %v895_v58, %v759_v60 }
 0x327   : > { %v901_v63 = vpack.c.bf16 %v767_v61, %v767_v61  ;;  %v902_v0 = vpack.c.bf16 %v768_v62, %v768_v62 }
 0x329   : > { %778 = vst.msk [vmem:[%s211_s9] sm:$0xf] %vm777_vm5, %v901_v63  ;;  %779 = vst.msk [vmem:[%s211_s9 + $0x4] sm:$0xf] %vm777_vm5, %v902_v0 }
 0x32a PF: > { %s14_s15 = sadd.s32 1, %s1032_s15  }
 0x32b   : > { %p11_p4 = scmp.ge.s32.totalorder %s14_s15, 4  }
 0x32d   :  { %13 = sbr.rel (!%p11_p4) target bundleno = 1 (0x1), region = 69 }

// kernel: vector_field_unet_forward.13
= control target key start
LH: loop header
LB: loop body
LE: loop exit
PB: predicated region body
PF: predicated region fallthrough
CT: control target
= control target key end

     0   :  { %s868_s15 = smov 0   ;;  %s986_s0 = inlined_call_operand.vmem [shape: bf16[2,64,288], index: 0, kind: input, shape index: {}]   ;;  %s987_s1 = inlined_call_operand.vmem [shape: bf16[288,4], index: 1, kind: input, shape index: {}]   ;;  %s988_s2 = inlined_call_operand.vmem [shape: f32[1,4], index: 2, kind: input, shape index: {}]   ;;  %s989_s3 = inlined_call_operand.vmem [shape: f32[2,1,4], index: 3, kind: input, shape index: {}]   ;;  %s990_s4 = inlined_call_operand.vmem [shape: f32[2,64,4], index: 4, kind: output, shape index: {}]  }
   0x1 LB: > { %s671_s16 = sadd.s32 4294967295, %s841_s15   ;;  %p675_p0 = scmp.ge.s32.totalorder %s841_s15, 1  ;;  %s841_s15 = sphi %s868_s15, %s14_s15  }
   0x2   : > { %p170_p1 = scmp.lt.s32.totalorder %s841_s15, 3 }
   0x4   : > { %p171_p2 = pnand %p675_p0, %p170_p1 }
   0x5   : > { %p199_p3 = scmp.lt.s32.totalorder (!%p171_p2), %s671_s16, 1 }
   0x6   : > { %174 = sbr.rel (%p171_p2) target bundleno = 268 (0x10c), region = 36 }
   0xb   : > { %v801_v0 = vld [vmem:[%s987_s1 + $0x78] sm:$0xff]   ;;  %v803_v2 = vld [vmem:[%s987_s1 + $0x70] sm:$0xff]   ;;  %v805_v4 = vld [vmem:[%s987_s1 + $0x68] sm:$0xff]   ;;  %s992_s16 = smov (!%p199_p3, %s671_s16), 1  ;;  %vm440_vm0 = vcmask 261120   ;;  %vm598_vm1 = vcmask 31744  }
   0xc   : > { %v802_v1 = vld [vmem:[%s987_s1 + $0x38] sm:$0xff]   ;;  %718 = vmatprep.subr.bf16.mxu0 %v801_v0  ;;  %776 = vmatprep.subr.bf16.mxu1 %v801_v0  ;;  %v804_v3 = vld [vmem:[%s987_s1 + $0x30] sm:$0xff]   ;;  %v806_v5 = vld [vmem:[%s987_s1 + $0x28] sm:$0xff]   ;;  %s792_s5 = smul.u32 96, %s992_s16  ;;  %s206_s11 = scalar_lea.vmem %s989_s3, %s992_s16 }
   0xd   : > { %719 = vmatpush3.bf16.msra.mxu0 %v802_v1  ;;  %784 = vmatpush3.bf16.msra.mxu1 %v802_v1  ;;  %v807_v6 = vld [vmem:[%s987_s1 + $0x60] sm:$0xff]   ;;  %v809_v8 = vld [vmem:[%s987_s1 + $0x58] sm:$0xff]   ;;  %v811_v10 = vld [vmem:[%s987_s1 + $0x50] sm:$0xff]  }
   0xe   : > { %720 = vmatprep.subr.bf16.mxu0 %v803_v2  ;;  %777 = vmatprep.subr.bf16.mxu1 %v803_v2  ;;  %v808_v7 = vld [vmem:[%s987_s1 + $0x20] sm:$0xff]   ;;  %s909_s12 = scalar_lea.vmem %s986_s0, %s792_s5  ;;  %v810_v9 = vld [vmem:[%s987_s1 + $0x18] sm:$0xff]   ;;  %v812_v13 = vld [vmem:[%s987_s1 + $0x10] sm:$0xff]  }
   0xf   : > { %v819_v11 = vld [vmem:[%s909_s12 + $0x4] ss:$12 sps:$4 sm:$0xff]   ;;  %v822_v12 = vld [vmem:[%s909_s12 + $0x4c] ss:$12 sps:$4 sm:$0xff]   ;;  %v820_v20 = vld [vmem:[%s909_s12 + $0x48] ss:$12 sps:$4 sm:$0xff]  }
  0x10   : > { %v813_v14 = vld [vmem:[%s987_s1 + $0x48] sm:$0xff]   ;;  %485 = vmatprep.mubr.bf16.mxu0 %v819_v11  ;;  %509 = vmatprep.mubr.bf16.mxu1 %v822_v12  ;;  %v815_v16 = vld [vmem:[%s987_s1 + $0x40] sm:$0xff]   ;;  %v833_v28 = vld [vmem:[%s909_s12 + $0x30] ss:$12 sps:$4 sm:$0xff]  }
  0x11   : > { %721 = vmatpush3.bf16.msra.mxu0 %v804_v3  ;;  %785 = vmatpush3.bf16.msra.mxu1 %v804_v3  ;;  %v814_v15 = vld [vmem:[%s987_s1 + $0x8] sm:$0xff]   ;;  %v816_v17 = vld [vmem:[%s987_s1] sm:$0xff]   ;;  %v834_v29 = vld [vmem:[%s909_s12 + $0x50] ss:$12 sps:$4 sm:$0xff]  }
  0x12   : > { %722 = vmatprep.subr.bf16.mxu0 %v805_v4  ;;  %778 = vmatprep.subr.bf16.mxu1 %v805_v4  ;;  %v823_v18 = vld [vmem:[%s987_s1 + $0x88] sm:$0xff]   ;;  %v824_v22 = vld [vmem:[%s987_s1 + $0x80] sm:$0xff]  }
  0x13   : > { %v817_v19 = vld [vmem:[%s909_s12] ss:$12 sps:$4 sm:$0xff]   ;;  %v825_v21 = vld [vmem:[%s909_s12 + $0x1c] ss:$12 sps:$4 sm:$0xff]   ;;  %v828_v24 = vld [vmem:[%s909_s12 + $0x18] ss:$12 sps:$4 sm:$0xff]  }
  0x14   : > { %v827_v23 = vld [vmem:[%s909_s12 + $0x8] ss:$12 sps:$4 sm:$0xff]   ;;  %v829_v25 = vld [vmem:[%s909_s12 + $0x20] ss:$12 sps:$4 sm:$0xff]   ;;  %v832_v27 = vld [vmem:[%s909_s12 + $0x38] ss:$12 sps:$4 sm:$0xff]  }
  0x15   : > { %723 = vmatpush3.bf16.msra.mxu0 %v806_v5  ;;  %786 = vmatpush3.bf16.msra.mxu1 %v806_v5  ;;  %v830_v26 = vld [vmem:[%s909_s12 + $0x34] ss:$12 sps:$4 sm:$0xff]   ;;  %s717_s12 = sshll.u32 %s992_s16, 6 }
  0x16   : > { %724 = vmatprep.subr.bf16.mxu0 %v807_v6  ;;  %779 = vmatprep.subr.bf16.mxu1 %v807_v6  ;;  %v679_v39 = vld [vmem:[%s988_s2] ss:$0 sm:$0xff]  ;;  %s965_s17 = scalar_lea.vmem %s990_s4, %s717_s12 }
  0x17   : > { %v714_v46 = vld [vmem:[%s206_s11] ss:$0 sm:$0xff] }
  0x19   : > { %725 = vmatpush3.bf16.msra.mxu0 %v808_v7  ;;  %787 = vmatpush3.bf16.msra.mxu1 %v808_v7 }
  0x1a   : > { %726 = vmatprep.subr.bf16.mxu0 %v809_v8  ;;  %780 = vmatprep.subr.bf16.mxu1 %v809_v8 }
  0x1d   : > { %727 = vmatpush3.bf16.msra.mxu0 %v810_v9  ;;  %788 = vmatpush3.bf16.msra.mxu1 %v810_v9 }
  0x1e   : > { %728 = vmatprep.subr.bf16.mxu0 %v811_v10  ;;  %781 = vmatprep.subr.bf16.mxu1 %v811_v10 }
  0x21   : > { %729 = vmatpush3.bf16.msra.mxu0 %v812_v13  ;;  %789 = vmatpush3.bf16.msra.mxu1 %v812_v13 }
  0x22   : > { %730 = vmatprep.subr.bf16.mxu0 %v813_v14  ;;  %782 = vmatprep.subr.bf16.mxu1 %v813_v14 }
  0x25   : > { %731 = vmatpush3.bf16.msra.mxu0 %v814_v15  ;;  %790 = vmatpush3.bf16.msra.mxu1 %v814_v15 }
  0x26   : > { %732 = vmatprep.subr.bf16.mxu0 %v815_v16  ;;  %783 = vmatprep.subr.bf16.mxu1 %v815_v16 }
  0x29   : > { %733 = vmatpush3.bf16.msra.mxu0 %v816_v17  ;;  %791 = vmatpush3.bf16.msra.mxu1 %v816_v17 }
  0x2a   : > { %764 = vmatprep.subr.bf16.mxu1 %v823_v18 }
  0x2c   : > { %486 = vmatmul.mubr.bf16.vlgmr.msra.gmra.mxu0 %v817_v19  ;;  %510 = vmatmul.mubr.bf16.vlgmr.msra.gmra.mxu1 %v820_v20 }
  0x2d   : > { %765 = vmatpush3.bf16.msra.mxu1 %v823_v18  ;;  %493 = vmatprep.mubr.bf16.mxu0 %v825_v21 }
  0x2e   : > { %766 = vmatprep.subr.bf16.mxu1 %v824_v22  ;;  %768 = vmatprep.mubr.msk.bf16.mxu1 %vm440_vm0, %v827_v23 }
  0x31   : > { %767 = vmatpush3.bf16.msra.mxu1 %v824_v22 }
  0x34   : > { %494 = vmatmul.mubr.bf16.gmra.mxu0 %v828_v24  ;;  %769 = vmatmul.mubr.msk.bf16.vlgmr.msra.gmra.mxu1 %vm440_vm0, %v829_v25 }
  0x35   : > { %501 = vmatprep.mubr.bf16.mxu0 %v830_v26  ;;  %772 = vmatprep.mubr.msk.bf16.mxu1 %vm440_vm0, %v832_v27 }
  0x3c   : > { %502 = vmatmul.mubr.bf16.gmra.mxu0 %v833_v28  ;;  %773 = vmatmul.mubr.msk.bf16.gmra.mxu1 %vm440_vm0, %v834_v29 }
  0xec   : > { %v734_v30 = vpop.f32.mrf.mxu0  ;;  %v752_v31 = vpop.f32.mrf.mxu1 }
  0xee   : > { %v735_v32 = vpop.f32.mrf.mxu0  ;;  %v753_v33 = vpop.f32.mrf.mxu1 }
  0xef   : > { %v736_v36 = vadd.f32 %v735_v32, %v734_v30  ;;  %v754_v44 = vadd.f32 %v753_v33, %v752_v31 }
  0xf0   : > { %v737_v34 = vpop.f32.mrf.mxu0  ;;  %v755_v35 = vpop.f32.mrf.mxu1 }
  0xf1   : > { %v488_v43 = vadd.f32 %v736_v36, %v679_v39  ;;  %v512_v57 = vadd.f32 %v754_v44, %v679_v39 }
  0xf2   : > { %v738_v37 = vpop.f32.mrf.mxu0  ;;  %v756_v38 = vpop.f32.mrf.mxu1 }
  0xf3   : > { %v739_v42 = vadd.f32 %v738_v37, %v737_v34  ;;  %v757_v58 = vadd.f32 %v756_v38, %v755_v35 }
  0xf4   : > { %v740_v40 = vpop.f32.mrf.mxu0  ;;  %v770_v41 = vpop.f32.mrf.mxu1 }
  0xf5   : > { %v491_v54 = vadd.f32 %v739_v42, %v679_v39  ;;  %v515_v9 = vadd.f32 %v757_v58, %v679_v39 }
  0xf6   : > { %v741_v45 = vpop.f32.mrf.mxu0  ;;  %v552_v47 = vpop.f32.mrf.mxu1 }
  0xf7   : > { %v742_v48 = vadd.f32 %v741_v45, %v740_v40  ;;  %v553_v49 = vadd.f32 %v552_v47, %v488_v43 }
  0xf8   : > { %v743_v50 = vpop.f32.mrf.mxu0  ;;  %v771_v51 = vpop.f32.mrf.mxu1 }
  0xf9   : > { %v496_v52 = vadd.f32 %v742_v48, %v679_v39  ;;  %v590_v53 = vadd.f32 %v714_v46, %v553_v49 }
  0xfa   : > { %v744_v55 = vpop.f32.mrf.mxu0  ;;  %v555_v56 = vpop.f32.mrf.mxu1 }
  0xfb   : > { %v561_v59 = vadd.f32 %v770_v41, %v496_v52  ;;  %599 = vst.msk [vmem:[%s965_s17] sm:$0xff] %vm598_vm1, %v590_v53  ;;  %v745_v60 = vadd.f32 %v744_v55, %v743_v50  ;;  %v556_v61 = vadd.f32 %v555_v56, %v491_v54 }
  0xfc   : > { %v746_v62 = vpop.f32.mrf.mxu0  ;;  %v774_v63 = vpop.f32.mrf.mxu1 }
  0xfd   : > { %v592_v0 = vadd.f32 %v714_v46, %v561_v59  ;;  %v499_v1 = vadd.f32 %v745_v60, %v679_v39  ;;  %v591_v2 = vadd.f32 %v714_v46, %v556_v61  ;;  %v577_v3 = vadd.f32 %v774_v63, %v512_v57 }
  0xfe   : > { %v747_v4 = vpop.f32.mrf.mxu0  ;;  %v568_v5 = vpop.f32.mrf.mxu1 }
  0xff   : > { %601 = vst.msk [vmem:[%s965_s17 + $0x10] sm:$0xff] %vm598_vm1, %v592_v0  ;;  %v564_v6 = vadd.f32 %v771_v51, %v499_v1  ;;  %600 = vst.msk [vmem:[%s965_s17 + $0x8] sm:$0xff] %vm598_vm1, %v591_v2  ;;  %v596_v7 = vadd.f32 %v714_v46, %v577_v3  ;;  %v748_v8 = vadd.f32 %v747_v4, %v746_v62 }
 0x100   : > { %v749_v10 = vpop.f32.mrf.mxu0  ;;  %v775_v11 = vpop.f32.mrf.mxu1 }
 0x101   : > { %v593_v12 = vadd.f32 %v714_v46, %v564_v6  ;;  %605 = vst.msk [vmem:[%s965_s17 + $0x30] sm:$0xff] %vm598_vm1, %v596_v7  ;;  %v504_v13 = vadd.f32 %v748_v8, %v679_v39  ;;  %v580_v14 = vadd.f32 %v775_v11, %v515_v9 }
 0x102   : > { %v750_v15 = vpop.f32.mrf.mxu0  ;;  %v571_v21 = vpop.f32.mrf.mxu1 }
 0x103   : > { %602 = vst.msk [vmem:[%s965_s17 + $0x18] sm:$0xff] %vm598_vm1, %v593_v12  ;;  %v569_v16 = vadd.f32 %v568_v5, %v504_v13  ;;  %v597_v17 = vadd.f32 %v714_v46, %v580_v14  ;;  %v751_v18 = vadd.f32 %v750_v15, %v749_v10 }
 0x105   : > { %v594_v19 = vadd.f32 %v714_v46, %v569_v16  ;;  %606 = vst.msk [vmem:[%s965_s17 + $0x38] sm:$0xff] %vm598_vm1, %v597_v17  ;;  %v507_v20 = vadd.f32 %v751_v18, %v679_v39 }
 0x107   : > { %603 = vst.msk [vmem:[%s965_s17 + $0x20] sm:$0xff] %vm598_vm1, %v594_v19  ;;  %v572_v22 = vadd.f32 %v571_v21, %v507_v20 }
 0x109   : > { %v595_v23 = vadd.f32 %v714_v46, %v572_v22 }
 0x10b   : > { %604 = vst.msk [vmem:[%s965_s17 + $0x28] sm:$0xff] %vm598_vm1, %v595_v23 }
 0x10c PF: > { %s14_s15 = sadd.s32 1, %s841_s15  }
 0x10d   : > { %p11_p4 = scmp.ge.s32.totalorder %s14_s15, 4  }
 0x10f   :  { %13 = sbr.rel (!%p11_p4) target bundleno = 1 (0x1), region = 69 }

</bundles_post_ra>
